<compile_context>
chip_gen: v5e
topology: v5e:2x2
jax: 0.10.0
libtpu: 0.0.40
codegen_flags: <defaults>
</compile_context>

<pallas_src>
import functools

import jax
import jax.numpy as jnp
from jax.experimental import pallas as pl
from jax.experimental.pallas import tpu as pltpu

_EPS = 1e-5

# --------------------------- per-generation sizing ---------------------------
_VMEM_CFG = None


def _vmem_params():
    """(scoped VMEM limit, per-block footprint budget) in bytes, per chip gen."""
    global _VMEM_CFG
    if _VMEM_CFG is None:
        try:
            cap = int(getattr(pltpu.get_tpu_info(), "vmem_capacity_bytes"))
        except Exception:                       # pragma: no cover - fallback
            cap = 64 << 20                      # v7x per-core size (safe floor)
        limit = int(min((cap * 3) // 4, 96 << 20))   # 48 MiB v7x, 96 MiB v5e/v6e
        budget = int(min(cap // 8, 14 << 20))        #  8 MiB v7x, 14 MiB v5e/v6e
        _VMEM_CFG = (limit, budget)
    return _VMEM_CFG


def _ceil_div(a, b):
    return -(-a // b)


def _choose_batch_tiling(n, per_row_bytes, block_budget):
    """Pick a batch tile tn and grid size gn (batch is padded to gn*tn).

    Targets: per-block footprint <= block_budget, >=4 grid steps when the batch
    allows it (each v7x TensorCore then gets >=2 pipelined steps), and an even
    number of grid steps for megacore balance."""
    tn = max(1, block_budget // max(per_row_bytes, 1))
    tn = min(tn, max(1, n // 4)) if n >= 4 else min(tn, n)
    if tn >= 8:
        tn = (tn // 8) * 8                      # sublane-friendly batch tile
    gn = _ceil_div(n, tn)
    if gn > 1 and gn % 2 == 1:
        gn += 1                                 # even step count for 2 cores
    return tn, gn, tn * gn


# ----------------------------- tiled-path kernels ----------------------------
def _conv_stats_kernel(xp_ref, w_ref, y_ref, stats_ref):
    """Conv1d(K, stride=1) on an L-zero-padded NLC tile + partial BN stats.

    xp_ref    : (tn, L+2, C_in)  zero padded along L (and zero batch padding)
    w_ref     : (K, C_in, C_out) conv weight taps (bias dropped: cancelled by BN)
    y_ref     : (tn, L, C_out)   conv output (pre-BN)
    stats_ref : (1, 2, C_out)    per-tile [sum ; sum of squares]
    """
    tn, Lp, C_in = xp_ref.shape
    K, _, C_out = w_ref.shape
    L_out = Lp - K + 1

    xp = xp_ref[...]
    acc = jnp.dot(xp[:, 0:L_out, :].reshape(tn * L_out, C_in), w_ref[0],
                  preferred_element_type=jnp.float32)
    for k in range(1, K):                       # K = 3 static -> unrolled
        acc = acc + jnp.dot(xp[:, k:k + L_out, :].reshape(tn * L_out, C_in),
                            w_ref[k], preferred_element_type=jnp.float32)

    y_ref[...] = acc.reshape(tn, L_out, C_out)
    stats_ref[0:1, 0:1, :] = jnp.sum(acc, axis=0, keepdims=True).reshape(1, 1, C_out)
    stats_ref[0:1, 1:2, :] = jnp.sum(acc * acc, axis=0, keepdims=True).reshape(1, 1, C_out)


def _bn_pool_conv_stats_kernel(y_ref, stats_ref, g_ref, b_ref, w_ref,
                               yn_ref, nstats_ref, hp_scr,
                               *, pool, count, n_real):
    """BN(batch stats)+ReLU+MaxPool of layer i fused with layer i+1's conv and
    partial stats.  The (gn,2,C) partials of layer i are reduced in-kernel."""
    tn, L, C = y_ref.shape
    K, _, C_out = w_ref.shape
    L_pool = L // pool
    L_next = L_pool

    # fold layer-i train-mode BN into a per-channel scale/shift (tiny VPU work)
    tot = jnp.sum(stats_ref[...], axis=0)                        # (2, C)
    inv_cnt = 1.0 / count
    mean = tot[0:1, :] * inv_cnt
    var = jnp.maximum(tot[1:2, :] * inv_cnt - mean * mean, 0.0)
    scale = g_ref[...] * jax.lax.rsqrt(var + _EPS)
    shift = b_ref[...] - mean * scale
    sc = scale.reshape(1, 1, C)
    sh = shift.reshape(1, 1, C)

    # BN + MaxPool (strided sublane loads) + ReLU
    m = y_ref[:, pl.ds(0, L_pool, stride=pool), :] * sc + sh
    for p in range(1, pool):
        m = jnp.maximum(m, y_ref[:, pl.ds(p, L_pool, stride=pool), :] * sc + sh)
    h = jnp.maximum(m, 0.0)

    # zero batch-padding rows so they contribute nothing to layer i+1's stats
    row = pl.program_id(0) * tn + jax.lax.broadcasted_iota(jnp.int32, (tn, 1, 1), 0)
    h = jnp.where(row < n_real, h, 0.0)

    # stage the zero-L-padded activation in scratch for shifted conv reads
    z = jnp.zeros((tn, 1, C), jnp.float32)
    hp_scr[:, 0:1, :] = z
    hp_scr[:, 1:L_pool + 1, :] = h
    hp_scr[:, L_pool + 1:L_pool + 2, :] = z

    # layer i+1 conv: K shifted MXU dots (bias dropped: cancelled by its BN)
    acc = jnp.dot(hp_scr[:, 0:L_next, :].reshape(tn * L_next, C), w_ref[0],
                  preferred_element_type=jnp.float32)
    for k in range(1, K):
        acc = acc + jnp.dot(hp_scr[:, k:k + L_next, :].reshape(tn * L_next, C),
                            w_ref[k], preferred_element_type=jnp.float32)

    yn_ref[...] = acc.reshape(tn, L_next, C_out)
    nstats_ref[0:1, 0:1, :] = jnp.sum(acc, axis=0, keepdims=True).reshape(1, 1, C_out)
    nstats_ref[0:1, 1:2, :] = jnp.sum(acc * acc, axis=0, keepdims=True).reshape(1, 1, C_out)


def _bn_pool_classifier_kernel(y_ref, stats_ref, g_ref, b_ref, w_ref, bias_ref,
                               out_ref, *, pool, count):
    """Final ConvBlock epilogue (BN + ReLU + MaxPool) fused with the Linear
    classifier.  The PyTorch NCL flatten is folded into w_ref (L_pool, C, O),
    so the classifier is per-position MXU dots (no in-kernel lane reshuffle)."""
    tn, L, C = y_ref.shape
    L_pool = L // pool
    O = out_ref.shape[2]

    tot = jnp.sum(stats_ref[...], axis=0)
    inv_cnt = 1.0 / count
    mean = tot[0:1, :] * inv_cnt
    var = jnp.maximum(tot[1:2, :] * inv_cnt - mean * mean, 0.0)
    scale = g_ref[...] * jax.lax.rsqrt(var + _EPS)
    shift = b_ref[...] - mean * scale
    sc = scale.reshape(1, 1, C)
    sh = shift.reshape(1, 1, C)

    m = y_ref[:, pl.ds(0, L_pool, stride=pool), :] * sc + sh
    for p in range(1, pool):
        m = jnp.maximum(m, y_ref[:, pl.ds(p, L_pool, stride=pool), :] * sc + sh)
    feats = jnp.maximum(m, 0.0)                                  # (tn, L_pool, C)

    o = jnp.dot(feats[:, 0, :], w_ref[0], preferred_element_type=jnp.float32)
    for l in range(1, L_pool):
        o = o + jnp.dot(feats[:, l, :], w_ref[l], preferred_element_type=jnp.float32)
    out_ref[...] = (o + bias_ref[...]).reshape(tn, 1, O)


# ------------------------ fully-fused small-batch kernel ---------------------
def _fused_scut_kernel(*refs, layers, pool):
    """Whole network (all ConvBlocks + classifier) in one kernel: weights and
    activations stay resident in VMEM, BN stats are reduced in-kernel, single
    dispatch.  Used when the whole batch fits comfortably in VMEM."""
    n_in = 1 + 3 * layers + 2
    xp_ref = refs[0]
    wcls_ref, bcls_ref = refs[n_in - 2], refs[n_in - 1]
    out_ref = refs[n_in]
    y_scr, h_scr = refs[n_in + 1], refs[n_in + 2]

    N = xp_ref.shape[0]
    src, src_len = xp_ref, xp_ref.shape[1]            # zero-L-padded input
    feats = None
    for i in range(layers):
        w_ref, g_ref, b_ref = refs[1 + 3 * i], refs[2 + 3 * i], refs[3 + 3 * i]
        K, C_in, C_out = w_ref.shape
        L_out = src_len - K + 1
        L_pool = L_out // pool

        # Conv1d: K shifted MXU dots (bias dropped: cancelled by train-mode BN)
        acc = jnp.dot(src[:, 0:L_out, :].reshape(N * L_out, C_in), w_ref[0],
                      preferred_element_type=jnp.float32)
        for k in range(1, K):
            acc = acc + jnp.dot(src[:, k:k + L_out, :].reshape(N * L_out, C_in),
                                w_ref[k], preferred_element_type=jnp.float32)

        # train-mode BatchNorm over the (whole, resident) batch
        inv_cnt = 1.0 / float(N * L_out)
        mean = jnp.sum(acc, axis=0, keepdims=True) * inv_cnt
        var = jnp.maximum(jnp.sum(acc * acc, axis=0, keepdims=True) * inv_cnt
                          - mean * mean, 0.0)
        scale = g_ref[...] * jax.lax.rsqrt(var + _EPS)
        shift = b_ref[...] - mean * scale
        y = jnp.maximum(acc * scale + shift, 0.0)                # BN + ReLU

        # MaxPool1d(pool, pool) via strided sublane loads of a VMEM scratch
        y_scr[:, 0:L_out, :] = y.reshape(N, L_out, C_out)
        m = y_scr[:, pl.ds(0, L_pool, stride=pool), :]
        for p in range(1, pool):
            m = jnp.maximum(m, y_scr[:, pl.ds(p, L_pool, stride=pool), :])

        if i + 1 < layers:
            # stash zero-L-padded pooled activation for the next conv's reads
            z = jnp.zeros((N, 1, C_out), jnp.float32)
            h_scr[:, 0:1, :] = z
            h_scr[:, 1:L_pool + 1, :] = m
            h_scr[:, L_pool + 1:L_pool + 2, :] = z
            src, src_len = h_scr, L_pool + 2
        else:
            feats = m                                            # (N, L_f, C)

    # Linear classifier: PyTorch NCL-flatten folded into wcls (L_f, C, O)
    L_f = feats.shape[1]
    o = jnp.dot(feats[:, 0, :], wcls_ref[0], preferred_element_type=jnp.float32)
    for l in range(1, L_f):
        o = o + jnp.dot(feats[:, l, :], wcls_ref[l], preferred_element_type=jnp.float32)
    out_ref[...] = o + bcls_ref[...]


# --------------------------------- wrappers ----------------------------------
def _fused_forward(xp, w_taps, gammas, betas, w3, bcls, *, pool, vmem_limit):
    N, Lp, _ = xp.shape
    K = w_taps[0].shape[0]
    hidden = w_taps[0].shape[2]
    layers = len(w_taps)
    O = w3.shape[2]
    L0 = Lp - K + 1

    operands = [xp]
    for w, g, b in zip(w_taps, gammas, betas):
        operands += [w, g, b]
    operands += [w3, bcls]

    vspec = pl.BlockSpec(memory_space=pltpu.MemorySpace.VMEM)
    return pl.pallas_call(
        functools.partial(_fused_scut_kernel, layers=layers, pool=pool),
        out_shape=jax.ShapeDtypeStruct((N, O), jnp.float32),
        in_specs=[vspec] * len(operands),
        out_specs=vspec,
        scratch_shapes=[
            pltpu.VMEM((N, L0, hidden), jnp.float32),
            pltpu.VMEM((N, L0 // pool + 2, hidden), jnp.float32),
        ],
        compiler_params=pltpu.CompilerParams(vmem_limit_bytes=vmem_limit),
    )(*operands)


def _tiled_forward(xp, w_taps, gammas, betas, w3, bcls, *, pool, n_real,
                   vmem_limit, block_budget):
    N, Lp, C0 = xp.shape
    layers = len(w_taps)
    K = w_taps[0].shape[0]
    hidden = w_taps[0].shape[2]
    O = w3.shape[2]
    L0 = Lp - K + 1

    # per-row VMEM footprint of the heaviest kernel (first layer boundary)
    per_row = 4 * (Lp * C0 + 3 * L0 * hidden + (L0 // pool + 2) * hidden)
    tn, gn, n_pad = _choose_batch_tiling(N, per_row, block_budget)
    if n_pad != N:
        xp = jnp.pad(xp, ((0, n_pad - N), (0, 0), (0, 0)))

    cparams = pltpu.CompilerParams(dimension_semantics=("parallel",),
                                   vmem_limit_bytes=vmem_limit)

    # ---- layer 1: conv + per-tile partial BN stats --------------------------
    y, stats = pl.pallas_call(
        _conv_stats_kernel,
        grid=(gn,),
        in_specs=[
            pl.BlockSpec((tn, Lp, C0), lambda i: (i, 0, 0)),
            pl.BlockSpec((K, C0, hidden), lambda i: (0, 0, 0)),
        ],
        out_specs=(
            pl.BlockSpec((tn, L0, hidden), lambda i: (i, 0, 0)),
            pl.BlockSpec((1, 2, hidden), lambda i: (i, 0, 0)),
        ),
        out_shape=(
            jax.ShapeDtypeStruct((n_pad, L0, hidden), jnp.float32),
            jax.ShapeDtypeStruct((gn, 2, hidden), jnp.float32),
        ),
        compiler_params=cparams,
    )(xp, w_taps[0])

    # ---- layers 2..n: BN+ReLU+pool of layer i fused with layer i+1's conv ---
    L_cur = L0
    for li in range(1, layers):
        L_next = L_cur // pool
        kern = functools.partial(_bn_pool_conv_stats_kernel, pool=pool,
                                 count=float(n_real * L_cur), n_real=n_real)
        y, stats = pl.pallas_call(
            kern,
            grid=(gn,),
            in_specs=[
                pl.BlockSpec((tn, L_cur, hidden), lambda i: (i, 0, 0)),
                pl.BlockSpec((gn, 2, hidden), lambda i: (0, 0, 0)),
                pl.BlockSpec((1, hidden), lambda i: (0, 0)),
                pl.BlockSpec((1, hidden), lambda i: (0, 0)),
                pl.BlockSpec((K, hidden, hidden), lambda i: (0, 0, 0)),
            ],
            out_specs=(
                pl.BlockSpec((tn, L_next, hidden), lambda i: (i, 0, 0)),
                pl.BlockSpec((1, 2, hidden), lambda i: (i, 0, 0)),
            ),
            out_shape=(
                jax.ShapeDtypeStruct((n_pad, L_next, hidden), jnp.float32),
                jax.ShapeDtypeStruct((gn, 2, hidden), jnp.float32),
            ),
            scratch_shapes=[pltpu.VMEM((tn, L_next + 2, hidden), jnp.float32)],
            compiler_params=cparams,
        )(y, stats, gammas[li - 1], betas[li - 1], w_taps[li])
        L_cur = L_next

    # ---- final: BN+ReLU+pool of the last layer fused with the classifier ----
    L_f = L_cur // pool
    kern = functools.partial(_bn_pool_classifier_kernel, pool=pool,
                             count=float(n_real * L_cur))
    logits = pl.pallas_call(
        kern,
        grid=(gn,),
        in_specs=[
            pl.BlockSpec((tn, L_cur, hidden), lambda i: (i, 0, 0)),
            pl.BlockSpec((gn, 2, hidden), lambda i: (0, 0, 0)),
            pl.BlockSpec((1, hidden), lambda i: (0, 0)),
            pl.BlockSpec((1, hidden), lambda i: (0, 0)),
            pl.BlockSpec((L_f, hidden, O), lambda i: (0, 0, 0)),
            pl.BlockSpec((1, O), lambda i: (0, 0)),
        ],
        out_specs=pl.BlockSpec((tn, 1, O), lambda i: (i, 0, 0)),
        out_shape=jax.ShapeDtypeStruct((n_pad, 1, O), jnp.float32),
        compiler_params=cparams,
    )(y, stats, gammas[-1], betas[-1], w3, bcls)
    return logits[:n_real, 0, :]


def scut_forward(x_ncl, conv_params, cls_w, cls_b, *, pool, force_tiled=False):
    """Scut forward pass.

    x_ncl       : (N, C0, L) f32
    conv_params : list of (conv_weight (C_out, C_in, K), bn_gamma, bn_beta)
                  (conv bias omitted: exactly cancelled by train-mode BN)
    cls_w, cls_b: Linear classifier parameters in PyTorch layout.
    """
    vmem_limit, block_budget = _vmem_params()
    N, C0, L = x_ncl.shape
    layers = len(conv_params)
    hidden = conv_params[0][0].shape[0]
    L_f = L // (pool ** layers)
    O = cls_w.shape[0]
    assert cls_w.shape[1] == hidden * L_f

    # One layout change + zero L-padding of the raw input; everything after
    # stays NLC (channels on the lane axis) with padding produced in-kernel.
    xp = jnp.pad(jnp.transpose(x_ncl, (0, 2, 1)), ((0, 0), (1, 1), (0, 0)))

    w_taps = [jnp.transpose(w, (2, 1, 0)) for (w, _, _) in conv_params]  # (K,Ci,Co)
    gammas = [g.reshape(1, -1) for (_, g, _) in conv_params]
    betas = [b.reshape(1, -1) for (_, _, b) in conv_params]
    # Fold PyTorch's NCL (channel-major) flatten into the classifier weight.
    w3 = jnp.transpose(cls_w.reshape(O, hidden, L_f), (2, 1, 0))         # (Lf,C,O)
    bcls = cls_b.reshape(1, O)

    fused_bytes = 4 * N * ((L + 2) * C0 + 4 * L * hidden)
    if (not force_tiled) and fused_bytes <= min(block_budget, 8 << 20):
        return _fused_forward(xp, w_taps, gammas, betas, w3, bcls,
                              pool=pool, vmem_limit=vmem_limit)
    return _tiled_forward(xp, w_taps, gammas, betas, w3, bcls, pool=pool,
                          n_real=N, vmem_limit=vmem_limit,
                          block_budget=block_budget)


# ---------------------------- pure-JAX reference -----------------------------
def _ref_conv_block(x, w, b, gamma, beta, *, pool, eps=_EPS):
    xp = jnp.pad(x, ((0, 0), (0, 0), (1, 1)))
    C_out, _, K = w.shape
    L_out = xp.shape[2] - K + 1
    y = b[None, :, None] + sum(
        jnp.einsum('oc,ncl->nol', w[:, :, k], xp[:, :, k:k + L_out])
        for k in range(K))
    mean = jnp.mean(y, axis=(0, 2), keepdims=True)
    var = jnp.mean((y - mean) ** 2, axis=(0, 2), keepdims=True)
    y = (y - mean) * jax.lax.rsqrt(var + eps) * gamma[None, :, None] + beta[None, :, None]
    y = jnp.maximum(y, 0.0)
    L_pool = L_out // pool
    y = y[:, :, :L_pool * pool].reshape(x.shape[0], C_out, L_pool, pool)
    return jnp.max(y, axis=-1)


def ref_scut(x, conv_params_with_bias, cls_w, cls_b, *, pool):
    h = x
    for (w, b, gamma, beta) in conv_params_with_bias:
        h = _ref_conv_block(h, w, b, gamma, beta, pool=pool)
    flat = h.reshape(h.shape[0], -1)            # PyTorch NCL flatten
    return flat @ cls_w.T + cls_b


if __name__ == "__main__":
    # Small shapes consistent with Scut(channels=2, layers=4):
    # max_pool_factor = 4 // 4 = 1 -> MaxPool1d(kernel=stride=2) every block.
    # hidden=32, L=64 -> embedding = 32 * (64 / 2**4) = 128, output_size = 7.
    N, C0, L = 8, 2, 64
    hidden, layers, out_size = 32, 4, 7
    pool = int(2 * (4 // layers))               # == 2

    key = jax.random.PRNGKey(0)
    keys = jax.random.split(key, 2 * layers + 2)

    conv_params = []        # (w, gamma, beta)     for the Pallas forward
    conv_params_ref = []    # (w, b, gamma, beta)  for the reference
    c_in = C0
    for i in range(layers):
        K = 3
        fan_in, fan_out = c_in * K, hidden * K
        bound = (6.0 / (fan_in + fan_out)) ** 0.5       # xavier_uniform_, gain=1
        w = jax.random.uniform(keys[2 * i], (hidden, c_in, K), jnp.float32,
                               -bound, bound)
        b = jnp.zeros((hidden,), jnp.float32)           # maml_init_: bias = 0
        gamma = jax.random.uniform(keys[2 * i + 1], (hidden,), jnp.float32)
        beta = jnp.zeros((hidden,), jnp.float32)
        conv_params.append((w, gamma, beta))
        conv_params_ref.append((w, b, gamma, beta))
        c_in = hidden

    emb = hidden * (L // (pool ** layers))
    bound = (6.0 / (emb + out_size)) ** 0.5
    cls_w = jax.random.uniform(keys[-2], (out_size, emb), jnp.float32,
                               -bound, bound)
    cls_b = jnp.zeros((out_size,), jnp.float32)         # maml_init_: bias = 0

    x = jax.random.normal(keys[-1], (N, C0, L), jnp.float32)

    ref = ref_scut(x, conv_params_ref, cls_w, cls_b, pool=pool)

    # fully-fused single-kernel path (default at this size)
    fwd = jax.jit(functools.partial(scut_forward, pool=pool))
    out_fused = jax.block_until_ready(fwd(x, conv_params, cls_w, cls_b))

    # batch-tiled / pipelined path (forced here to exercise it as well)
    fwd_tiled = jax.jit(functools.partial(scut_forward, pool=pool, force_tiled=True))
    out_tiled = jax.block_until_ready(fwd_tiled(x, conv_params, cls_w, cls_b))

    assert out_fused.shape == (N, out_size), out_fused.shape
    assert out_tiled.shape == (N, out_size), out_tiled.shape
    # Tolerance absorbs MXU default-precision differences between the Pallas
    # dots and the XLA reference einsum; real layout/BN bugs are O(0.1..1).
    err_f = float(jnp.max(jnp.abs(out_fused - ref)))
    err_t = float(jnp.max(jnp.abs(out_tiled - ref)))
    assert jnp.allclose(out_fused, ref, atol=2e-2, rtol=2e-2), err_f
    assert jnp.allclose(out_tiled, ref, atol=2e-2, rtol=2e-2), err_t

    # TODO(synk): BatchNorm running-stat buffer updates (training side effect)
    # are not modeled; the forward output only depends on batch stats.
    print("KERNEL_OK")
</pallas_src>

<mosaic_0001>
module attributes {stable_mosaic.version = 11 : i64} {
  func.func @_fused_scut_kernel(%arg0: memref<8x66x2xf32, #tpu.memory_space<vmem>>, %arg1: memref<3x2x32xf32, #tpu.memory_space<vmem>>, %arg2: memref<1x32xf32, #tpu.memory_space<vmem>>, %arg3: memref<1x32xf32, #tpu.memory_space<vmem>>, %arg4: memref<3x32x32xf32, #tpu.memory_space<vmem>>, %arg5: memref<1x32xf32, #tpu.memory_space<vmem>>, %arg6: memref<1x32xf32, #tpu.memory_space<vmem>>, %arg7: memref<3x32x32xf32, #tpu.memory_space<vmem>>, %arg8: memref<1x32xf32, #tpu.memory_space<vmem>>, %arg9: memref<1x32xf32, #tpu.memory_space<vmem>>, %arg10: memref<3x32x32xf32, #tpu.memory_space<vmem>>, %arg11: memref<1x32xf32, #tpu.memory_space<vmem>>, %arg12: memref<1x32xf32, #tpu.memory_space<vmem>>, %arg13: memref<4x32x7xf32, #tpu.memory_space<vmem>>, %arg14: memref<1x7xf32, #tpu.memory_space<vmem>>, %arg15: memref<8x7xf32, #tpu.memory_space<vmem>>, %arg16: memref<8x64x32xf32, #tpu.memory_space<vmem>>, %arg17: memref<8x34x32xf32, #tpu.memory_space<vmem>>) attributes {dimension_semantics = [], scalar_prefetch = 0 : i64, scratch_operands = 2 : i64, tpu.core_type = #tpu.core_type<tc>} {
    %c0 = arith.constant 0 : index
    %c0_0 = arith.constant 0 : index
    %c0_1 = arith.constant 0 : index
    %0 = vector.load %arg0[%c0, %c0_0, %c0_1] : memref<8x66x2xf32, #tpu.memory_space<vmem>>, vector<8x64x2xf32>
    %1 = vector.shape_cast %0 : vector<8x64x2xf32> to vector<512x2xf32>
    %c0_2 = arith.constant 0 : index
    %c0_3 = arith.constant 0 : index
    %c0_4 = arith.constant 0 : index
    %2 = vector.load %arg1[%c0_2, %c0_3, %c0_4] : memref<3x2x32xf32, #tpu.memory_space<vmem>>, vector<1x2x32xf32>
    %3 = vector.shape_cast %2 : vector<1x2x32xf32> to vector<2x32xf32>
    %cst = arith.constant dense<0.000000e+00> : vector<512x32xf32>
    %4 = tpu.matmul %1, %3, %cst {dimension_numbers = #tpu.dot_dimension_numbers<[1], [0], [0], [1], [0, 0, 1, 1], [], []>} : vector<512x2xf32>, vector<2x32xf32>, vector<512x32xf32> -> vector<512x32xf32>
    %c0_5 = arith.constant 0 : index
    %c1 = arith.constant 1 : index
    %c0_6 = arith.constant 0 : index
    %5 = vector.load %arg0[%c0_5, %c1, %c0_6] : memref<8x66x2xf32, #tpu.memory_space<vmem>>, vector<8x64x2xf32>
    %6 = vector.shape_cast %5 : vector<8x64x2xf32> to vector<512x2xf32>
    %c1_7 = arith.constant 1 : index
    %c0_8 = arith.constant 0 : index
    %c0_9 = arith.constant 0 : index
    %7 = vector.load %arg1[%c1_7, %c0_8, %c0_9] : memref<3x2x32xf32, #tpu.memory_space<vmem>>, vector<1x2x32xf32>
    %8 = vector.shape_cast %7 : vector<1x2x32xf32> to vector<2x32xf32>
    %cst_10 = arith.constant dense<0.000000e+00> : vector<512x32xf32>
    %9 = tpu.matmul %6, %8, %cst_10 {dimension_numbers = #tpu.dot_dimension_numbers<[1], [0], [0], [1], [0, 0, 1, 1], [], []>} : vector<512x2xf32>, vector<2x32xf32>, vector<512x32xf32> -> vector<512x32xf32>
    %10 = arith.addf %4, %9 : vector<512x32xf32>
    %c0_11 = arith.constant 0 : index
    %c2 = arith.constant 2 : index
    %c0_12 = arith.constant 0 : index
    %11 = vector.load %arg0[%c0_11, %c2, %c0_12] : memref<8x66x2xf32, #tpu.memory_space<vmem>>, vector<8x64x2xf32>
    %12 = vector.shape_cast %11 : vector<8x64x2xf32> to vector<512x2xf32>
    %c2_13 = arith.constant 2 : index
    %c0_14 = arith.constant 0 : index
    %c0_15 = arith.constant 0 : index
    %13 = vector.load %arg1[%c2_13, %c0_14, %c0_15] : memref<3x2x32xf32, #tpu.memory_space<vmem>>, vector<1x2x32xf32>
    %14 = vector.shape_cast %13 : vector<1x2x32xf32> to vector<2x32xf32>
    %cst_16 = arith.constant dense<0.000000e+00> : vector<512x32xf32>
    %15 = tpu.matmul %12, %14, %cst_16 {dimension_numbers = #tpu.dot_dimension_numbers<[1], [0], [0], [1], [0, 0, 1, 1], [], []>} : vector<512x2xf32>, vector<2x32xf32>, vector<512x32xf32> -> vector<512x32xf32>
    %16 = arith.addf %10, %15 : vector<512x32xf32>
    %cst_17 = arith.constant dense<0.000000e+00> : vector<32xf32>
    %17 = vector.multi_reduction <add>, %16, %cst_17 [0] : vector<512x32xf32> to vector<32xf32>
    %18 = vector.shape_cast %17 : vector<32xf32> to vector<1x32xf32>
    %cst_18 = arith.constant 0.001953125 : f32
    %19 = vector.broadcast %cst_18 : f32 to vector<1x32xf32>
    %20 = arith.mulf %18, %19 : vector<1x32xf32>
    %21 = arith.mulf %16, %16 : vector<512x32xf32>
    %cst_19 = arith.constant dense<0.000000e+00> : vector<32xf32>
    %22 = vector.multi_reduction <add>, %21, %cst_19 [0] : vector<512x32xf32> to vector<32xf32>
    %23 = vector.shape_cast %22 : vector<32xf32> to vector<1x32xf32>
    %cst_20 = arith.constant 0.001953125 : f32
    %24 = vector.broadcast %cst_20 : f32 to vector<1x32xf32>
    %25 = arith.mulf %23, %24 : vector<1x32xf32>
    %26 = arith.mulf %20, %20 : vector<1x32xf32>
    %27 = arith.subf %25, %26 : vector<1x32xf32>
    %cst_21 = arith.constant 0.000000e+00 : f32
    %28 = vector.broadcast %cst_21 : f32 to vector<1x32xf32>
    %29 = arith.maximumf %27, %28 : vector<1x32xf32>
    %c0_22 = arith.constant 0 : index
    %c0_23 = arith.constant 0 : index
    %30 = vector.load %arg2[%c0_22, %c0_23] : memref<1x32xf32, #tpu.memory_space<vmem>>, vector<1x32xf32>
    %cst_24 = arith.constant 9.99999974E-6 : f32
    %31 = vector.broadcast %cst_24 : f32 to vector<1x32xf32>
    %32 = arith.addf %29, %31 : vector<1x32xf32>
    %33 = math.rsqrt %32 : vector<1x32xf32>
    %34 = arith.mulf %30, %33 : vector<1x32xf32>
    %c0_25 = arith.constant 0 : index
    %c0_26 = arith.constant 0 : index
    %35 = vector.load %arg3[%c0_25, %c0_26] : memref<1x32xf32, #tpu.memory_space<vmem>>, vector<1x32xf32>
    %36 = arith.mulf %20, %34 : vector<1x32xf32>
    %37 = arith.subf %35, %36 : vector<1x32xf32>
    %38 = vector.broadcast %34 : vector<1x32xf32> to vector<512x32xf32>
    %39 = arith.mulf %16, %38 : vector<512x32xf32>
    %40 = vector.broadcast %37 : vector<1x32xf32> to vector<512x32xf32>
    %41 = arith.addf %39, %40 : vector<512x32xf32>
    %cst_27 = arith.constant 0.000000e+00 : f32
    %42 = vector.broadcast %cst_27 : f32 to vector<512x32xf32>
    %43 = arith.maximumf %41, %42 : vector<512x32xf32>
    %44 = vector.shape_cast %43 : vector<512x32xf32> to vector<8x64x32xf32>
    %c0_28 = arith.constant 0 : index
    %c0_29 = arith.constant 0 : index
    %c0_30 = arith.constant 0 : index
    %45 = vector.load %arg16[%c0_28, %c0_29, %c0_30] : memref<8x64x32xf32, #tpu.memory_space<vmem>>, vector<8x64x32xf32>
    tpu.vector_store %arg16[%c0_28, %c0_29, %c0_30], %44 {strides = array<i32>} : memref<8x64x32xf32, #tpu.memory_space<vmem>>, vector<8x64x32xf32>,
    %c0_31 = arith.constant 0 : index
    %c0_32 = arith.constant 0 : index
    %c0_33 = arith.constant 0 : index
    %46 = tpu.strided_load %arg16[%c0_31, %c0_32, %c0_33] {strides = array<i32: 1, 2, 1>} : memref<8x64x32xf32, #tpu.memory_space<vmem>>, vector<8x32x32xf32>
    %c0_34 = arith.constant 0 : index
    %c1_35 = arith.constant 1 : index
    %c0_36 = arith.constant 0 : index
    %47 = tpu.strided_load %arg16[%c0_34, %c1_35, %c0_36] {strides = array<i32: 1, 2, 1>} : memref<8x64x32xf32, #tpu.memory_space<vmem>>, vector<8x32x32xf32>
    %48 = arith.maximumf %46, %47 : vector<8x32x32xf32>
    %cst_37 = arith.constant 0.000000e+00 : f32
    %49 = vector.broadcast %cst_37 : f32 to vector<8x1x32xf32>
    %c0_38 = arith.constant 0 : index
    %c0_39 = arith.constant 0 : index
    %c0_40 = arith.constant 0 : index
    %50 = vector.load %arg17[%c0_38, %c0_39, %c0_40] : memref<8x34x32xf32, #tpu.memory_space<vmem>>, vector<8x1x32xf32>
    tpu.vector_store %arg17[%c0_38, %c0_39, %c0_40], %49 {strides = array<i32>} : memref<8x34x32xf32, #tpu.memory_space<vmem>>, vector<8x1x32xf32>,
    %c0_41 = arith.constant 0 : index
    %c1_42 = arith.constant 1 : index
    %c0_43 = arith.constant 0 : index
    %51 = vector.load %arg17[%c0_41, %c1_42, %c0_43] : memref<8x34x32xf32, #tpu.memory_space<vmem>>, vector<8x32x32xf32>
    tpu.vector_store %arg17[%c0_41, %c1_42, %c0_43], %48 {strides = array<i32>} : memref<8x34x32xf32, #tpu.memory_space<vmem>>, vector<8x32x32xf32>,
    %c0_44 = arith.constant 0 : index
    %c33 = arith.constant 33 : index
    %c0_45 = arith.constant 0 : index
    %52 = vector.load %arg17[%c0_44, %c33, %c0_45] : memref<8x34x32xf32, #tpu.memory_space<vmem>>, vector<8x1x32xf32>
    tpu.vector_store %arg17[%c0_44, %c33, %c0_45], %49 {strides = array<i32>} : memref<8x34x32xf32, #tpu.memory_space<vmem>>, vector<8x1x32xf32>,
    %c0_46 = arith.constant 0 : index
    %c0_47 = arith.constant 0 : index
    %c0_48 = arith.constant 0 : index
    %53 = vector.load %arg17[%c0_46, %c0_47, %c0_48] : memref<8x34x32xf32, #tpu.memory_space<vmem>>, vector<8x32x32xf32>
    %54 = vector.shape_cast %53 : vector<8x32x32xf32> to vector<256x32xf32>
    %c0_49 = arith.constant 0 : index
    %c0_50 = arith.constant 0 : index
    %c0_51 = arith.constant 0 : index
    %55 = vector.load %arg4[%c0_49, %c0_50, %c0_51] : memref<3x32x32xf32, #tpu.memory_space<vmem>>, vector<1x32x32xf32>
    %56 = vector.shape_cast %55 : vector<1x32x32xf32> to vector<32x32xf32>
    %cst_52 = arith.constant dense<0.000000e+00> : vector<256x32xf32>
    %57 = tpu.matmul %54, %56, %cst_52 {dimension_numbers = #tpu.dot_dimension_numbers<[1], [0], [0], [1], [0, 0, 1, 1], [], []>} : vector<256x32xf32>, vector<32x32xf32>, vector<256x32xf32> -> vector<256x32xf32>
    %c0_53 = arith.constant 0 : index
    %c1_54 = arith.constant 1 : index
    %c0_55 = arith.constant 0 : index
    %58 = vector.load %arg17[%c0_53, %c1_54, %c0_55] : memref<8x34x32xf32, #tpu.memory_space<vmem>>, vector<8x32x32xf32>
    %59 = vector.shape_cast %58 : vector<8x32x32xf32> to vector<256x32xf32>
    %c1_56 = arith.constant 1 : index
    %c0_57 = arith.constant 0 : index
    %c0_58 = arith.constant 0 : index
    %60 = vector.load %arg4[%c1_56, %c0_57, %c0_58] : memref<3x32x32xf32, #tpu.memory_space<vmem>>, vector<1x32x32xf32>
    %61 = vector.shape_cast %60 : vector<1x32x32xf32> to vector<32x32xf32>
    %cst_59 = arith.constant dense<0.000000e+00> : vector<256x32xf32>
    %62 = tpu.matmul %59, %61, %cst_59 {dimension_numbers = #tpu.dot_dimension_numbers<[1], [0], [0], [1], [0, 0, 1, 1], [], []>} : vector<256x32xf32>, vector<32x32xf32>, vector<256x32xf32> -> vector<256x32xf32>
    %63 = arith.addf %57, %62 : vector<256x32xf32>
    %c0_60 = arith.constant 0 : index
    %c2_61 = arith.constant 2 : index
    %c0_62 = arith.constant 0 : index
    %64 = vector.load %arg17[%c0_60, %c2_61, %c0_62] : memref<8x34x32xf32, #tpu.memory_space<vmem>>, vector<8x32x32xf32>
    %65 = vector.shape_cast %64 : vector<8x32x32xf32> to vector<256x32xf32>
    %c2_63 = arith.constant 2 : index
    %c0_64 = arith.constant 0 : index
    %c0_65 = arith.constant 0 : index
    %66 = vector.load %arg4[%c2_63, %c0_64, %c0_65] : memref<3x32x32xf32, #tpu.memory_space<vmem>>, vector<1x32x32xf32>
    %67 = vector.shape_cast %66 : vector<1x32x32xf32> to vector<32x32xf32>
    %cst_66 = arith.constant dense<0.000000e+00> : vector<256x32xf32>
    %68 = tpu.matmul %65, %67, %cst_66 {dimension_numbers = #tpu.dot_dimension_numbers<[1], [0], [0], [1], [0, 0, 1, 1], [], []>} : vector<256x32xf32>, vector<32x32xf32>, vector<256x32xf32> -> vector<256x32xf32>
    %69 = arith.addf %63, %68 : vector<256x32xf32>
    %cst_67 = arith.constant dense<0.000000e+00> : vector<32xf32>
    %70 = vector.multi_reduction <add>, %69, %cst_67 [0] : vector<256x32xf32> to vector<32xf32>
    %71 = vector.shape_cast %70 : vector<32xf32> to vector<1x32xf32>
    %cst_68 = arith.constant 3.906250e-03 : f32
    %72 = vector.broadcast %cst_68 : f32 to vector<1x32xf32>
    %73 = arith.mulf %71, %72 : vector<1x32xf32>
    %74 = arith.mulf %69, %69 : vector<256x32xf32>
    %cst_69 = arith.constant dense<0.000000e+00> : vector<32xf32>
    %75 = vector.multi_reduction <add>, %74, %cst_69 [0] : vector<256x32xf32> to vector<32xf32>
    %76 = vector.shape_cast %75 : vector<32xf32> to vector<1x32xf32>
    %cst_70 = arith.constant 3.906250e-03 : f32
    %77 = vector.broadcast %cst_70 : f32 to vector<1x32xf32>
    %78 = arith.mulf %76, %77 : vector<1x32xf32>
    %79 = arith.mulf %73, %73 : vector<1x32xf32>
    %80 = arith.subf %78, %79 : vector<1x32xf32>
    %cst_71 = arith.constant 0.000000e+00 : f32
    %81 = vector.broadcast %cst_71 : f32 to vector<1x32xf32>
    %82 = arith.maximumf %80, %81 : vector<1x32xf32>
    %c0_72 = arith.constant 0 : index
    %c0_73 = arith.constant 0 : index
    %83 = vector.load %arg5[%c0_72, %c0_73] : memref<1x32xf32, #tpu.memory_space<vmem>>, vector<1x32xf32>
    %cst_74 = arith.constant 9.99999974E-6 : f32
    %84 = vector.broadcast %cst_74 : f32 to vector<1x32xf32>
    %85 = arith.addf %82, %84 : vector<1x32xf32>
    %86 = math.rsqrt %85 : vector<1x32xf32>
    %87 = arith.mulf %83, %86 : vector<1x32xf32>
    %c0_75 = arith.constant 0 : index
    %c0_76 = arith.constant 0 : index
    %88 = vector.load %arg6[%c0_75, %c0_76] : memref<1x32xf32, #tpu.memory_space<vmem>>, vector<1x32xf32>
    %89 = arith.mulf %73, %87 : vector<1x32xf32>
    %90 = arith.subf %88, %89 : vector<1x32xf32>
    %91 = vector.broadcast %87 : vector<1x32xf32> to vector<256x32xf32>
    %92 = arith.mulf %69, %91 : vector<256x32xf32>
    %93 = vector.broadcast %90 : vector<1x32xf32> to vector<256x32xf32>
    %94 = arith.addf %92, %93 : vector<256x32xf32>
    %cst_77 = arith.constant 0.000000e+00 : f32
    %95 = vector.broadcast %cst_77 : f32 to vector<256x32xf32>
    %96 = arith.maximumf %94, %95 : vector<256x32xf32>
    %97 = vector.shape_cast %96 : vector<256x32xf32> to vector<8x32x32xf32>
    %c0_78 = arith.constant 0 : index
    %c0_79 = arith.constant 0 : index
    %c0_80 = arith.constant 0 : index
    %98 = vector.load %arg16[%c0_78, %c0_79, %c0_80] : memref<8x64x32xf32, #tpu.memory_space<vmem>>, vector<8x32x32xf32>
    tpu.vector_store %arg16[%c0_78, %c0_79, %c0_80], %97 {strides = array<i32>} : memref<8x64x32xf32, #tpu.memory_space<vmem>>, vector<8x32x32xf32>,
    %c0_81 = arith.constant 0 : index
    %c0_82 = arith.constant 0 : index
    %c0_83 = arith.constant 0 : index
    %99 = tpu.strided_load %arg16[%c0_81, %c0_82, %c0_83] {strides = array<i32: 1, 2, 1>} : memref<8x64x32xf32, #tpu.memory_space<vmem>>, vector<8x16x32xf32>
    %c0_84 = arith.constant 0 : index
    %c1_85 = arith.constant 1 : index
    %c0_86 = arith.constant 0 : index
    %100 = tpu.strided_load %arg16[%c0_84, %c1_85, %c0_86] {strides = array<i32: 1, 2, 1>} : memref<8x64x32xf32, #tpu.memory_space<vmem>>, vector<8x16x32xf32>
    %101 = arith.maximumf %99, %100 : vector<8x16x32xf32>
    %cst_87 = arith.constant 0.000000e+00 : f32
    %102 = vector.broadcast %cst_87 : f32 to vector<8x1x32xf32>
    %c0_88 = arith.constant 0 : index
    %c0_89 = arith.constant 0 : index
    %c0_90 = arith.constant 0 : index
    %103 = vector.load %arg17[%c0_88, %c0_89, %c0_90] : memref<8x34x32xf32, #tpu.memory_space<vmem>>, vector<8x1x32xf32>
    tpu.vector_store %arg17[%c0_88, %c0_89, %c0_90], %102 {strides = array<i32>} : memref<8x34x32xf32, #tpu.memory_space<vmem>>, vector<8x1x32xf32>,
    %c0_91 = arith.constant 0 : index
    %c1_92 = arith.constant 1 : index
    %c0_93 = arith.constant 0 : index
    %104 = vector.load %arg17[%c0_91, %c1_92, %c0_93] : memref<8x34x32xf32, #tpu.memory_space<vmem>>, vector<8x16x32xf32>
    tpu.vector_store %arg17[%c0_91, %c1_92, %c0_93], %101 {strides = array<i32>} : memref<8x34x32xf32, #tpu.memory_space<vmem>>, vector<8x16x32xf32>,
    %c0_94 = arith.constant 0 : index
    %c17 = arith.constant 17 : index
    %c0_95 = arith.constant 0 : index
    %105 = vector.load %arg17[%c0_94, %c17, %c0_95] : memref<8x34x32xf32, #tpu.memory_space<vmem>>, vector<8x1x32xf32>
    tpu.vector_store %arg17[%c0_94, %c17, %c0_95], %102 {strides = array<i32>} : memref<8x34x32xf32, #tpu.memory_space<vmem>>, vector<8x1x32xf32>,
    %c0_96 = arith.constant 0 : index
    %c0_97 = arith.constant 0 : index
    %c0_98 = arith.constant 0 : index
    %106 = vector.load %arg17[%c0_96, %c0_97, %c0_98] : memref<8x34x32xf32, #tpu.memory_space<vmem>>, vector<8x16x32xf32>
    %107 = vector.shape_cast %106 : vector<8x16x32xf32> to vector<128x32xf32>
    %c0_99 = arith.constant 0 : index
    %c0_100 = arith.constant 0 : index
    %c0_101 = arith.constant 0 : index
    %108 = vector.load %arg7[%c0_99, %c0_100, %c0_101] : memref<3x32x32xf32, #tpu.memory_space<vmem>>, vector<1x32x32xf32>
    %109 = vector.shape_cast %108 : vector<1x32x32xf32> to vector<32x32xf32>
    %cst_102 = arith.constant dense<0.000000e+00> : vector<128x32xf32>
    %110 = tpu.matmul %107, %109, %cst_102 {dimension_numbers = #tpu.dot_dimension_numbers<[1], [0], [0], [1], [0, 0, 1, 1], [], []>} : vector<128x32xf32>, vector<32x32xf32>, vector<128x32xf32> -> vector<128x32xf32>
    %c0_103 = arith.constant 0 : index
    %c1_104 = arith.constant 1 : index
    %c0_105 = arith.constant 0 : index
    %111 = vector.load %arg17[%c0_103, %c1_104, %c0_105] : memref<8x34x32xf32, #tpu.memory_space<vmem>>, vector<8x16x32xf32>
    %112 = vector.shape_cast %111 : vector<8x16x32xf32> to vector<128x32xf32>
    %c1_106 = arith.constant 1 : index
    %c0_107 = arith.constant 0 : index
    %c0_108 = arith.constant 0 : index
    %113 = vector.load %arg7[%c1_106, %c0_107, %c0_108] : memref<3x32x32xf32, #tpu.memory_space<vmem>>, vector<1x32x32xf32>
    %114 = vector.shape_cast %113 : vector<1x32x32xf32> to vector<32x32xf32>
    %cst_109 = arith.constant dense<0.000000e+00> : vector<128x32xf32>
    %115 = tpu.matmul %112, %114, %cst_109 {dimension_numbers = #tpu.dot_dimension_numbers<[1], [0], [0], [1], [0, 0, 1, 1], [], []>} : vector<128x32xf32>, vector<32x32xf32>, vector<128x32xf32> -> vector<128x32xf32>
    %116 = arith.addf %110, %115 : vector<128x32xf32>
    %c0_110 = arith.constant 0 : index
    %c2_111 = arith.constant 2 : index
    %c0_112 = arith.constant 0 : index
    %117 = vector.load %arg17[%c0_110, %c2_111, %c0_112] : memref<8x34x32xf32, #tpu.memory_space<vmem>>, vector<8x16x32xf32>
    %118 = vector.shape_cast %117 : vector<8x16x32xf32> to vector<128x32xf32>
    %c2_113 = arith.constant 2 : index
    %c0_114 = arith.constant 0 : index
    %c0_115 = arith.constant 0 : index
    %119 = vector.load %arg7[%c2_113, %c0_114, %c0_115] : memref<3x32x32xf32, #tpu.memory_space<vmem>>, vector<1x32x32xf32>
    %120 = vector.shape_cast %119 : vector<1x32x32xf32> to vector<32x32xf32>
    %cst_116 = arith.constant dense<0.000000e+00> : vector<128x32xf32>
    %121 = tpu.matmul %118, %120, %cst_116 {dimension_numbers = #tpu.dot_dimension_numbers<[1], [0], [0], [1], [0, 0, 1, 1], [], []>} : vector<128x32xf32>, vector<32x32xf32>, vector<128x32xf32> -> vector<128x32xf32>
    %122 = arith.addf %116, %121 : vector<128x32xf32>
    %cst_117 = arith.constant dense<0.000000e+00> : vector<32xf32>
    %123 = vector.multi_reduction <add>, %122, %cst_117 [0] : vector<128x32xf32> to vector<32xf32>
    %124 = vector.shape_cast %123 : vector<32xf32> to vector<1x32xf32>
    %cst_118 = arith.constant 7.812500e-03 : f32
    %125 = vector.broadcast %cst_118 : f32 to vector<1x32xf32>
    %126 = arith.mulf %124, %125 : vector<1x32xf32>
    %127 = arith.mulf %122, %122 : vector<128x32xf32>
    %cst_119 = arith.constant dense<0.000000e+00> : vector<32xf32>
    %128 = vector.multi_reduction <add>, %127, %cst_119 [0] : vector<128x32xf32> to vector<32xf32>
    %129 = vector.shape_cast %128 : vector<32xf32> to vector<1x32xf32>
    %cst_120 = arith.constant 7.812500e-03 : f32
    %130 = vector.broadcast %cst_120 : f32 to vector<1x32xf32>
    %131 = arith.mulf %129, %130 : vector<1x32xf32>
    %132 = arith.mulf %126, %126 : vector<1x32xf32>
    %133 = arith.subf %131, %132 : vector<1x32xf32>
    %cst_121 = arith.constant 0.000000e+00 : f32
    %134 = vector.broadcast %cst_121 : f32 to vector<1x32xf32>
    %135 = arith.maximumf %133, %134 : vector<1x32xf32>
    %c0_122 = arith.constant 0 : index
    %c0_123 = arith.constant 0 : index
    %136 = vector.load %arg8[%c0_122, %c0_123] : memref<1x32xf32, #tpu.memory_space<vmem>>, vector<1x32xf32>
    %cst_124 = arith.constant 9.99999974E-6 : f32
    %137 = vector.broadcast %cst_124 : f32 to vector<1x32xf32>
    %138 = arith.addf %135, %137 : vector<1x32xf32>
    %139 = math.rsqrt %138 : vector<1x32xf32>
    %140 = arith.mulf %136, %139 : vector<1x32xf32>
    %c0_125 = arith.constant 0 : index
    %c0_126 = arith.constant 0 : index
    %141 = vector.load %arg9[%c0_125, %c0_126] : memref<1x32xf32, #tpu.memory_space<vmem>>, vector<1x32xf32>
    %142 = arith.mulf %126, %140 : vector<1x32xf32>
    %143 = arith.subf %141, %142 : vector<1x32xf32>
    %144 = vector.broadcast %140 : vector<1x32xf32> to vector<128x32xf32>
    %145 = arith.mulf %122, %144 : vector<128x32xf32>
    %146 = vector.broadcast %143 : vector<1x32xf32> to vector<128x32xf32>
    %147 = arith.addf %145, %146 : vector<128x32xf32>
    %cst_127 = arith.constant 0.000000e+00 : f32
    %148 = vector.broadcast %cst_127 : f32 to vector<128x32xf32>
    %149 = arith.maximumf %147, %148 : vector<128x32xf32>
    %150 = vector.shape_cast %149 : vector<128x32xf32> to vector<8x16x32xf32>
    %c0_128 = arith.constant 0 : index
    %c0_129 = arith.constant 0 : index
    %c0_130 = arith.constant 0 : index
    %151 = vector.load %arg16[%c0_128, %c0_129, %c0_130] : memref<8x64x32xf32, #tpu.memory_space<vmem>>, vector<8x16x32xf32>
    tpu.vector_store %arg16[%c0_128, %c0_129, %c0_130], %150 {strides = array<i32>} : memref<8x64x32xf32, #tpu.memory_space<vmem>>, vector<8x16x32xf32>,
    %c0_131 = arith.constant 0 : index
    %c0_132 = arith.constant 0 : index
    %c0_133 = arith.constant 0 : index
    %152 = tpu.strided_load %arg16[%c0_131, %c0_132, %c0_133] {strides = array<i32: 1, 2, 1>} : memref<8x64x32xf32, #tpu.memory_space<vmem>>, vector<8x8x32xf32>
    %c0_134 = arith.constant 0 : index
    %c1_135 = arith.constant 1 : index
    %c0_136 = arith.constant 0 : index
    %153 = tpu.strided_load %arg16[%c0_134, %c1_135, %c0_136] {strides = array<i32: 1, 2, 1>} : memref<8x64x32xf32, #tpu.memory_space<vmem>>, vector<8x8x32xf32>
    %154 = arith.maximumf %152, %153 : vector<8x8x32xf32>
    %cst_137 = arith.constant 0.000000e+00 : f32
    %155 = vector.broadcast %cst_137 : f32 to vector<8x1x32xf32>
    %c0_138 = arith.constant 0 : index
    %c0_139 = arith.constant 0 : index
    %c0_140 = arith.constant 0 : index
    %156 = vector.load %arg17[%c0_138, %c0_139, %c0_140] : memref<8x34x32xf32, #tpu.memory_space<vmem>>, vector<8x1x32xf32>
    tpu.vector_store %arg17[%c0_138, %c0_139, %c0_140], %155 {strides = array<i32>} : memref<8x34x32xf32, #tpu.memory_space<vmem>>, vector<8x1x32xf32>,
    %c0_141 = arith.constant 0 : index
    %c1_142 = arith.constant 1 : index
    %c0_143 = arith.constant 0 : index
    %157 = vector.load %arg17[%c0_141, %c1_142, %c0_143] : memref<8x34x32xf32, #tpu.memory_space<vmem>>, vector<8x8x32xf32>
    tpu.vector_store %arg17[%c0_141, %c1_142, %c0_143], %154 {strides = array<i32>} : memref<8x34x32xf32, #tpu.memory_space<vmem>>, vector<8x8x32xf32>,
    %c0_144 = arith.constant 0 : index
    %c9 = arith.constant 9 : index
    %c0_145 = arith.constant 0 : index
    %158 = vector.load %arg17[%c0_144, %c9, %c0_145] : memref<8x34x32xf32, #tpu.memory_space<vmem>>, vector<8x1x32xf32>
    tpu.vector_store %arg17[%c0_144, %c9, %c0_145], %155 {strides = array<i32>} : memref<8x34x32xf32, #tpu.memory_space<vmem>>, vector<8x1x32xf32>,
    %c0_146 = arith.constant 0 : index
    %c0_147 = arith.constant 0 : index
    %c0_148 = arith.constant 0 : index
    %159 = vector.load %arg17[%c0_146, %c0_147, %c0_148] : memref<8x34x32xf32, #tpu.memory_space<vmem>>, vector<8x8x32xf32>
    %160 = vector.shape_cast %159 : vector<8x8x32xf32> to vector<64x32xf32>
    %c0_149 = arith.constant 0 : index
    %c0_150 = arith.constant 0 : index
    %c0_151 = arith.constant 0 : index
    %161 = vector.load %arg10[%c0_149, %c0_150, %c0_151] : memref<3x32x32xf32, #tpu.memory_space<vmem>>, vector<1x32x32xf32>
    %162 = vector.shape_cast %161 : vector<1x32x32xf32> to vector<32x32xf32>
    %cst_152 = arith.constant dense<0.000000e+00> : vector<64x32xf32>
    %163 = tpu.matmul %160, %162, %cst_152 {dimension_numbers = #tpu.dot_dimension_numbers<[1], [0], [0], [1], [0, 0, 1, 1], [], []>} : vector<64x32xf32>, vector<32x32xf32>, vector<64x32xf32> -> vector<64x32xf32>
    %c0_153 = arith.constant 0 : index
    %c1_154 = arith.constant 1 : index
    %c0_155 = arith.constant 0 : index
    %164 = vector.load %arg17[%c0_153, %c1_154, %c0_155] : memref<8x34x32xf32, #tpu.memory_space<vmem>>, vector<8x8x32xf32>
    %165 = vector.shape_cast %164 : vector<8x8x32xf32> to vector<64x32xf32>
    %c1_156 = arith.constant 1 : index
    %c0_157 = arith.constant 0 : index
    %c0_158 = arith.constant 0 : index
    %166 = vector.load %arg10[%c1_156, %c0_157, %c0_158] : memref<3x32x32xf32, #tpu.memory_space<vmem>>, vector<1x32x32xf32>
    %167 = vector.shape_cast %166 : vector<1x32x32xf32> to vector<32x32xf32>
    %cst_159 = arith.constant dense<0.000000e+00> : vector<64x32xf32>
    %168 = tpu.matmul %165, %167, %cst_159 {dimension_numbers = #tpu.dot_dimension_numbers<[1], [0], [0], [1], [0, 0, 1, 1], [], []>} : vector<64x32xf32>, vector<32x32xf32>, vector<64x32xf32> -> vector<64x32xf32>
    %169 = arith.addf %163, %168 : vector<64x32xf32>
    %c0_160 = arith.constant 0 : index
    %c2_161 = arith.constant 2 : index
    %c0_162 = arith.constant 0 : index
    %170 = vector.load %arg17[%c0_160, %c2_161, %c0_162] : memref<8x34x32xf32, #tpu.memory_space<vmem>>, vector<8x8x32xf32>
    %171 = vector.shape_cast %170 : vector<8x8x32xf32> to vector<64x32xf32>
    %c2_163 = arith.constant 2 : index
    %c0_164 = arith.constant 0 : index
    %c0_165 = arith.constant 0 : index
    %172 = vector.load %arg10[%c2_163, %c0_164, %c0_165] : memref<3x32x32xf32, #tpu.memory_space<vmem>>, vector<1x32x32xf32>
    %173 = vector.shape_cast %172 : vector<1x32x32xf32> to vector<32x32xf32>
    %cst_166 = arith.constant dense<0.000000e+00> : vector<64x32xf32>
    %174 = tpu.matmul %171, %173, %cst_166 {dimension_numbers = #tpu.dot_dimension_numbers<[1], [0], [0], [1], [0, 0, 1, 1], [], []>} : vector<64x32xf32>, vector<32x32xf32>, vector<64x32xf32> -> vector<64x32xf32>
    %175 = arith.addf %169, %174 : vector<64x32xf32>
    %cst_167 = arith.constant dense<0.000000e+00> : vector<32xf32>
    %176 = vector.multi_reduction <add>, %175, %cst_167 [0] : vector<64x32xf32> to vector<32xf32>
    %177 = vector.shape_cast %176 : vector<32xf32> to vector<1x32xf32>
    %cst_168 = arith.constant 1.562500e-02 : f32
    %178 = vector.broadcast %cst_168 : f32 to vector<1x32xf32>
    %179 = arith.mulf %177, %178 : vector<1x32xf32>
    %180 = arith.mulf %175, %175 : vector<64x32xf32>
    %cst_169 = arith.constant dense<0.000000e+00> : vector<32xf32>
    %181 = vector.multi_reduction <add>, %180, %cst_169 [0] : vector<64x32xf32> to vector<32xf32>
    %182 = vector.shape_cast %181 : vector<32xf32> to vector<1x32xf32>
    %cst_170 = arith.constant 1.562500e-02 : f32
    %183 = vector.broadcast %cst_170 : f32 to vector<1x32xf32>
    %184 = arith.mulf %182, %183 : vector<1x32xf32>
    %185 = arith.mulf %179, %179 : vector<1x32xf32>
    %186 = arith.subf %184, %185 : vector<1x32xf32>
    %cst_171 = arith.constant 0.000000e+00 : f32
    %187 = vector.broadcast %cst_171 : f32 to vector<1x32xf32>
    %188 = arith.maximumf %186, %187 : vector<1x32xf32>
    %c0_172 = arith.constant 0 : index
    %c0_173 = arith.constant 0 : index
    %189 = vector.load %arg11[%c0_172, %c0_173] : memref<1x32xf32, #tpu.memory_space<vmem>>, vector<1x32xf32>
    %cst_174 = arith.constant 9.99999974E-6 : f32
    %190 = vector.broadcast %cst_174 : f32 to vector<1x32xf32>
    %191 = arith.addf %188, %190 : vector<1x32xf32>
    %192 = math.rsqrt %191 : vector<1x32xf32>
    %193 = arith.mulf %189, %192 : vector<1x32xf32>
    %c0_175 = arith.constant 0 : index
    %c0_176 = arith.constant 0 : index
    %194 = vector.load %arg12[%c0_175, %c0_176] : memref<1x32xf32, #tpu.memory_space<vmem>>, vector<1x32xf32>
    %195 = arith.mulf %179, %193 : vector<1x32xf32>
    %196 = arith.subf %194, %195 : vector<1x32xf32>
    %197 = vector.broadcast %193 : vector<1x32xf32> to vector<64x32xf32>
    %198 = arith.mulf %175, %197 : vector<64x32xf32>
    %199 = vector.broadcast %196 : vector<1x32xf32> to vector<64x32xf32>
    %200 = arith.addf %198, %199 : vector<64x32xf32>
    %cst_177 = arith.constant 0.000000e+00 : f32
    %201 = vector.broadcast %cst_177 : f32 to vector<64x32xf32>
    %202 = arith.maximumf %200, %201 : vector<64x32xf32>
    %203 = vector.shape_cast %202 : vector<64x32xf32> to vector<8x8x32xf32>
    %c0_178 = arith.constant 0 : index
    %c0_179 = arith.constant 0 : index
    %c0_180 = arith.constant 0 : index
    %204 = vector.load %arg16[%c0_178, %c0_179, %c0_180] : memref<8x64x32xf32, #tpu.memory_space<vmem>>, vector<8x8x32xf32>
    tpu.vector_store %arg16[%c0_178, %c0_179, %c0_180], %203 {strides = array<i32>} : memref<8x64x32xf32, #tpu.memory_space<vmem>>, vector<8x8x32xf32>,
    %c0_181 = arith.constant 0 : index
    %c0_182 = arith.constant 0 : index
    %c0_183 = arith.constant 0 : index
    %205 = tpu.strided_load %arg16[%c0_181, %c0_182, %c0_183] {strides = array<i32: 1, 2, 1>} : memref<8x64x32xf32, #tpu.memory_space<vmem>>, vector<8x4x32xf32>
    %c0_184 = arith.constant 0 : index
    %c1_185 = arith.constant 1 : index
    %c0_186 = arith.constant 0 : index
    %206 = tpu.strided_load %arg16[%c0_184, %c1_185, %c0_186] {strides = array<i32: 1, 2, 1>} : memref<8x64x32xf32, #tpu.memory_space<vmem>>, vector<8x4x32xf32>
    %207 = arith.maximumf %205, %206 : vector<8x4x32xf32>
    %208 = vector.extract_strided_slice %207 {offsets = [0, 0, 0], sizes = [8, 1, 32], strides = [1, 1, 1]} : vector<8x4x32xf32> to vector<8x1x32xf32>
    %209 = vector.shape_cast %208 : vector<8x1x32xf32> to vector<8x32xf32>
    %c0_187 = arith.constant 0 : index
    %c0_188 = arith.constant 0 : index
    %c0_189 = arith.constant 0 : index
    %210 = vector.load %arg13[%c0_187, %c0_188, %c0_189] : memref<4x32x7xf32, #tpu.memory_space<vmem>>, vector<1x32x7xf32>
    %211 = vector.shape_cast %210 : vector<1x32x7xf32> to vector<32x7xf32>
    %cst_190 = arith.constant dense<0.000000e+00> : vector<8x7xf32>
    %212 = tpu.matmul %209, %211, %cst_190 {dimension_numbers = #tpu.dot_dimension_numbers<[1], [0], [0], [1], [0, 0, 1, 1], [], []>} : vector<8x32xf32>, vector<32x7xf32>, vector<8x7xf32> -> vector<8x7xf32>
    %213 = vector.extract_strided_slice %207 {offsets = [0, 1, 0], sizes = [8, 1, 32], strides = [1, 1, 1]} : vector<8x4x32xf32> to vector<8x1x32xf32>
    %214 = vector.shape_cast %213 : vector<8x1x32xf32> to vector<8x32xf32>
    %c1_191 = arith.constant 1 : index
    %c0_192 = arith.constant 0 : index
    %c0_193 = arith.constant 0 : index
    %215 = vector.load %arg13[%c1_191, %c0_192, %c0_193] : memref<4x32x7xf32, #tpu.memory_space<vmem>>, vector<1x32x7xf32>
    %216 = vector.shape_cast %215 : vector<1x32x7xf32> to vector<32x7xf32>
    %cst_194 = arith.constant dense<0.000000e+00> : vector<8x7xf32>
    %217 = tpu.matmul %214, %216, %cst_194 {dimension_numbers = #tpu.dot_dimension_numbers<[1], [0], [0], [1], [0, 0, 1, 1], [], []>} : vector<8x32xf32>, vector<32x7xf32>, vector<8x7xf32> -> vector<8x7xf32>
    %218 = arith.addf %212, %217 : vector<8x7xf32>
    %219 = vector.extract_strided_slice %207 {offsets = [0, 2, 0], sizes = [8, 1, 32], strides = [1, 1, 1]} : vector<8x4x32xf32> to vector<8x1x32xf32>
    %220 = vector.shape_cast %219 : vector<8x1x32xf32> to vector<8x32xf32>
    %c2_195 = arith.constant 2 : index
    %c0_196 = arith.constant 0 : index
    %c0_197 = arith.constant 0 : index
    %221 = vector.load %arg13[%c2_195, %c0_196, %c0_197] : memref<4x32x7xf32, #tpu.memory_space<vmem>>, vector<1x32x7xf32>
    %222 = vector.shape_cast %221 : vector<1x32x7xf32> to vector<32x7xf32>
    %cst_198 = arith.constant dense<0.000000e+00> : vector<8x7xf32>
    %223 = tpu.matmul %220, %222, %cst_198 {dimension_numbers = #tpu.dot_dimension_numbers<[1], [0], [0], [1], [0, 0, 1, 1], [], []>} : vector<8x32xf32>, vector<32x7xf32>, vector<8x7xf32> -> vector<8x7xf32>
    %224 = arith.addf %218, %223 : vector<8x7xf32>
    %225 = vector.extract_strided_slice %207 {offsets = [0, 3, 0], sizes = [8, 1, 32], strides = [1, 1, 1]} : vector<8x4x32xf32> to vector<8x1x32xf32>
    %226 = vector.shape_cast %225 : vector<8x1x32xf32> to vector<8x32xf32>
    %c3 = arith.constant 3 : index
    %c0_199 = arith.constant 0 : index
    %c0_200 = arith.constant 0 : index
    %227 = vector.load %arg13[%c3, %c0_199, %c0_200] : memref<4x32x7xf32, #tpu.memory_space<vmem>>, vector<1x32x7xf32>
    %228 = vector.shape_cast %227 : vector<1x32x7xf32> to vector<32x7xf32>
    %cst_201 = arith.constant dense<0.000000e+00> : vector<8x7xf32>
    %229 = tpu.matmul %226, %228, %cst_201 {dimension_numbers = #tpu.dot_dimension_numbers<[1], [0], [0], [1], [0, 0, 1, 1], [], []>} : vector<8x32xf32>, vector<32x7xf32>, vector<8x7xf32> -> vector<8x7xf32>
    %230 = arith.addf %224, %229 : vector<8x7xf32>
    %c0_202 = arith.constant 0 : index
    %c0_203 = arith.constant 0 : index
    %231 = vector.load %arg14[%c0_202, %c0_203] : memref<1x7xf32, #tpu.memory_space<vmem>>, vector<1x7xf32>
    %232 = vector.broadcast %231 : vector<1x7xf32> to vector<8x7xf32>
    %233 = arith.addf %230, %232 : vector<8x7xf32>
    %c0_204 = arith.constant 0 : index
    %c0_205 = arith.constant 0 : index
    %234 = vector.load %arg15[%c0_204, %c0_205] : memref<8x7xf32, #tpu.memory_space<vmem>>, vector<8x7xf32>
    tpu.vector_store %arg15[%c0_204, %c0_205], %233 {strides = array<i32>} : memref<8x7xf32, #tpu.memory_space<vmem>>, vector<8x7xf32>,
    return
  }
}

</mosaic_0001>

<bundles_post_ra>
// kernel: scut_forward.1
= control target key start
LH: loop header
LB: loop body
LE: loop exit
PB: predicated region body
PF: predicated region fallthrough
CT: control target
= control target key end

     0   :  { %vm375_vm0 = vcmask 1041408   ;;  %vm182_vm1 = vcmask 15360   ;;  %s8557_s0 = inlined_call_operand.vmem [shape: f32[8,66,2], index: 0, kind: input, shape index: {}]   ;;  %s8558_s1 = inlined_call_operand.vmem [shape: f32[3,2,32], index: 1, kind: input, shape index: {}]   ;;  %s8559_s2 = inlined_call_operand.vmem [shape: f32[1,32], index: 2, kind: input, shape index: {}]   ;;  %s8560_s3 = inlined_call_operand.vmem [shape: f32[1,32], index: 3, kind: input, shape index: {}]   ;;  %s8561_s4 = inlined_call_operand.vmem [shape: f32[3,32,32], index: 4, kind: input, shape index: {}]   ;;  %s8562_s5 = inlined_call_operand.vmem [shape: f32[1,32], index: 5, kind: input, shape index: {}]   ;;  %s8563_s6 = inlined_call_operand.vmem [shape: f32[1,32], index: 6, kind: input, shape index: {}]   ;;  %s8564_s7 = inlined_call_operand.vmem [shape: f32[3,32,32], index: 7, kind: input, shape index: {}]   ;;  %s8565_s8 = inlined_call_operand.vmem [shape: f32[1,32], index: 8, kind: input, shape index: {}]   ;;  %s8566_s9 = inlined_call_operand.vmem [shape: f32[1,32], index: 9, kind: input, shape index: {}]   ;;  %s8567_s10 = inlined_call_operand.vmem [shape: f32[3,32,32], index: 10, kind: input, shape index: {}]   ;;  %s8568_s11 = inlined_call_operand.vmem [shape: f32[1,32], index: 11, kind: input, shape index: {}]   ;;  %s8569_s12 = inlined_call_operand.vmem [shape: f32[1,32], index: 12, kind: input, shape index: {}]   ;;  %s8570_s13 = inlined_call_operand.vmem [shape: f32[4,32,7], index: 13, kind: input, shape index: {}]   ;;  %s8571_s14 = inlined_call_operand.vmem [shape: f32[1,7], index: 14, kind: input, shape index: {}]   ;;  %s8572_s15 = inlined_call_operand.hbm [shape: f32[8,7], index: 15, kind: output, shape index: {}]  }
   0x1   :  { %v4745_v0 = vld [vmem:[%s8558_s1 + $0x2] sm:$0x3]  ;;  %v175_v1 = vld [vmem:[%s8557_s0 + $0x211] sm:$0xff]  ;;  %v176_v2 = vld [vmem:[%s8557_s0 + $0x219] sm:$0xff] }
   0x2   :  { %5150 = vmatpush.msk.msra.mxu1 %vm375_vm0, %v4745_v0  ;;  %5151 = vmatpush.msk.msra.mxu2 %vm375_vm0, %v4745_v0  ;;  %v4876_v3 = vld [vmem:[%s8558_s1 + $0x4] sm:$0x3]  ;;  %v115_v4 = vld [vmem:[%s8558_s1] sm:$0x3] }
   0x3   :  { %4806 = vmatmul.msk.f32.vlgmr.msra.gmra.mxu1 %vm182_vm1, %v175_v1  ;;  %4807 = vmatmul.msk.f32.vlgmr.msra.gmra.mxu2 %vm182_vm1, %v176_v2  ;;  %v116_v5 = vld [vmem:[%s8557_s0 + $0x1] sm:$0xff] }
   0x4   :  { %4877 = vmatpush.msk.msrb.mxu2 %vm375_vm0, %v4876_v3  ;;  %4811 = vmatpush.msk.msrb.mxu1 %vm375_vm0, %v115_v4 }
   0x5   :  { %4746 = vmatpush.msk.msra.mxu0 %vm375_vm0, %v4745_v0  ;;  %5152 = vmatpush.msk.msra.mxu3 %vm375_vm0, %v4745_v0 }
   0x6   :  { %4747 = vmatmul.msk.f32.vlgmr.msra.gmra.mxu0 %vm182_vm1, %v116_v5 }
   0x7   :  { %20 = vsyncpa [#allocation5], 0  ;;  %v177_v6 = vld [vmem:[%s8557_s0 + $0x221] sm:$0xff]  ;;  %v117_v8 = vld [vmem:[%s8557_s0 + $0x9] sm:$0xff]  ;;  %vm1526_vm2 = vcmask 261120   ;;  %vm2299_vm6 = vcmask 253952  }
   0x8   :  { %v51_v7 = vld [vmem:[%s8557_s0] sm:$0xff]  ;;  %v52_v9 = vld [vmem:[%s8557_s0 + $0x8] sm:$0xff]  ;;  %v118_v11 = vld [vmem:[%s8557_s0 + $0x11] sm:$0xff]  ;;  %vm4560_vm0 = vcmask 1041409   ;;  %s5191_s28 = smov [#allocation4]  }
   0x9   :  { %v992_v10 = vld [vmem:[%s8557_s0 + $0x2] sm:$0xff]  ;;  %v53_v12 = vld [vmem:[%s8557_s0 + $0x10] sm:$0xff]  ;;  %v119_v14 = vld [vmem:[%s8557_s0 + $0x19] sm:$0xff]  ;;  %s4734_s29 = sshll.u32 %s5191_s28, 4  ;;  %s4735_s29 = int_to_ptr.vmem [resolvable:$true] %s4734_s29 }
   0xa   :  { %v993_v13 = vld [vmem:[%s8557_s0 + $0xa] sm:$0xff]  ;;  %v54_v15 = vld [vmem:[%s8557_s0 + $0x18] sm:$0xff]  ;;  %v120_v17 = vld [vmem:[%s8557_s0 + $0x21] sm:$0xff] }
   0xb   :  { %4808 = vmatmul.msk.f32.gmra.mxu2 %vm182_vm1, %v177_v6  ;;  %4812 = vmatmul.msk.f32.vlgmr.msrb.gmra.mxu1 %vm182_vm1, %v51_v7  ;;  %v994_v16 = vld [vmem:[%s8557_s0 + $0x12] sm:$0xff]  ;;  %v55_v18 = vld [vmem:[%s8557_s0 + $0x20] sm:$0xff]  ;;  %v121_v20 = vld [vmem:[%s8557_s0 + $0x29] sm:$0xff] }
   0xc   :  { %v995_v19 = vld [vmem:[%s8557_s0 + $0x1a] sm:$0xff]  ;;  %v56_v21 = vld [vmem:[%s8557_s0 + $0x28] sm:$0xff]  ;;  %v122_v23 = vld [vmem:[%s8557_s0 + $0x31] sm:$0xff] }
   0xd   :  { %v996_v22 = vld [vmem:[%s8557_s0 + $0x22] sm:$0xff]  ;;  %v57_v24 = vld [vmem:[%s8557_s0 + $0x30] sm:$0xff]  ;;  %v123_v26 = vld [vmem:[%s8557_s0 + $0x39] sm:$0xff] }
   0xe   :  { %4748 = vmatmul.msk.f32.gmra.mxu0 %vm182_vm1, %v117_v8  ;;  %v997_v25 = vld [vmem:[%s8557_s0 + $0x2a] sm:$0xff]  ;;  %v58_v27 = vld [vmem:[%s8557_s0 + $0x38] sm:$0xff]  ;;  %v127_v38 = vld [vmem:[%s8557_s0 + $0x61] sm:$0xff] }
   0xf   :  { %v998_v28 = vld [vmem:[%s8557_s0 + $0x32] sm:$0xff]  ;;  %v124_v29 = vld [vmem:[%s8557_s0 + $0x49] sm:$0xff]  ;;  %v999_v31 = vld [vmem:[%s8557_s0 + $0x3a] sm:$0xff] }
  0x10   :  { %v59_v30 = vld [vmem:[%s8557_s0 + $0x48] sm:$0xff]  ;;  %v125_v32 = vld [vmem:[%s8557_s0 + $0x51] sm:$0xff]  ;;  %v126_v35 = vld [vmem:[%s8557_s0 + $0x59] sm:$0xff] }
  0x11   :  { %v60_v33 = vld [vmem:[%s8557_s0 + $0x50] sm:$0xff]  ;;  %v61_v36 = vld [vmem:[%s8557_s0 + $0x58] sm:$0xff]  ;;  %v62_v39 = vld [vmem:[%s8557_s0 + $0x60] sm:$0xff] }
  0x12   :  { %v1000_v34 = vld [vmem:[%s8557_s0 + $0x4a] sm:$0xff]  ;;  %v1001_v37 = vld [vmem:[%s8557_s0 + $0x52] sm:$0xff]  ;;  %v1002_v40 = vld [vmem:[%s8557_s0 + $0x5a] sm:$0xff] }
  0x13   :  { %4813 = vmatmul.msk.f32.gmra.mxu1 %vm182_vm1, %v52_v9  ;;  %4878 = vmatmul.msk.f32.vlgmr.msrb.gmra.mxu2 %vm182_vm1, %v992_v10  ;;  %v128_v41 = vld [vmem:[%s8557_s0 + $0x69] sm:$0xff]  ;;  %v129_v44 = vld [vmem:[%s8557_s0 + $0x71] sm:$0xff]  ;;  %v130_v47 = vld [vmem:[%s8557_s0 + $0x79] sm:$0xff] }
  0x14   :  { %v63_v42 = vld [vmem:[%s8557_s0 + $0x68] sm:$0xff]  ;;  %v64_v45 = vld [vmem:[%s8557_s0 + $0x70] sm:$0xff]  ;;  %v65_v48 = vld [vmem:[%s8557_s0 + $0x78] sm:$0xff] }
  0x15   :  { %v1003_v43 = vld [vmem:[%s8557_s0 + $0x62] sm:$0xff]  ;;  %v1004_v46 = vld [vmem:[%s8557_s0 + $0x6a] sm:$0xff]  ;;  %v1005_v49 = vld [vmem:[%s8557_s0 + $0x72] sm:$0xff] }
  0x16   :  { %4749 = vmatmul.msk.f32.gmra.mxu0 %vm182_vm1, %v118_v11  ;;  %v131_v50 = vld [vmem:[%s8557_s0 + $0x81] sm:$0xff]  ;;  %v132_v55 = vld [vmem:[%s8557_s0 + $0x91] sm:$0xff]  ;;  %v133_v61 = vld [vmem:[%s8557_s0 + $0x99] sm:$0xff] }
  0x17   :  { %v66_v52 = vld [vmem:[%s8557_s0 + $0x80] sm:$0xff]  ;;  %v67_v58 = vld [vmem:[%s8557_s0 + $0x90] sm:$0xff]  ;;  %v68_v0 = vld [vmem:[%s8557_s0 + $0x98] sm:$0xff] }
  0x18   :  { %v1006_v53 = vld [vmem:[%s8557_s0 + $0x7a] sm:$0xff]  ;;  %v1007_v59 = vld [vmem:[%s8557_s0 + $0x82] sm:$0xff]  ;;  %v1008_v1 = vld [vmem:[%s8557_s0 + $0x92] sm:$0xff] }
  0x19   :  { %v134_v4 = vld [vmem:[%s8557_s0 + $0xa1] sm:$0xff] }
  0x1a   :  { %v69_v8 = vld [vmem:[%s8557_s0 + $0xa0] sm:$0xff] }
  0x1b   :  { %4814 = vmatmul.msk.f32.gmra.mxu1 %vm182_vm1, %v53_v12  ;;  %4879 = vmatmul.msk.f32.gmra.mxu2 %vm182_vm1, %v993_v13  ;;  %v1009_v9 = vld [vmem:[%s8557_s0 + $0x9a] sm:$0xff]  ;;  %v135_v12 = vld [vmem:[%s8557_s0 + $0xa9] sm:$0xff] }
  0x1e   :  { %4750 = vmatmul.msk.f32.gmra.mxu0 %vm182_vm1, %v119_v14 }
  0x23   :  { %4815 = vmatmul.msk.f32.gmra.mxu1 %vm182_vm1, %v54_v15  ;;  %4880 = vmatmul.msk.f32.gmra.mxu2 %vm182_vm1, %v994_v16  ;;  %v70_v16 = vld [vmem:[%s8557_s0 + $0xa8] sm:$0xff] }
  0x26   :  { %4751 = vmatmul.msk.f32.gmra.mxu0 %vm182_vm1, %v120_v17  ;;  %v1010_v17 = vld [vmem:[%s8557_s0 + $0xa2] sm:$0xff] }
  0x2b   :  { %4816 = vmatmul.msk.f32.gmra.mxu1 %vm182_vm1, %v55_v18  ;;  %4881 = vmatmul.msk.f32.gmra.mxu2 %vm182_vm1, %v995_v19 }
  0x2e   :  { %4752 = vmatmul.msk.f32.gmra.mxu0 %vm182_vm1, %v121_v20  ;;  %v136_v20 = vld [vmem:[%s8557_s0 + $0xb1] sm:$0xff] }
  0x33   :  { %4817 = vmatmul.msk.f32.gmra.mxu1 %vm182_vm1, %v56_v21  ;;  %4882 = vmatmul.msk.f32.gmra.mxu2 %vm182_vm1, %v996_v22 }
  0x36   :  { %4753 = vmatmul.msk.f32.gmra.mxu0 %vm182_vm1, %v122_v23 }
  0x3b   :  { %4818 = vmatmul.msk.f32.gmra.mxu1 %vm182_vm1, %v57_v24  ;;  %4883 = vmatmul.msk.f32.gmra.mxu2 %vm182_vm1, %v997_v25  ;;  %v71_v24 = vld [vmem:[%s8557_s0 + $0xb0] sm:$0xff] }
  0x3c   :  { %v1011_v25 = vld [vmem:[%s8557_s0 + $0xaa] sm:$0xff] }
  0x3e   :  { %4754 = vmatmul.msk.f32.gmra.mxu0 %vm182_vm1, %v123_v26 }
  0x43   :  { %4819 = vmatmul.msk.f32.gmra.mxu1 %vm182_vm1, %v58_v27  ;;  %4884 = vmatmul.msk.f32.gmra.mxu2 %vm182_vm1, %v998_v28  ;;  %v137_v28 = vld [vmem:[%s8557_s0 + $0xb9] sm:$0xff] }
  0x46   :  { %4755 = vmatmul.msk.f32.gmra.mxu0 %vm182_vm1, %v124_v29 }
  0x4b   :  { %4820 = vmatmul.msk.f32.gmra.mxu1 %vm182_vm1, %v59_v30  ;;  %4885 = vmatmul.msk.f32.gmra.mxu2 %vm182_vm1, %v999_v31 }
  0x4e   :  { %4756 = vmatmul.msk.f32.gmra.mxu0 %vm182_vm1, %v125_v32  ;;  %v72_v32 = vld [vmem:[%s8557_s0 + $0xb8] sm:$0xff] }
  0x53   :  { %4821 = vmatmul.msk.f32.gmra.mxu1 %vm182_vm1, %v60_v33  ;;  %4886 = vmatmul.msk.f32.gmra.mxu2 %vm182_vm1, %v1000_v34  ;;  %v1012_v33 = vld [vmem:[%s8557_s0 + $0xb2] sm:$0xff] }
  0x56   :  { %4757 = vmatmul.msk.f32.gmra.mxu0 %vm182_vm1, %v126_v35 }
  0x5b   :  { %4822 = vmatmul.msk.f32.gmra.mxu1 %vm182_vm1, %v61_v36  ;;  %4887 = vmatmul.msk.f32.gmra.mxu2 %vm182_vm1, %v1001_v37  ;;  %v138_v36 = vld [vmem:[%s8557_s0 + $0xc1] sm:$0xff] }
  0x5e   :  { %4758 = vmatmul.msk.f32.gmra.mxu0 %vm182_vm1, %v127_v38 }
  0x63   :  { %4823 = vmatmul.msk.f32.gmra.mxu1 %vm182_vm1, %v62_v39  ;;  %4888 = vmatmul.msk.f32.gmra.mxu2 %vm182_vm1, %v1002_v40  ;;  %v73_v40 = vld [vmem:[%s8557_s0 + $0xc0] sm:$0xff] }
  0x66   :  { %4759 = vmatmul.msk.f32.gmra.mxu0 %vm182_vm1, %v128_v41  ;;  %v1013_v41 = vld [vmem:[%s8557_s0 + $0xba] sm:$0xff] }
  0x6b   :  { %4824 = vmatmul.msk.f32.gmra.mxu1 %vm182_vm1, %v63_v42  ;;  %4889 = vmatmul.msk.f32.gmra.mxu2 %vm182_vm1, %v1003_v43 }
  0x6e   :  { %4760 = vmatmul.msk.f32.gmra.mxu0 %vm182_vm1, %v129_v44  ;;  %v139_v44 = vld [vmem:[%s8557_s0 + $0xc9] sm:$0xff] }
  0x73   :  { %4825 = vmatmul.msk.f32.gmra.mxu1 %vm182_vm1, %v64_v45  ;;  %4890 = vmatmul.msk.f32.gmra.mxu2 %vm182_vm1, %v1004_v46 }
  0x76   :  { %4761 = vmatmul.msk.f32.gmra.mxu0 %vm182_vm1, %v130_v47 }
  0x7b   :  { %4826 = vmatmul.msk.f32.gmra.mxu1 %vm182_vm1, %v65_v48  ;;  %4891 = vmatmul.msk.f32.gmra.mxu2 %vm182_vm1, %v1005_v49  ;;  %v74_v48 = vld [vmem:[%s8557_s0 + $0xc8] sm:$0xff] }
  0x7c   :  { %v1014_v49 = vld [vmem:[%s8557_s0 + $0xc2] sm:$0xff] }
  0x7e   :  { %4762 = vmatmul.msk.f32.gmra.mxu0 %vm182_vm1, %v131_v50 }
  0x80   :  { %v5473_v51 = vpop.f32.mrf.mxu1 }
  0x81   :  { %8609 = vst [vmem:[#allocation7_spill] sm:$0xff] %v5473_v51  ;;  %v178_v51 = vld [vmem:[%s8557_s0 + $0x229] sm:$0xff] }
  0x82   :  { %4809 = vmatmul.msk.f32.vlgmr.msra.gmra.mxu3 %vm182_vm1, %v178_v51  ;;  %v179_v51 = vld [vmem:[%s8557_s0 + $0x231] sm:$0xff] }
  0x83   :  { %4827 = vmatmul.msk.f32.gmra.mxu1 %vm182_vm1, %v66_v52  ;;  %4892 = vmatmul.msk.f32.gmra.mxu2 %vm182_vm1, %v1006_v53  ;;  %v396_v54 = vpop.f32.mrf.mxu0  ;;  %v140_v53 = vld [vmem:[%s8557_s0 + $0xd9] sm:$0xff] }
  0x86   :  { %v5486_v56 = vpop.f32.mrf.mxu2  ;;  %4763 = vmatmul.msk.f32.gmra.mxu0 %vm182_vm1, %v132_v55 }
  0x87   :  { %8610 = vst [vmem:[#allocation8_spill] sm:$0xff] %v5486_v56  ;;  %v1050_v56 = vld [vmem:[%s8557_s0 + $0x20a] sm:$0xff] }
  0x88   :  { %v800_v57 = vpop.f32.mrf.mxu1 }
  0x89   :  { %v801_v2 = vadd.f32 %v800_v57, %v396_v54 }
  0x8a   :  { %4810 = vmatmul.msk.f32.gmra.mxu3 %vm182_vm1, %v179_v51 }
  0x8b   :  { %4828 = vmatmul.msk.f32.gmra.mxu1 %vm182_vm1, %v67_v58  ;;  %4893 = vmatmul.msk.f32.gmra.mxu2 %vm182_vm1, %v1007_v59  ;;  %v399_v60 = vpop.f32.mrf.mxu0  ;;  %v75_v58 = vld [vmem:[%s8557_s0 + $0xd8] sm:$0xff]  ;;  %v1015_v59 = vld [vmem:[%s8557_s0 + $0xca] sm:$0xff] }
  0x8e   :  { %v5500_v62 = vpop.f32.mrf.mxu2  ;;  %4764 = vmatmul.msk.f32.gmra.mxu0 %vm182_vm1, %v133_v61 }
  0x8f   :  { %8611 = vst [vmem:[#allocation9_spill] sm:$0xff] %v5500_v62 }
  0x90   :  { %v803_v63 = vpop.f32.mrf.mxu1 }
  0x91   :  { %v804_v10 = vadd.f32 %v803_v63, %v399_v60  ;;  %v141_v63 = vld [vmem:[%s8557_s0 + $0xe1] sm:$0xff] }
  0x93   :  { %4829 = vmatmul.msk.f32.gmra.mxu1 %vm182_vm1, %v68_v0  ;;  %4894 = vmatmul.msk.f32.gmra.mxu2 %vm182_vm1, %v1008_v1  ;;  %v402_v3 = vpop.f32.mrf.mxu0 }
  0x96   :  { %v1270_v5 = vpop.f32.mrf.mxu2  ;;  %4765 = vmatmul.msk.f32.gmra.mxu0 %vm182_vm1, %v134_v4  ;;  %v1016_v4 = vld [vmem:[%s8557_s0 + $0xda] sm:$0xff] }
  0x97   :  { %v5515_v6 = vadd.f32 %v1270_v5, %v801_v2 }
  0x98   :  { %v806_v7 = vpop.f32.mrf.mxu1 }
  0x99   :  { %8612 = vst [vmem:[#allocation10_spill] sm:$0xff] %v5515_v6  ;;  %v807_v18 = vadd.f32 %v806_v7, %v402_v3  ;;  %v76_v3 = vld [vmem:[%s8557_s0 + $0xe0] sm:$0xff] }
  0x9b   :  { %4830 = vmatmul.msk.f32.gmra.mxu1 %vm182_vm1, %v69_v8  ;;  %4895 = vmatmul.msk.f32.gmra.mxu2 %vm182_vm1, %v1009_v9  ;;  %v405_v11 = vpop.f32.mrf.mxu0  ;;  %v142_v8 = vld [vmem:[%s8557_s0 + $0xe9] sm:$0xff] }
  0x9e   :  { %v1273_v13 = vpop.f32.mrf.mxu2  ;;  %4766 = vmatmul.msk.f32.gmra.mxu0 %vm182_vm1, %v135_v12  ;;  %v77_v12 = vld [vmem:[%s8557_s0 + $0xe8] sm:$0xff] }
  0x9f   :  { %v5529_v14 = vadd.f32 %v1273_v13, %v804_v10  ;;  %v1017_v13 = vld [vmem:[%s8557_s0 + $0xe2] sm:$0xff] }
  0xa0   :  { %v809_v15 = vpop.f32.mrf.mxu1 }
  0xa1   :  { %8613 = vst [vmem:[#allocation11_spill] sm:$0xff] %v5529_v14  ;;  %v810_v26 = vadd.f32 %v809_v15, %v405_v11 }
  0xa3   :  { %4831 = vmatmul.msk.f32.gmra.mxu1 %vm182_vm1, %v70_v16  ;;  %4896 = vmatmul.msk.f32.gmra.mxu2 %vm182_vm1, %v1010_v17  ;;  %v408_v19 = vpop.f32.mrf.mxu0  ;;  %v143_v17 = vld [vmem:[%s8557_s0 + $0xf1] sm:$0xff] }
  0xa6   :  { %v1276_v21 = vpop.f32.mrf.mxu2  ;;  %4767 = vmatmul.msk.f32.gmra.mxu0 %vm182_vm1, %v136_v20 }
  0xa7   :  { %v5543_v22 = vadd.f32 %v1276_v21, %v807_v18  ;;  %v78_v21 = vld [vmem:[%s8557_s0 + $0xf0] sm:$0xff] }
  0xa8   :  { %v812_v23 = vpop.f32.mrf.mxu1 }
  0xa9   :  { %8614 = vst [vmem:[#allocation12_spill] sm:$0xff] %v5543_v22  ;;  %v813_v34 = vadd.f32 %v812_v23, %v408_v19  ;;  %v1018_v23 = vld [vmem:[%s8557_s0 + $0xea] sm:$0xff] }
  0xab   :  { %4832 = vmatmul.msk.f32.gmra.mxu1 %vm182_vm1, %v71_v24  ;;  %4897 = vmatmul.msk.f32.gmra.mxu2 %vm182_vm1, %v1011_v25  ;;  %v411_v27 = vpop.f32.mrf.mxu0 }
  0xae   :  { %v1279_v29 = vpop.f32.mrf.mxu2  ;;  %4768 = vmatmul.msk.f32.gmra.mxu0 %vm182_vm1, %v137_v28 }
  0xaf   :  { %v5557_v30 = vadd.f32 %v1279_v29, %v810_v26  ;;  %v144_v26 = vld [vmem:[%s8557_s0 + $0xf9] sm:$0xff] }
  0xb0   :  { %v815_v31 = vpop.f32.mrf.mxu1 }
  0xb1   :  { %8615 = vst [vmem:[#allocation13_spill] sm:$0xff] %v5557_v30  ;;  %v816_v42 = vadd.f32 %v815_v31, %v411_v27  ;;  %v79_v31 = vld [vmem:[%s8557_s0 + $0xf8] sm:$0xff] }
  0xb3   :  { %4833 = vmatmul.msk.f32.gmra.mxu1 %vm182_vm1, %v72_v32  ;;  %4898 = vmatmul.msk.f32.gmra.mxu2 %vm182_vm1, %v1012_v33  ;;  %v414_v35 = vpop.f32.mrf.mxu0  ;;  %v1019_v32 = vld [vmem:[%s8557_s0 + $0xf2] sm:$0xff] }
  0xb6   :  { %v1282_v37 = vpop.f32.mrf.mxu2  ;;  %4769 = vmatmul.msk.f32.gmra.mxu0 %vm182_vm1, %v138_v36 }
  0xb7   :  { %v5571_v38 = vadd.f32 %v1282_v37, %v813_v34 }
  0xb8   :  { %v818_v39 = vpop.f32.mrf.mxu1 }
  0xb9   :  { %8616 = vst [vmem:[#allocation14_spill] sm:$0xff] %v5571_v38  ;;  %v819_v50 = vadd.f32 %v818_v39, %v414_v35  ;;  %v145_v35 = vld [vmem:[%s8557_s0 + $0x101] sm:$0xff] }
  0xbb   :  { %4834 = vmatmul.msk.f32.gmra.mxu1 %vm182_vm1, %v73_v40  ;;  %4899 = vmatmul.msk.f32.gmra.mxu2 %vm182_vm1, %v1013_v41  ;;  %v417_v43 = vpop.f32.mrf.mxu0  ;;  %v80_v40 = vld [vmem:[%s8557_s0 + $0x100] sm:$0xff] }
  0xbc   :  { %v1020_v41 = vld [vmem:[%s8557_s0 + $0xfa] sm:$0xff] }
  0xbe   :  { %v1285_v45 = vpop.f32.mrf.mxu2  ;;  %4770 = vmatmul.msk.f32.gmra.mxu0 %vm182_vm1, %v139_v44  ;;  %v146_v44 = vld [vmem:[%s8557_s0 + $0x109] sm:$0xff] }
  0xbf   :  { %v5585_v46 = vadd.f32 %v1285_v45, %v816_v42 }
  0xc0   :  { %v821_v47 = vpop.f32.mrf.mxu1 }
  0xc1   :  { %v822_v60 = vadd.f32 %v821_v47, %v417_v43 }
  0xc3   :  { %4835 = vmatmul.msk.f32.gmra.mxu1 %vm182_vm1, %v74_v48  ;;  %4900 = vmatmul.msk.f32.gmra.mxu2 %vm182_vm1, %v1014_v49  ;;  %v420_v52 = vpop.f32.mrf.mxu0  ;;  %v81_v49 = vld [vmem:[%s8557_s0 + $0x108] sm:$0xff] }
  0xc6   :  { %v1288_v54 = vpop.f32.mrf.mxu2  ;;  %4771 = vmatmul.msk.f32.gmra.mxu0 %vm182_vm1, %v140_v53 }
  0xc7   :  { %v5599_v55 = vadd.f32 %v1288_v54, %v819_v50  ;;  %v1021_v50 = vld [vmem:[%s8557_s0 + $0x102] sm:$0xff]  ;;  %v147_v54 = vld [vmem:[%s8557_s0 + $0x111] sm:$0xff] }
  0xc8   :  { %v824_v57 = vpop.f32.mrf.mxu1 }
  0xc9   :  { %8617 = vst [vmem:[#allocation15_spill] sm:$0xff] %v5599_v55  ;;  %v825_v5 = vadd.f32 %v824_v57, %v420_v52 }
  0xcb   :  { %4836 = vmatmul.msk.f32.gmra.mxu1 %vm182_vm1, %v75_v58  ;;  %4901 = vmatmul.msk.f32.gmra.mxu2 %vm182_vm1, %v1015_v59  ;;  %v423_v61 = vpop.f32.mrf.mxu0 }
  0xce   :  { %v1291_v0 = vpop.f32.mrf.mxu2  ;;  %4772 = vmatmul.msk.f32.gmra.mxu0 %vm182_vm1, %v141_v63 }
  0xcf   :  { %v5613_v1 = vadd.f32 %v1291_v0, %v822_v60  ;;  %v82_v60 = vld [vmem:[%s8557_s0 + $0x110] sm:$0xff] }
  0xd0   :  { %v827_v2 = vpop.f32.mrf.mxu1 }
  0xd1   :  { %8618 = vst [vmem:[#allocation16_spill] sm:$0xff] %v5613_v1  ;;  %v828_v15 = vadd.f32 %v827_v2, %v423_v61  ;;  %v1022_v61 = vld [vmem:[%s8557_s0 + $0x10a] sm:$0xff]  ;;  %v148_v2 = vld [vmem:[%s8557_s0 + $0x121] sm:$0xff] }
  0xd3   :  { %4837 = vmatmul.msk.f32.gmra.mxu1 %vm182_vm1, %v76_v3  ;;  %4902 = vmatmul.msk.f32.gmra.mxu2 %vm182_vm1, %v1016_v4  ;;  %v426_v7 = vpop.f32.mrf.mxu0 }
  0xd6   :  { %v1294_v9 = vpop.f32.mrf.mxu2  ;;  %4773 = vmatmul.msk.f32.gmra.mxu0 %vm182_vm1, %v142_v8  ;;  %v1023_v8 = vld [vmem:[%s8557_s0 + $0x112] sm:$0xff] }
  0xd7   :  { %v5627_v10 = vadd.f32 %v1294_v9, %v825_v5 }
  0xd8   :  { %v830_v11 = vpop.f32.mrf.mxu1 }
  0xd9   :  { %8619 = vst [vmem:[#allocation17_spill] sm:$0xff] %v5627_v10  ;;  %v831_v24 = vadd.f32 %v830_v11, %v426_v7  ;;  %v83_v7 = vld [vmem:[%s8557_s0 + $0x120] sm:$0xff] }
  0xdb   :  { %4838 = vmatmul.msk.f32.gmra.mxu1 %vm182_vm1, %v77_v12  ;;  %4903 = vmatmul.msk.f32.gmra.mxu2 %vm182_vm1, %v1017_v13  ;;  %v429_v16 = vpop.f32.mrf.mxu0  ;;  %v149_v12 = vld [vmem:[%s8557_s0 + $0x129] sm:$0xff] }
  0xde   :  { %v1297_v18 = vpop.f32.mrf.mxu2  ;;  %4774 = vmatmul.msk.f32.gmra.mxu0 %vm182_vm1, %v143_v17  ;;  %v84_v17 = vld [vmem:[%s8557_s0 + $0x128] sm:$0xff] }
  0xdf   :  { %v5641_v19 = vadd.f32 %v1297_v18, %v828_v15  ;;  %v1024_v18 = vld [vmem:[%s8557_s0 + $0x122] sm:$0xff] }
  0xe0   :  { %v833_v20 = vpop.f32.mrf.mxu1 }
  0xe1   :  { %v834_v33 = vadd.f32 %v833_v20, %v429_v16 }
  0xe3   :  { %4839 = vmatmul.msk.f32.gmra.mxu1 %vm182_vm1, %v78_v21  ;;  %4904 = vmatmul.msk.f32.gmra.mxu2 %vm182_vm1, %v1018_v23  ;;  %v432_v25 = vpop.f32.mrf.mxu0  ;;  %v150_v23 = vld [vmem:[%s8557_s0 + $0x131] sm:$0xff] }
  0xe6   :  { %v1300_v27 = vpop.f32.mrf.mxu2  ;;  %4775 = vmatmul.msk.f32.gmra.mxu0 %vm182_vm1, %v144_v26 }
  0xe7   :  { %v5655_v28 = vadd.f32 %v1300_v27, %v831_v24  ;;  %v85_v27 = vld [vmem:[%s8557_s0 + $0x130] sm:$0xff] }
  0xe8   :  { %v836_v29 = vpop.f32.mrf.mxu1 }
  0xe9   :  { %8620 = vst [vmem:[#allocation18_spill] sm:$0xff] %v5655_v28  ;;  %v837_v42 = vadd.f32 %v836_v29, %v432_v25  ;;  %v1025_v29 = vld [vmem:[%s8557_s0 + $0x12a] sm:$0xff] }
  0xeb   :  { %4840 = vmatmul.msk.f32.gmra.mxu1 %vm182_vm1, %v79_v31  ;;  %4905 = vmatmul.msk.f32.gmra.mxu2 %vm182_vm1, %v1019_v32  ;;  %v435_v34 = vpop.f32.mrf.mxu0 }
  0xee   :  { %v1303_v36 = vpop.f32.mrf.mxu2  ;;  %4776 = vmatmul.msk.f32.gmra.mxu0 %vm182_vm1, %v145_v35 }
  0xef   :  { %v5669_v37 = vadd.f32 %v1303_v36, %v834_v33  ;;  %v151_v33 = vld [vmem:[%s8557_s0 + $0x139] sm:$0xff] }
  0xf0   :  { %v839_v39 = vpop.f32.mrf.mxu1 }
  0xf1   :  { %8621 = vst [vmem:[#allocation19_spill] sm:$0xff] %v5669_v37  ;;  %v840_v52 = vadd.f32 %v839_v39, %v435_v34  ;;  %v86_v39 = vld [vmem:[%s8557_s0 + $0x138] sm:$0xff] }
  0xf3   :  { %4841 = vmatmul.msk.f32.gmra.mxu1 %vm182_vm1, %v80_v40  ;;  %4906 = vmatmul.msk.f32.gmra.mxu2 %vm182_vm1, %v1020_v41  ;;  %v438_v43 = vpop.f32.mrf.mxu0  ;;  %v1026_v40 = vld [vmem:[%s8557_s0 + $0x132] sm:$0xff] }
  0xf6   :  { %v1306_v45 = vpop.f32.mrf.mxu2  ;;  %4777 = vmatmul.msk.f32.gmra.mxu0 %vm182_vm1, %v146_v44 }
  0xf7   :  { %v5683_v47 = vadd.f32 %v1306_v45, %v837_v42 }
  0xf8   :  { %v842_v48 = vpop.f32.mrf.mxu1 }
  0xf9   :  { %8622 = vst [vmem:[#allocation20_spill] sm:$0xff] %v5683_v47  ;;  %v843_v63 = vadd.f32 %v842_v48, %v438_v43  ;;  %v152_v43 = vld [vmem:[%s8557_s0 + $0x141] sm:$0xff] }
  0xfb   :  { %4842 = vmatmul.msk.f32.gmra.mxu1 %vm182_vm1, %v81_v49  ;;  %4907 = vmatmul.msk.f32.gmra.mxu2 %vm182_vm1, %v1021_v50  ;;  %v441_v53 = vpop.f32.mrf.mxu0  ;;  %v87_v49 = vld [vmem:[%s8557_s0 + $0x140] sm:$0xff] }
  0xfc   :  { %v1027_v50 = vld [vmem:[%s8557_s0 + $0x13a] sm:$0xff] }
  0xfe   :  { %v1309_v57 = vpop.f32.mrf.mxu2  ;;  %4778 = vmatmul.msk.f32.gmra.mxu0 %vm182_vm1, %v147_v54  ;;  %v153_v54 = vld [vmem:[%s8557_s0 + $0x149] sm:$0xff] }
  0xff   :  { %v5697_v58 = vadd.f32 %v1309_v57, %v840_v52 }
 0x100   :  { %v845_v59 = vpop.f32.mrf.mxu1 }
 0x101   :  { %v846_v9 = vadd.f32 %v845_v59, %v441_v53 }
 0x103   :  { %4843 = vmatmul.msk.f32.gmra.mxu1 %vm182_vm1, %v82_v60  ;;  %4908 = vmatmul.msk.f32.gmra.mxu2 %vm182_vm1, %v1022_v61  ;;  %v444_v0 = vpop.f32.mrf.mxu0  ;;  %v88_v61 = vld [vmem:[%s8557_s0 + $0x148] sm:$0xff] }
 0x106   :  { %v1312_v3 = vpop.f32.mrf.mxu2  ;;  %4779 = vmatmul.msk.f32.gmra.mxu0 %vm182_vm1, %v148_v2 }
 0x107   :  { %v5711_v4 = vadd.f32 %v1312_v3, %v843_v63  ;;  %v1028_v63 = vld [vmem:[%s8557_s0 + $0x142] sm:$0xff]  ;;  %v154_v3 = vld [vmem:[%s8557_s0 + $0x151] sm:$0xff] }
 0x108   :  { %v848_v5 = vpop.f32.mrf.mxu1 }
 0x109   :  { %8623 = vst [vmem:[#allocation21_spill] sm:$0xff] %v5711_v4  ;;  %v849_v20 = vadd.f32 %v848_v5, %v444_v0 }
 0x10b   :  { %4844 = vmatmul.msk.f32.gmra.mxu1 %vm182_vm1, %v83_v7  ;;  %4909 = vmatmul.msk.f32.gmra.mxu2 %vm182_vm1, %v1023_v8  ;;  %v447_v11 = vpop.f32.mrf.mxu0 }
 0x10e   :  { %v1315_v13 = vpop.f32.mrf.mxu2  ;;  %4780 = vmatmul.msk.f32.gmra.mxu0 %vm182_vm1, %v149_v12 }
 0x10f   :  { %v5725_v15 = vadd.f32 %v1315_v13, %v846_v9  ;;  %v89_v9 = vld [vmem:[%s8557_s0 + $0x150] sm:$0xff] }
 0x110   :  { %v851_v16 = vpop.f32.mrf.mxu1 }
 0x111   :  { %8624 = vst [vmem:[#allocation22_spill] sm:$0xff] %v5725_v15  ;;  %v852_v31 = vadd.f32 %v851_v16, %v447_v11  ;;  %v1029_v11 = vld [vmem:[%s8557_s0 + $0x14a] sm:$0xff]  ;;  %v155_v16 = vld [vmem:[%s8557_s0 + $0x159] sm:$0xff] }
 0x113   :  { %4845 = vmatmul.msk.f32.gmra.mxu1 %vm182_vm1, %v84_v17  ;;  %4910 = vmatmul.msk.f32.gmra.mxu2 %vm182_vm1, %v1024_v18  ;;  %v450_v21 = vpop.f32.mrf.mxu0 }
 0x116   :  { %v1318_v24 = vpop.f32.mrf.mxu2  ;;  %4781 = vmatmul.msk.f32.gmra.mxu0 %vm182_vm1, %v150_v23  ;;  %v1030_v23 = vld [vmem:[%s8557_s0 + $0x152] sm:$0xff] }
 0x117   :  { %v5739_v25 = vadd.f32 %v1318_v24, %v849_v20 }
 0x118   :  { %v854_v26 = vpop.f32.mrf.mxu1 }
 0x119   :  { %8625 = vst [vmem:[#allocation23_spill] sm:$0xff] %v5739_v25  ;;  %v855_v41 = vadd.f32 %v854_v26, %v450_v21  ;;  %v90_v21 = vld [vmem:[%s8557_s0 + $0x158] sm:$0xff] }
 0x11b   :  { %4846 = vmatmul.msk.f32.gmra.mxu1 %vm182_vm1, %v85_v27  ;;  %4911 = vmatmul.msk.f32.gmra.mxu2 %vm182_vm1, %v1025_v29  ;;  %v453_v32 = vpop.f32.mrf.mxu0  ;;  %v156_v27 = vld [vmem:[%s8557_s0 + $0x169] sm:$0xff] }
 0x11e   :  { %v1321_v34 = vpop.f32.mrf.mxu2  ;;  %4782 = vmatmul.msk.f32.gmra.mxu0 %vm182_vm1, %v151_v33  ;;  %v91_v33 = vld [vmem:[%s8557_s0 + $0x168] sm:$0xff] }
 0x11f   :  { %v5753_v35 = vadd.f32 %v1321_v34, %v852_v31  ;;  %v1031_v34 = vld [vmem:[%s8557_s0 + $0x15a] sm:$0xff] }
 0x120   :  { %v857_v36 = vpop.f32.mrf.mxu1 }
 0x121   :  { %8626 = vst [vmem:[#allocation24_spill] sm:$0xff] %v5753_v35  ;;  %v858_v52 = vadd.f32 %v857_v36, %v453_v32 }
 0x123   :  { %4847 = vmatmul.msk.f32.gmra.mxu1 %vm182_vm1, %v86_v39  ;;  %4912 = vmatmul.msk.f32.gmra.mxu2 %vm182_vm1, %v1026_v40  ;;  %v456_v42 = vpop.f32.mrf.mxu0  ;;  %v157_v40 = vld [vmem:[%s8557_s0 + $0x171] sm:$0xff] }
 0x126   :  { %v1324_v44 = vpop.f32.mrf.mxu2  ;;  %4783 = vmatmul.msk.f32.gmra.mxu0 %vm182_vm1, %v152_v43 }
 0x127   :  { %v5767_v45 = vadd.f32 %v1324_v44, %v855_v41  ;;  %v92_v44 = vld [vmem:[%s8557_s0 + $0x170] sm:$0xff] }
 0x128   :  { %v860_v48 = vpop.f32.mrf.mxu1 }
 0x129   :  { %8627 = vst [vmem:[#allocation25_spill] sm:$0xff] %v5767_v45  ;;  %v861_v0 = vadd.f32 %v860_v48, %v456_v42  ;;  %v1032_v48 = vld [vmem:[%s8557_s0 + $0x16a] sm:$0xff] }
 0x12b   :  { %4848 = vmatmul.msk.f32.gmra.mxu1 %vm182_vm1, %v87_v49  ;;  %4913 = vmatmul.msk.f32.gmra.mxu2 %vm182_vm1, %v1027_v50  ;;  %v459_v53 = vpop.f32.mrf.mxu0 }
 0x12e   :  { %v1327_v57 = vpop.f32.mrf.mxu2  ;;  %4784 = vmatmul.msk.f32.gmra.mxu0 %vm182_vm1, %v153_v54 }
 0x12f   :  { %v5781_v59 = vadd.f32 %v1327_v57, %v858_v52  ;;  %v158_v52 = vld [vmem:[%s8557_s0 + $0x179] sm:$0xff] }
 0x130   :  { %v863_v60 = vpop.f32.mrf.mxu1 }
 0x131   :  { %8628 = vst [vmem:[#allocation26_spill] sm:$0xff] %v5781_v59  ;;  %v864_v12 = vadd.f32 %v863_v60, %v459_v53  ;;  %v93_v60 = vld [vmem:[%s8557_s0 + $0x178] sm:$0xff] }
 0x133   :  { %4849 = vmatmul.msk.f32.gmra.mxu1 %vm182_vm1, %v88_v61  ;;  %4914 = vmatmul.msk.f32.gmra.mxu2 %vm182_vm1, %v1028_v63  ;;  %v462_v2 = vpop.f32.mrf.mxu0  ;;  %v1033_v61 = vld [vmem:[%s8557_s0 + $0x172] sm:$0xff] }
 0x136   :  { %v1330_v5 = vpop.f32.mrf.mxu2  ;;  %4785 = vmatmul.msk.f32.gmra.mxu0 %vm182_vm1, %v154_v3 }
 0x137   :  { %v5795_v7 = vadd.f32 %v1330_v5, %v861_v0 }
 0x138   :  { %v866_v8 = vpop.f32.mrf.mxu1 }
 0x139   :  { %8629 = vst [vmem:[#allocation27_spill] sm:$0xff] %v5795_v7  ;;  %v867_v24 = vadd.f32 %v866_v8, %v462_v2  ;;  %v159_v2 = vld [vmem:[%s8557_s0 + $0x181] sm:$0xff] }
 0x13b   :  { %4850 = vmatmul.msk.f32.gmra.mxu1 %vm182_vm1, %v89_v9  ;;  %4915 = vmatmul.msk.f32.gmra.mxu2 %vm182_vm1, %v1029_v11  ;;  %v465_v13 = vpop.f32.mrf.mxu0  ;;  %v94_v9 = vld [vmem:[%s8557_s0 + $0x180] sm:$0xff] }
 0x13c   :  { %v1034_v11 = vld [vmem:[%s8557_s0 + $0x17a] sm:$0xff] }
 0x13e   :  { %v1333_v17 = vpop.f32.mrf.mxu2  ;;  %4786 = vmatmul.msk.f32.gmra.mxu0 %vm182_vm1, %v155_v16  ;;  %v160_v16 = vld [vmem:[%s8557_s0 + $0x189] sm:$0xff] }
 0x13f   :  { %v5809_v18 = vadd.f32 %v1333_v17, %v864_v12 }
 0x140   :  { %v869_v20 = vpop.f32.mrf.mxu1 }
 0x141   :  { %8630 = vst [vmem:[#allocation28_spill] sm:$0xff] %v5809_v18  ;;  %v870_v36 = vadd.f32 %v869_v20, %v465_v13 }
 0x143   :  { %4851 = vmatmul.msk.f32.gmra.mxu1 %vm182_vm1, %v90_v21  ;;  %4916 = vmatmul.msk.f32.gmra.mxu2 %vm182_vm1, %v1030_v23  ;;  %v468_v26 = vpop.f32.mrf.mxu0  ;;  %v95_v23 = vld [vmem:[%s8557_s0 + $0x188] sm:$0xff] }
 0x146   :  { %v1336_v29 = vpop.f32.mrf.mxu2  ;;  %4787 = vmatmul.msk.f32.gmra.mxu0 %vm182_vm1, %v156_v27 }
 0x147   :  { %v5823_v31 = vadd.f32 %v1336_v29, %v867_v24  ;;  %v1035_v24 = vld [vmem:[%s8557_s0 + $0x182] sm:$0xff]  ;;  %v161_v29 = vld [vmem:[%s8557_s0 + $0x191] sm:$0xff] }
 0x148   :  { %v872_v32 = vpop.f32.mrf.mxu1 }
 0x149   :  { %8631 = vst [vmem:[#allocation29_spill] sm:$0xff] %v5823_v31  ;;  %v873_v49 = vadd.f32 %v872_v32, %v468_v26 }
 0x14b   :  { %4852 = vmatmul.msk.f32.gmra.mxu1 %vm182_vm1, %v91_v33  ;;  %4917 = vmatmul.msk.f32.gmra.mxu2 %vm182_vm1, %v1031_v34  ;;  %v471_v39 = vpop.f32.mrf.mxu0 }
 0x14e   :  { %v1339_v41 = vpop.f32.mrf.mxu2  ;;  %4788 = vmatmul.msk.f32.gmra.mxu0 %vm182_vm1, %v157_v40 }
 0x14f   :  { %v5837_v42 = vadd.f32 %v1339_v41, %v870_v36  ;;  %v96_v36 = vld [vmem:[%s8557_s0 + $0x190] sm:$0xff] }
 0x150   :  { %v875_v43 = vpop.f32.mrf.mxu1 }
 0x151   :  { %8632 = vst [vmem:[#allocation30_spill] sm:$0xff] %v5837_v42  ;;  %v876_v63 = vadd.f32 %v875_v43, %v471_v39  ;;  %v1036_v39 = vld [vmem:[%s8557_s0 + $0x18a] sm:$0xff]  ;;  %v162_v43 = vld [vmem:[%s8557_s0 + $0x199] sm:$0xff] }
 0x153   :  { %4853 = vmatmul.msk.f32.gmra.mxu1 %vm182_vm1, %v92_v44  ;;  %4918 = vmatmul.msk.f32.gmra.mxu2 %vm182_vm1, %v1032_v48  ;;  %v474_v50 = vpop.f32.mrf.mxu0 }
 0x156   :  { %v1342_v53 = vpop.f32.mrf.mxu2  ;;  %4789 = vmatmul.msk.f32.gmra.mxu0 %vm182_vm1, %v158_v52  ;;  %v1037_v52 = vld [vmem:[%s8557_s0 + $0x192] sm:$0xff] }
 0x157   :  { %v5851_v54 = vadd.f32 %v1342_v53, %v873_v49 }
 0x158   :  { %v878_v57 = vpop.f32.mrf.mxu1 }
 0x159   :  { %8633 = vst [vmem:[#allocation31_spill] sm:$0xff] %v5851_v54  ;;  %v879_v12 = vadd.f32 %v878_v57, %v474_v50  ;;  %v97_v50 = vld [vmem:[%s8557_s0 + $0x198] sm:$0xff] }
 0x15b   :  { %4854 = vmatmul.msk.f32.gmra.mxu1 %vm182_vm1, %v93_v60  ;;  %4919 = vmatmul.msk.f32.gmra.mxu2 %vm182_vm1, %v1033_v61  ;;  %v477_v0 = vpop.f32.mrf.mxu0  ;;  %v163_v60 = vld [vmem:[%s8557_s0 + $0x1a1] sm:$0xff] }
 0x15e   :  { %v1345_v3 = vpop.f32.mrf.mxu2  ;;  %4790 = vmatmul.msk.f32.gmra.mxu0 %vm182_vm1, %v159_v2  ;;  %v98_v2 = vld [vmem:[%s8557_s0 + $0x1a0] sm:$0xff] }
 0x15f   :  { %v5865_v5 = vadd.f32 %v1345_v3, %v876_v63  ;;  %v1038_v3 = vld [vmem:[%s8557_s0 + $0x19a] sm:$0xff] }
 0x160   :  { %v881_v8 = vpop.f32.mrf.mxu1 }
 0x161   :  { %8634 = vst [vmem:[#allocation32_spill] sm:$0xff] %v5865_v5  ;;  %v882_v26 = vadd.f32 %v881_v8, %v477_v0 }
 0x163   :  { %4855 = vmatmul.msk.f32.gmra.mxu1 %vm182_vm1, %v94_v9  ;;  %4920 = vmatmul.msk.f32.gmra.mxu2 %vm182_vm1, %v1034_v11  ;;  %v480_v13 = vpop.f32.mrf.mxu0  ;;  %v164_v11 = vld [vmem:[%s8557_s0 + $0x1b1] sm:$0xff] }
 0x166   :  { %v1348_v17 = vpop.f32.mrf.mxu2  ;;  %4791 = vmatmul.msk.f32.gmra.mxu0 %vm182_vm1, %v160_v16 }
 0x167   :  { %v5879_v20 = vadd.f32 %v1348_v17, %v879_v12  ;;  %v99_v17 = vld [vmem:[%s8557_s0 + $0x1b0] sm:$0xff] }
 0x168   :  { %v884_v21 = vpop.f32.mrf.mxu1 }
 0x169   :  { %8635 = vst [vmem:[#allocation33_spill] sm:$0xff] %v5879_v20  ;;  %v885_v40 = vadd.f32 %v884_v21, %v480_v13  ;;  %v1039_v21 = vld [vmem:[%s8557_s0 + $0x1a2] sm:$0xff] }
 0x16b   :  { %4856 = vmatmul.msk.f32.gmra.mxu1 %vm182_vm1, %v95_v23  ;;  %4921 = vmatmul.msk.f32.gmra.mxu2 %vm182_vm1, %v1035_v24  ;;  %v483_v27 = vpop.f32.mrf.mxu0 }
 0x16e   :  { %v1351_v32 = vpop.f32.mrf.mxu2  ;;  %4792 = vmatmul.msk.f32.gmra.mxu0 %vm182_vm1, %v161_v29 }
 0x16f   :  { %v5893_v33 = vadd.f32 %v1351_v32, %v882_v26  ;;  %v165_v26 = vld [vmem:[%s8557_s0 + $0x1b9] sm:$0xff] }
 0x170   :  { %v887_v34 = vpop.f32.mrf.mxu1 }
 0x171   :  { %8636 = vst [vmem:[#allocation34_spill] sm:$0xff] %v5893_v33  ;;  %v888_v53 = vadd.f32 %v887_v34, %v483_v27  ;;  %v100_v34 = vld [vmem:[%s8557_s0 + $0x1b8] sm:$0xff] }
 0x173   :  { %4857 = vmatmul.msk.f32.gmra.mxu1 %vm182_vm1, %v96_v36  ;;  %4922 = vmatmul.msk.f32.gmra.mxu2 %vm182_vm1, %v1036_v39  ;;  %v486_v41 = vpop.f32.mrf.mxu0  ;;  %v1040_v36 = vld [vmem:[%s8557_s0 + $0x1b2] sm:$0xff] }
 0x176   :  { %v1354_v44 = vpop.f32.mrf.mxu2  ;;  %4793 = vmatmul.msk.f32.gmra.mxu0 %vm182_vm1, %v162_v43 }
 0x177   :  { %v5907_v48 = vadd.f32 %v1354_v44, %v885_v40 }
 0x178   :  { %v890_v49 = vpop.f32.mrf.mxu1 }
 0x179   :  { %8637 = vst [vmem:[#allocation35_spill] sm:$0xff] %v5907_v48  ;;  %v891_v8 = vadd.f32 %v890_v49, %v486_v41  ;;  %v166_v41 = vld [vmem:[%s8557_s0 + $0x1c1] sm:$0xff] }
 0x17b   :  { %4858 = vmatmul.msk.f32.gmra.mxu1 %vm182_vm1, %v97_v50  ;;  %4923 = vmatmul.msk.f32.gmra.mxu2 %vm182_vm1, %v1037_v52  ;;  %v489_v57 = vpop.f32.mrf.mxu0  ;;  %v101_v50 = vld [vmem:[%s8557_s0 + $0x1c0] sm:$0xff] }
 0x17c   :  { %v1041_v52 = vld [vmem:[%s8557_s0 + $0x1ba] sm:$0xff] }
 0x17e   :  { %v1357_v61 = vpop.f32.mrf.mxu2  ;;  %4794 = vmatmul.msk.f32.gmra.mxu0 %vm182_vm1, %v163_v60  ;;  %v167_v60 = vld [vmem:[%s8557_s0 + $0x1c9] sm:$0xff] }
 0x17f   :  { %v5921_v63 = vadd.f32 %v1357_v61, %v888_v53 }
 0x180   :  { %v893_v0 = vpop.f32.mrf.mxu1 }
 0x181   :  { %8638 = vst [vmem:[#allocation36_spill] sm:$0xff] %v5921_v63  ;;  %v894_v23 = vadd.f32 %v893_v0, %v489_v57 }
 0x183   :  { %4859 = vmatmul.msk.f32.gmra.mxu1 %vm182_vm1, %v98_v2  ;;  %4924 = vmatmul.msk.f32.gmra.mxu2 %vm182_vm1, %v1038_v3  ;;  %v492_v9 = vpop.f32.mrf.mxu0  ;;  %v102_v3 = vld [vmem:[%s8557_s0 + $0x1c8] sm:$0xff] }
 0x186   :  { %v1360_v12 = vpop.f32.mrf.mxu2  ;;  %4795 = vmatmul.msk.f32.gmra.mxu0 %vm182_vm1, %v164_v11 }
 0x187   :  { %v5935_v13 = vadd.f32 %v1360_v12, %v891_v8  ;;  %v1042_v8 = vld [vmem:[%s8557_s0 + $0x1c2] sm:$0xff]  ;;  %v168_v12 = vld [vmem:[%s8557_s0 + $0x1d1] sm:$0xff] }
 0x188   :  { %v896_v16 = vpop.f32.mrf.mxu1 }
 0x189   :  { %8639 = vst [vmem:[#allocation37_spill] sm:$0xff] %v5935_v13  ;;  %v897_v39 = vadd.f32 %v896_v16, %v492_v9 }
 0x18b   :  { %4860 = vmatmul.msk.f32.gmra.mxu1 %vm182_vm1, %v99_v17  ;;  %4925 = vmatmul.msk.f32.gmra.mxu2 %vm182_vm1, %v1039_v21  ;;  %v495_v24 = vpop.f32.mrf.mxu0 }
 0x18e   :  { %v1363_v27 = vpop.f32.mrf.mxu2  ;;  %4796 = vmatmul.msk.f32.gmra.mxu0 %vm182_vm1, %v165_v26 }
 0x18f   :  { %v5949_v29 = vadd.f32 %v1363_v27, %v894_v23  ;;  %v103_v23 = vld [vmem:[%s8557_s0 + $0x1d0] sm:$0xff]  ;;  %v169_v27 = vld [vmem:[%s8557_s0 + $0x1d9] sm:$0xff] }
 0x190   :  { %v899_v32 = vpop.f32.mrf.mxu1 }
 0x191   :  { %8640 = vst [vmem:[#allocation38_spill] sm:$0xff] %v5949_v29  ;;  %v900_v53 = vadd.f32 %v899_v32, %v495_v24  ;;  %v1043_v24 = vld [vmem:[%s8557_s0 + $0x1ca] sm:$0xff] }
 0x193   :  { %4861 = vmatmul.msk.f32.gmra.mxu1 %vm182_vm1, %v100_v34  ;;  %4926 = vmatmul.msk.f32.gmra.mxu2 %vm182_vm1, %v1040_v36  ;;  %v498_v40 = vpop.f32.mrf.mxu0  ;;  %v104_v36 = vld [vmem:[%s8557_s0 + $0x1d8] sm:$0xff] }
 0x196   :  { %v1366_v43 = vpop.f32.mrf.mxu2  ;;  %4797 = vmatmul.msk.f32.gmra.mxu0 %vm182_vm1, %v166_v41  ;;  %v170_v41 = vld [vmem:[%s8557_s0 + $0x1e1] sm:$0xff] }
 0x197   :  { %v5963_v44 = vadd.f32 %v1366_v43, %v897_v39  ;;  %v1044_v39 = vld [vmem:[%s8557_s0 + $0x1d2] sm:$0xff] }
 0x198   :  { %v902_v49 = vpop.f32.mrf.mxu1 }
 0x199   :  { %8641 = vst [vmem:[#allocation39_spill] sm:$0xff] %v5963_v44  ;;  %v903_v9 = vadd.f32 %v902_v49, %v498_v40 }
 0x19b   :  { %4862 = vmatmul.msk.f32.gmra.mxu1 %vm182_vm1, %v101_v50  ;;  %4927 = vmatmul.msk.f32.gmra.mxu2 %vm182_vm1, %v1041_v52  ;;  %v5973_v57 = vpop.f32.mrf.mxu0  ;;  %v105_v50 = vld [vmem:[%s8557_s0 + $0x1e0] sm:$0xff] }
 0x19c   :  { %v1045_v52 = vld [vmem:[%s8557_s0 + $0x1da] sm:$0xff] }
 0x19e   :  { %v1369_v61 = vpop.f32.mrf.mxu2  ;;  %4798 = vmatmul.msk.f32.gmra.mxu0 %vm182_vm1, %v167_v60  ;;  %v171_v60 = vld [vmem:[%s8557_s0 + $0x1e9] sm:$0xff] }
 0x19f   :  { %v5979_v0 = vadd.f32 %v1369_v61, %v900_v53 }
 0x1a0   :  { %v5981_v2 = vpop.f32.mrf.mxu1 }
 0x1a1   :  { %8642 = vst [vmem:[#allocation40_spill] sm:$0xff] %v5979_v0 }
 0x1a3   :  { %4863 = vmatmul.msk.f32.gmra.mxu1 %vm182_vm1, %v102_v3  ;;  %4928 = vmatmul.msk.f32.gmra.mxu2 %vm182_vm1, %v1042_v8  ;;  %v5991_v11 = vpop.f32.mrf.mxu0  ;;  %v106_v8 = vld [vmem:[%s8557_s0 + $0x1e8] sm:$0xff] }
 0x1a6   :  { %v1372_v16 = vpop.f32.mrf.mxu2  ;;  %4799 = vmatmul.msk.f32.gmra.mxu0 %vm182_vm1, %v168_v12  ;;  %v172_v12 = vld [vmem:[%s8557_s0 + $0x1f9] sm:$0xff] }
 0x1a7   :  { %v5997_v17 = vadd.f32 %v1372_v16, %v903_v9  ;;  %v1046_v9 = vld [vmem:[%s8557_s0 + $0x1e2] sm:$0xff] }
 0x1a8   :  { %v5999_v21 = vpop.f32.mrf.mxu1 }
 0x1a9   :  { %8643 = vst [vmem:[#allocation41_spill] sm:$0xff] %v5997_v17 }
 0x1ab   :  { %4864 = vmatmul.msk.f32.gmra.mxu1 %vm182_vm1, %v103_v23  ;;  %4929 = vmatmul.msk.f32.gmra.mxu2 %vm182_vm1, %v1043_v24  ;;  %v6009_v26 = vpop.f32.mrf.mxu0 }
 0x1ae   :  { %v6014_v32 = vpop.f32.mrf.mxu2  ;;  %4800 = vmatmul.msk.f32.gmra.mxu0 %vm182_vm1, %v169_v27  ;;  %v107_v27 = vld [vmem:[%s8557_s0 + $0x1f8] sm:$0xff] }
 0x1b0   :  { %v6017_v34 = vpop.f32.mrf.mxu1 }
 0x1b3   :  { %4865 = vmatmul.msk.f32.gmra.mxu1 %vm182_vm1, %v104_v36  ;;  %4930 = vmatmul.msk.f32.gmra.mxu2 %vm182_vm1, %v1044_v39  ;;  %v6027_v40 = vpop.f32.mrf.mxu0  ;;  %v1047_v36 = vld [vmem:[%s8557_s0 + $0x1ea] sm:$0xff]  ;;  %v173_v39 = vld [vmem:[%s8557_s0 + $0x201] sm:$0xff] }
 0x1b6   :  { %v6032_v43 = vpop.f32.mrf.mxu2  ;;  %4801 = vmatmul.msk.f32.gmra.mxu0 %vm182_vm1, %v170_v41 }
 0x1b8   :  { %v6035_v49 = vpop.f32.mrf.mxu1 }
 0x1bb   :  { %4866 = vmatmul.msk.f32.gmra.mxu1 %vm182_vm1, %v105_v50  ;;  %4931 = vmatmul.msk.f32.gmra.mxu2 %vm182_vm1, %v1045_v52  ;;  %v6045_v53 = vpop.f32.mrf.mxu0 }
 0x1be   :  { %v6050_v61 = vpop.f32.mrf.mxu2  ;;  %4802 = vmatmul.msk.f32.gmra.mxu0 %vm182_vm1, %v171_v60  ;;  %v108_v60 = vld [vmem:[%s8557_s0 + $0x200] sm:$0xff] }
 0x1c0   :  { %v6053_v3 = vpop.f32.mrf.mxu1 }
 0x1c3   :  { %4867 = vmatmul.msk.f32.gmra.mxu1 %vm182_vm1, %v106_v8  ;;  %4932 = vmatmul.msk.f32.gmra.mxu2 %vm182_vm1, %v1046_v9  ;;  %v6066_v16 = vpop.f32.mrf.mxu0  ;;  %v1048_v8 = vld [vmem:[%s8557_s0 + $0x1fa] sm:$0xff]  ;;  %v174_v9 = vld [vmem:[%s8557_s0 + $0x209] sm:$0xff] }
 0x1c6   :  { %v6068_v23 = vpop.f32.mrf.mxu2  ;;  %4803 = vmatmul.msk.f32.gmra.mxu0 %vm182_vm1, %v172_v12 }
 0x1c7   :  { %8644 = vst [vmem:[#allocation42_spill] sm:$0xff] %v6068_v23 }
 0x1c8   :  { %v6071_v24 = vpop.f32.mrf.mxu1 }
 0x1cb   :  { %4868 = vmatmul.msk.f32.gmra.mxu1 %vm182_vm1, %v107_v27  ;;  %4933 = vmatmul.msk.f32.gmra.mxu2 %vm182_vm1, %v1047_v36  ;;  %v6086_v50 = vpop.f32.mrf.mxu0  ;;  %v109_v36 = vld [vmem:[%s8557_s0 + $0x208] sm:$0xff] }
 0x1cc   :  { %8646 = vst [vmem:[#allocation44_spill] sm:$0xff] %v6086_v50 }
 0x1ce   :  { %v6084_v41 = vpop.f32.mrf.mxu2  ;;  %4804 = vmatmul.msk.f32.gmra.mxu0 %vm182_vm1, %v173_v39  ;;  %v1049_v39 = vld [vmem:[%s8557_s0 + $0x202] sm:$0xff] }
 0x1cf   :  { %8645 = vst [vmem:[#allocation43_spill] sm:$0xff] %v6084_v41 }
 0x1d0   :  { %v6089_v52 = vpop.f32.mrf.mxu1 }
 0x1d1   :  { %8647 = vst [vmem:[#allocation45_spill] sm:$0xff] %v6089_v52 }
 0x1d3   :  { %4869 = vmatmul.msk.f32.gmra.mxu1 %vm182_vm1, %v108_v60  ;;  %4934 = vmatmul.msk.f32.gmra.mxu2 %vm182_vm1, %v1048_v8  ;;  %v6113_v60 = vpop.f32.mrf.mxu0 }
 0x1d4   :  { %8650 = vst [vmem:[#allocation48_spill] sm:$0xff] %v6113_v60  ;;  %v1664_v60 = vmul.f32 %v5557_v30, %v5557_v30 }
 0x1d6   :  { %v6102_v12 = vpop.f32.mrf.mxu2  ;;  %4805 = vmatmul.msk.f32.gmra.mxu0 %vm182_vm1, %v174_v9  ;;  %v110_v9 = vld [vmem:[%s8557_s0 + $0x210] sm:$0xff] }
 0x1d7   :  { %8648 = vst [vmem:[#allocation46_spill] sm:$0xff] %v6102_v12 }
 0x1d8   :  { %v6105_v27 = vpop.f32.mrf.mxu1 }
 0x1d9   :  { %8649 = vst [vmem:[#allocation47_spill] sm:$0xff] %v6105_v27  ;;  %v1051_v27 = vld [vmem:[%s8557_s0 + $0x212] sm:$0xff] }
 0x1db   :  { %4870 = vmatmul.msk.f32.gmra.mxu1 %vm182_vm1, %v109_v36  ;;  %4935 = vmatmul.msk.f32.gmra.mxu2 %vm182_vm1, %v1049_v39  ;;  %v6131_v36 = vpop.f32.mrf.mxu0 }
 0x1dc   :  { %8653 = vst [vmem:[#allocation51_spill] sm:$0xff] %v6131_v36  ;;  %v112_v36 = vld [vmem:[%s8557_s0 + $0x220] sm:$0xff] }
 0x1de   :  { %v6117_v8 = vpop.f32.mrf.mxu2 }
 0x1df   :  { %8651 = vst [vmem:[#allocation49_spill] sm:$0xff] %v6117_v8  ;;  %v111_v8 = vld [vmem:[%s8557_s0 + $0x218] sm:$0xff] }
 0x1e0   :  { %v6119_v62 = vpop.f32.mrf.mxu1 }
 0x1e1   :  { %8652 = vst [vmem:[#allocation50_spill] sm:$0xff] %v6119_v62 }
 0x1e3   :  { %4871 = vmatmul.msk.f32.gmra.mxu1 %vm182_vm1, %v110_v9  ;;  %4936 = vmatmul.msk.f32.gmra.mxu2 %vm182_vm1, %v1050_v56  ;;  %v6151_v56 = vpop.f32.mrf.mxu0  ;;  %v5013_v9 = vld [vmem:[%s8561_s4 + $0x58] sm:$0xff] }
 0x1e4   :  { %8656 = vst [vmem:[#allocation54_spill] sm:$0xff] %v6151_v56  ;;  %2984 = vmatpush.msrb.mxu0 %v5013_v9 }
 0x1e6   :  { %v6135_v39 = vpop.f32.mrf.mxu2 }
 0x1e7   :  { %8654 = vst [vmem:[#allocation52_spill] sm:$0xff] %v6135_v39 }
 0x1e8   :  { %v6137_v62 = vpop.f32.mrf.mxu1 }
 0x1e9   :  { %8655 = vst [vmem:[#allocation53_spill] sm:$0xff] %v6137_v62 }
 0x1eb   :  { %4872 = vmatmul.msk.f32.gmra.mxu1 %vm182_vm1, %v111_v8  ;;  %4937 = vmatmul.msk.f32.gmra.mxu2 %vm182_vm1, %v1051_v27  ;;  %v1052_v8 = vld [vmem:[%s8557_s0 + $0x21a] sm:$0xff]  ;;  %v6170_v51 = vpop.f32.mrf.mxu0 }
 0x1ec   :  { %8660 = vst [vmem:[#allocation58_spill] sm:$0xff] %v6170_v51  ;;  %v114_v51 = vld [vmem:[%s8557_s0 + $0x230] sm:$0xff] }
 0x1ee   :  { %v6156_v62 = vpop.f32.mrf.mxu2 }
 0x1ef   :  { %8657 = vst [vmem:[#allocation55_spill] sm:$0xff] %v6156_v62  ;;  %v113_v62 = vld [vmem:[%s8557_s0 + $0x228] sm:$0xff] }
 0x1f0   :  { %v6158_v39 = vpop.f32.mrf.mxu1 }
 0x1f1   :  { %8658 = vst [vmem:[#allocation56_spill] sm:$0xff] %v6158_v39  ;;  %v1053_v39 = vld [vmem:[%s8557_s0 + $0x222] sm:$0xff] }
 0x1f3   :  { %4873 = vmatmul.msk.f32.gmra.mxu1 %vm182_vm1, %v112_v36  ;;  %4938 = vmatmul.msk.f32.gmra.mxu2 %vm182_vm1, %v1052_v8 }
 0x1f6   :  { %v6168_v27 = vpop.f32.mrf.mxu2 }
 0x1f7   :  { %8659 = vst [vmem:[#allocation57_spill] sm:$0xff] %v6168_v27  ;;  %v6189_v27 = vpop.f32.mrf.mxu0 }
 0x1f8   :  { %v6172_v9 = vpop.f32.mrf.mxu1  ;;  %8664 = vst [vmem:[#allocation62_spill] sm:$0xff] %v6189_v27 }
 0x1f9   :  { %8661 = vst [vmem:[#allocation59_spill] sm:$0xff] %v6172_v9  ;;  %v1054_v9 = vld [vmem:[%s8557_s0 + $0x22a] sm:$0xff] }
 0x1fb   :  { %4939 = vmatmul.msk.f32.gmra.mxu2 %vm182_vm1, %v1053_v39  ;;  %4874 = vmatmul.msk.f32.gmra.mxu1 %vm182_vm1, %v113_v62 }
 0x1fe   :  { %v6182_v36 = vpop.f32.mrf.mxu2 }
 0x1ff   :  { %8662 = vst [vmem:[#allocation60_spill] sm:$0xff] %v6182_v36  ;;  %v1055_v36 = vld [vmem:[%s8557_s0 + $0x232] sm:$0xff] }
 0x200   :  { %v6184_v8 = vpop.f32.mrf.mxu1 }
 0x201   :  { %8663 = vst [vmem:[#allocation61_spill] sm:$0xff] %v6184_v8  ;;  %v6203_v8 = vpop.f32.mrf.mxu0 }
 0x202   :  { %8667 = vst [vmem:[#allocation65_spill] sm:$0xff] %v6203_v8 }
 0x203   :  { %4940 = vmatmul.msk.f32.gmra.mxu2 %vm182_vm1, %v1054_v9  ;;  %4875 = vmatmul.msk.f32.gmra.mxu1 %vm182_vm1, %v114_v51  ;;  %v1662_v9 = vmul.f32 %v5529_v14, %v5529_v14  ;;  %v1661_v51 = vmul.f32 %v5515_v6, %v5515_v6 }
 0x206   :  { %v6196_v39 = vpop.f32.mrf.mxu2 }
 0x207   :  { %8665 = vst [vmem:[#allocation63_spill] sm:$0xff] %v6196_v39  ;;  %v1528_v39 = vsel %vm1526_vm2, %v5529_v14, 0.0  ;;  %v1725_v14 = vsel %vm1526_vm2, %v1661_v51, 0.0  ;;  %v1666_v51 = vmul.f32 %v5585_v46, %v5585_v46 }
 0x208   :  { %v6198_v62 = vpop.f32.mrf.mxu1 }
 0x209   :  { %8666 = vst [vmem:[#allocation64_spill] sm:$0xff] %v6198_v62  ;;  %v1663_v62 = vmul.f32 %v5543_v22, %v5543_v22  ;;  %v6218_v8 = vpop.f32.mrf.mxu0 }
 0x20a   :  { %8670 = vst [vmem:[#allocation68_spill] sm:$0xff] %v6218_v8  ;;  %v1532_v8 = vsel %vm1526_vm2, %v5557_v30, 0.0  ;;  %v1536_v30 = vsel %vm1526_vm2, %v5585_v46, 0.0 }
 0x20b   :  { %4941 = vmatmul.msk.f32.gmra.mxu2 %vm182_vm1, %v1055_v36  ;;  %v1527_v36 = vsel %vm1526_vm2, %v5515_v6, 0.0  ;;  %v1728_v50 = vsel %vm1526_vm2, %v1663_v62, 0.0  ;;  %v1665_v6 = vmul.f32 %v5571_v38, %v5571_v38  ;;  %vm4563_vm1 = vcmask 1042434  }
 0x20c   :  { %v1529_v12 = vadd.f32 %v1528_v39, %v1527_v36  ;;  %v1534_v39 = vsel %vm1526_vm2, %v5571_v38, 0.0  ;;  %v1668_v38 = vmul.f32 %v5613_v1, %v5613_v1 }
 0x20e   :  { %v6206_v27 = vpop.f32.mrf.mxu2 }
 0x20f   :  { %8668 = vst [vmem:[#allocation66_spill] sm:$0xff] %v6206_v27  ;;  %v1530_v27 = vsel %vm1526_vm2, %v5543_v22, 0.0  ;;  %v1730_v22 = vsel %vm1526_vm2, %v1664_v60, 0.0  ;;  %v1734_v60 = vsel %vm1526_vm2, %v1666_v51, 0.0 }
 0x210   :  { %v6208_v56 = vpop.f32.mrf.mxu1  ;;  %v1531_v41 = vadd.f32 %v1530_v27, %v1529_v12  ;;  %v1538_v27 = vsel %vm1526_vm2, %v5599_v55, 0.0 }
 0x211   :  { %8669 = vst [vmem:[#allocation67_spill] sm:$0xff] %v6208_v56  ;;  %v1726_v56 = vsel %vm1526_vm2, %v1662_v9, 0.0 }
 0x212   :  { %v1727_v9 = vadd.f32 %v1726_v56, %v1725_v14  ;;  %v1533_v62 = vadd.f32 %v1532_v8, %v1531_v41  ;;  %v1667_v14 = vmul.f32 %v5599_v55, %v5599_v55  ;;  %v6252_v8 = vpop.f32.mrf.mxu0  ;;  %v1738_v55 = vsel %vm1526_vm2, %v1668_v38, 0.0 }
 0x214   :  { %v1729_v36 = vadd.f32 %v1728_v50, %v1727_v9  ;;  %v1535_v56 = vadd.f32 %v1534_v39, %v1533_v62  ;;  %v1736_v9 = vsel %vm1526_vm2, %v1667_v14, 0.0  ;;  %v1669_v39 = vmul.f32 %v5627_v10, %v5627_v10 }
 0x216   :  { %v6227_v52 = vpop.f32.mrf.mxu2  ;;  %v1731_v12 = vadd.f32 %v1730_v22, %v1729_v36  ;;  %v1537_v41 = vadd.f32 %v1536_v30, %v1535_v56  ;;  %v1540_v22 = vsel %vm1526_vm2, %v5613_v1, 0.0  ;;  %v1542_v30 = vsel %vm1526_vm2, %v5627_v10, 0.0 }
 0x217   :  { %8671 = vst [vmem:[#allocation69_spill] sm:$0xff] %v6227_v52  ;;  %v1732_v52 = vsel %vm1526_vm2, %v1665_v6, 0.0  ;;  %v1740_v56 = vsel %vm1526_vm2, %v1669_v39, 0.0  ;;  %v1544_v1 = vsel %vm1526_vm2, %v5641_v19, 0.0  ;;  %v1672_v10 = vmul.f32 %v5669_v37, %v5669_v37 }
 0x218   :  { %v6235_v23 = vpop.f32.mrf.mxu1  ;;  %v1733_v50 = vadd.f32 %v1732_v52, %v1731_v12  ;;  %v1539_v36 = vadd.f32 %v1538_v27, %v1537_v41  ;;  %v1670_v52 = vmul.f32 %v5641_v19, %v5641_v19  ;;  %v1546_v41 = vsel %vm1526_vm2, %v5655_v28, 0.0 }
 0x21a   :  { %v1735_v51 = vadd.f32 %v1734_v60, %v1733_v50  ;;  %v1541_v14 = vadd.f32 %v1540_v22, %v1539_v36  ;;  %v1671_v60 = vmul.f32 %v5655_v28, %v5655_v28  ;;  %v1742_v38 = vsel %vm1526_vm2, %v1670_v52, 0.0 }
 0x21b   :  { %v1548_v36 = vsel %vm1526_vm2, %v5669_v37, 0.0  ;;  %v1746_v28 = vsel %vm1526_vm2, %v1672_v10, 0.0  ;;  %v1676_v37 = vmul.f32 %v5725_v15, %v5725_v15 }
 0x21c   :  { %v1737_v12 = vadd.f32 %v1736_v9, %v1735_v51  ;;  %v1543_v50 = vadd.f32 %v1542_v30, %v1541_v14  ;;  %v1744_v39 = vsel %vm1526_vm2, %v1671_v60, 0.0 }
 0x21e   :  { %v6254_v6 = vpop.f32.mrf.mxu2  ;;  %v1739_v27 = vadd.f32 %v1738_v55, %v1737_v12  ;;  %v1545_v22 = vadd.f32 %v1544_v1, %v1543_v50  ;;  %v1673_v55 = vmul.f32 %v5683_v47, %v5683_v47  ;;  %v6285_v12 = vpop.f32.mrf.mxu0  ;;  %v1550_v1 = vsel %vm1526_vm2, %v5683_v47, 0.0 }
 0x21f   :  { %v1554_v47 = vsel %vm1526_vm2, %v5711_v4, 0.0 }
 0x220   :  { %v6261_v62 = vpop.f32.mrf.mxu1  ;;  %v1741_v9 = vadd.f32 %v1740_v56, %v1739_v27  ;;  %v1547_v52 = vadd.f32 %v1546_v41, %v1545_v22  ;;  %v1674_v56 = vmul.f32 %v5697_v58, %v5697_v58  ;;  %v1748_v50 = vsel %vm1526_vm2, %v1673_v55, 0.0 }
 0x221   :  { %v1675_v41 = vmul.f32 %v5711_v4, %v5711_v4 }
 0x222   :  { %v1743_v30 = vadd.f32 %v1742_v38, %v1741_v9  ;;  %v1549_v27 = vadd.f32 %v1548_v36, %v1547_v52  ;;  %v1552_v38 = vsel %vm1526_vm2, %v5697_v58, 0.0  ;;  %v1750_v10 = vsel %vm1526_vm2, %v1674_v56, 0.0 }
 0x223   :  { %v1752_v55 = vsel %vm1526_vm2, %v1675_v41, 0.0  ;;  %v1556_v52 = vsel %vm1526_vm2, %v5725_v15, 0.0 }
 0x224   :  { %v1745_v60 = vadd.f32 %v1744_v39, %v1743_v30  ;;  %v1551_v22 = vadd.f32 %v1550_v1, %v1549_v27  ;;  %v1754_v27 = vsel %vm1526_vm2, %v1676_v37, 0.0 }
 0x226   :  { %v6278_v51 = vpop.f32.mrf.mxu2  ;;  %v1747_v9 = vadd.f32 %v1746_v28, %v1745_v60  ;;  %v1553_v36 = vadd.f32 %v1552_v38, %v1551_v22  ;;  %v1677_v28 = vmul.f32 %v5739_v25, %v5739_v25  ;;  %v1678_v38 = vmul.f32 %v5753_v35, %v5753_v35  ;;  %v6318_v22 = vpop.f32.mrf.mxu0 }
 0x228   :  { %v6287_v14 = vpop.f32.mrf.mxu1  ;;  %v1749_v39 = vadd.f32 %v1748_v50, %v1747_v9  ;;  %v1555_v56 = vadd.f32 %v1554_v47, %v1553_v36  ;;  %v1558_v50 = vsel %vm1526_vm2, %v5739_v25, 0.0  ;;  %v1756_v15 = vsel %vm1526_vm2, %v1677_v28, 0.0 }
 0x229   :  { %v1679_v47 = vmul.f32 %v5767_v45, %v5767_v45  ;;  %v1758_v36 = vsel %vm1526_vm2, %v1678_v38, 0.0  ;;  %v1562_v25 = vsel %vm1526_vm2, %v5767_v45, 0.0 }
 0x22a   :  { %v1751_v1 = vadd.f32 %v1750_v10, %v1749_v39  ;;  %v1557_v41 = vadd.f32 %v1556_v52, %v1555_v56  ;;  %v1560_v10 = vsel %vm1526_vm2, %v5753_v35, 0.0  ;;  %v1564_v35 = vsel %vm1526_vm2, %v5781_v59, 0.0 }
 0x22b   :  { %v1760_v28 = vsel %vm1526_vm2, %v1679_v47, 0.0 }
 0x22c   :  { %v1753_v9 = vadd.f32 %v1752_v55, %v1751_v1  ;;  %v1559_v37 = vadd.f32 %v1558_v50, %v1557_v41  ;;  %v1680_v55 = vmul.f32 %v5781_v59, %v5781_v59  ;;  %v1568_v59 = vsel %vm1526_vm2, %v5809_v18, 0.0 }
 0x22e   :  { %v6304_v30 = vpop.f32.mrf.mxu2  ;;  %v1755_v39 = vadd.f32 %v1754_v27, %v1753_v9  ;;  %v1561_v1 = vadd.f32 %v1560_v10, %v1559_v37  ;;  %v1681_v27 = vmul.f32 %v5795_v7, %v5795_v7  ;;  %v1762_v41 = vsel %vm1526_vm2, %v1680_v55, 0.0 }
 0x22f   :  { %v1682_v10 = vmul.f32 %v5809_v18, %v5809_v18  ;;  %v8698_v18 = vld [vmem:[#allocation63_spill] sm:$0xff] }
 0x230   :  { %v6311_v60 = vpop.f32.mrf.mxu1  ;;  %v1757_v52 = vadd.f32 %v1756_v15, %v1755_v39  ;;  %v1563_v38 = vadd.f32 %v1562_v25, %v1561_v1  ;;  %v1566_v15 = vsel %vm1526_vm2, %v5795_v7, 0.0  ;;  %v1764_v37 = vsel %vm1526_vm2, %v1681_v27, 0.0  ;;  %v6349_v1 = vpop.f32.mrf.mxu0 }
 0x231   :  { %v1683_v25 = vmul.f32 %v5823_v31, %v5823_v31  ;;  %v1766_v55 = vsel %vm1526_vm2, %v1682_v10, 0.0  ;;  %v1570_v7 = vsel %vm1526_vm2, %v5823_v31, 0.0 }
 0x232   :  { %v1759_v50 = vadd.f32 %v1758_v36, %v1757_v52  ;;  %v1565_v47 = vadd.f32 %v1564_v35, %v1563_v38  ;;  %v1684_v35 = vmul.f32 %v5837_v42, %v5837_v42 }
 0x233   :  { %v1768_v38 = vsel %vm1526_vm2, %v1683_v25, 0.0 }
 0x234   :  { %v1761_v39 = vadd.f32 %v1760_v28, %v1759_v50  ;;  %v1567_v52 = vadd.f32 %v1566_v15, %v1565_v47  ;;  %v1685_v15 = vmul.f32 %v5851_v54, %v5851_v54  ;;  %v1770_v31 = vsel %vm1526_vm2, %v1684_v35, 0.0 }
 0x236   :  { %v6330_v56 = vpop.f32.mrf.mxu2  ;;  %v1763_v36 = vadd.f32 %v1762_v41, %v1761_v39  ;;  %v1569_v27 = vadd.f32 %v1568_v59, %v1567_v52  ;;  %v1572_v41 = vsel %vm1526_vm2, %v5837_v42, 0.0  ;;  %v1686_v59 = vmul.f32 %v5865_v5, %v5865_v5 }
 0x237   :  { %v1772_v52 = vsel %vm1526_vm2, %v1685_v15, 0.0  ;;  %v1576_v42 = vsel %vm1526_vm2, %v5865_v5, 0.0 }
 0x238   :  { %v6337_v9 = vpop.f32.mrf.mxu1  ;;  %v1765_v28 = vadd.f32 %v1764_v37, %v1763_v36  ;;  %v1571_v10 = vadd.f32 %v1570_v7, %v1569_v27  ;;  %v1574_v37 = vsel %vm1526_vm2, %v5851_v54, 0.0  ;;  %v1687_v7 = vmul.f32 %v5879_v20, %v5879_v20 }
 0x239   :  { %v1774_v35 = vsel %vm1526_vm2, %v1686_v59, 0.0  ;;  %v1578_v27 = vsel %vm1526_vm2, %v5879_v20, 0.0  ;;  %v1688_v54 = vmul.f32 %v5893_v33, %v5893_v33 }
 0x23a   :  { %v1767_v39 = vadd.f32 %v1766_v55, %v1765_v28  ;;  %v1573_v25 = vadd.f32 %v1572_v41, %v1571_v10  ;;  %v1776_v10 = vsel %vm1526_vm2, %v1687_v7, 0.0 }
 0x23b   :  { %v1778_v20 = vsel %vm1526_vm2, %v1688_v54, 0.0  ;;  %v1692_v54 = vmul.f32 %v5949_v29, %v5949_v29 }
 0x23c   :  { %v1769_v36 = vadd.f32 %v1768_v38, %v1767_v39  ;;  %v1575_v28 = vadd.f32 %v1574_v37, %v1573_v25  ;;  %v6380_v39 = vpop.f32.mrf.mxu0  ;;  %v1689_v37 = vmul.f32 %v5907_v48, %v5907_v48 }
 0x23e   :  { %v6356_v50 = vpop.f32.mrf.mxu2  ;;  %v1771_v55 = vadd.f32 %v1770_v31, %v1769_v36  ;;  %v1577_v41 = vadd.f32 %v1576_v42, %v1575_v28  ;;  %v1580_v31 = vsel %vm1526_vm2, %v5893_v33, 0.0  ;;  %v1582_v42 = vsel %vm1526_vm2, %v5907_v48, 0.0 }
 0x23f   :  { %v1780_v28 = vsel %vm1526_vm2, %v1689_v37, 0.0  ;;  %v1584_v33 = vsel %vm1526_vm2, %v5921_v63, 0.0  ;;  %v1586_v48 = vsel %vm1526_vm2, %v5935_v13, 0.0 }
 0x240   :  { %v6363_v47 = vpop.f32.mrf.mxu1  ;;  %v1773_v38 = vadd.f32 %v1772_v52, %v1771_v55  ;;  %v1579_v36 = vadd.f32 %v1578_v27, %v1577_v41  ;;  %v1690_v52 = vmul.f32 %v5921_v63, %v5921_v63 }
 0x242   :  { %v1775_v59 = vadd.f32 %v1774_v35, %v1773_v38  ;;  %v1581_v7 = vadd.f32 %v1580_v31, %v1579_v36  ;;  %v1691_v35 = vmul.f32 %v5935_v13, %v5935_v13  ;;  %v1782_v41 = vsel %vm1526_vm2, %v1690_v52, 0.0 }
 0x243   :  { %v909_v52 = vadd.f32 %v5999_v21, %v5991_v11  ;;  %v1786_v13 = vsel %vm1526_vm2, %v1692_v54, 0.0  ;;  %v912_v11 = vadd.f32 %v6017_v34, %v6009_v26  ;;  %v1695_v54 = vmul.f32 %v5997_v17, %v5997_v17 }
 0x244   :  { %v1777_v55 = vadd.f32 %v1776_v10, %v1775_v59  ;;  %v1583_v38 = vadd.f32 %v1582_v42, %v1581_v7  ;;  %v906_v10 = vadd.f32 %v5981_v2, %v5973_v57  ;;  %v1693_v59 = vmul.f32 %v5963_v44, %v5963_v44  ;;  %v6418_v57 = vpop.f32.mrf.mxu0 }
 0x245   :  { %v1588_v42 = vsel %vm1526_vm2, %v5949_v29, 0.0  ;;  %v1590_v2 = vsel %vm1526_vm2, %v5963_v44, 0.0  ;;  %v918_v26 = vadd.f32 %v6053_v3, %v6045_v53 }
 0x246   :  { %v6382_v15 = vpop.f32.mrf.mxu2  ;;  %v1779_v27 = vadd.f32 %v1778_v20, %v1777_v55  ;;  %v1585_v37 = vadd.f32 %v1584_v33, %v1583_v38  ;;  %v1784_v20 = vsel %vm1526_vm2, %v1691_v35, 0.0  ;;  %v6427_v35 = vadd.f32 %v6014_v32, %v906_v10 }
 0x247   :  { %v1592_v38 = vsel %vm1526_vm2, %v5979_v0, 0.0  ;;  %v915_v32 = vadd.f32 %v6035_v49, %v6027_v40  ;;  %v1792_v49 = vsel %vm1526_vm2, %v1695_v54, 0.0 }
 0x248   :  { %v6389_v25 = vpop.f32.mrf.mxu1  ;;  %v1781_v31 = vadd.f32 %v1780_v28, %v1779_v27  ;;  %v1587_v7 = vadd.f32 %v1586_v48, %v1585_v37  ;;  %v1694_v28 = vmul.f32 %v5979_v0, %v5979_v0  ;;  %8672 = vst [vmem:[#allocation70_spill] sm:$0xff] %v6427_v35  ;;  %v1788_v27 = vsel %vm1526_vm2, %v1693_v59, 0.0  ;;  %v8689_v0 = vld [vmem:[#allocation56_spill] sm:$0xff] }
 0x249   :  { %v1594_v37 = vsel %vm1526_vm2, %v5997_v17, 0.0  ;;  %v1696_v59 = vmul.f32 %v6427_v35, %v6427_v35  ;;  %v1596_v53 = vsel %vm1526_vm2, %v6427_v35, 0.0 }
 0x24a   :  { %v1783_v55 = vadd.f32 %v1782_v41, %v1781_v31  ;;  %v1589_v48 = vadd.f32 %v1588_v42, %v1587_v7  ;;  %v6437_v41 = vadd.f32 %v6032_v43, %v909_v52  ;;  %v1790_v34 = vsel %vm1526_vm2, %v1694_v28, 0.0  ;;  %v8674_v52 = vld [vmem:[#allocation42_spill] sm:$0xff] }
 0x24c   :  { %v1785_v21 = vadd.f32 %v1784_v20, %v1783_v55  ;;  %8673 = vst [vmem:[#allocation71_spill] sm:$0xff] %v6437_v41  ;;  %v1591_v31 = vadd.f32 %v1590_v2, %v1589_v48  ;;  %v6449_v20 = vadd.f32 %v6050_v61, %v912_v11  ;;  %v1697_v3 = vmul.f32 %v6437_v41, %v6437_v41  ;;  %v8675_v2 = vld [vmem:[#allocation43_spill] sm:$0xff]  ;;  %v8676_v48 = vld [vmem:[#allocation44_spill] sm:$0xff] }
 0x24d   :  { %v6461_v55 = vadd.f32 %v8674_v52, %v915_v32  ;;  %v6464_v28 = vadd.f32 %v8675_v2, %v918_v26  ;;  %v6478_v26 = vpop.f32.mrf.mxu0 }
 0x24e   :  { %v6410_v36 = vpop.f32.mrf.mxu2  ;;  %v1787_v10 = vadd.f32 %v1786_v13, %v1785_v21  ;;  %v1593_v42 = vadd.f32 %v1592_v38, %v1591_v31  ;;  %v921_v13 = vadd.f32 %v6071_v24, %v6066_v16  ;;  %v1794_v16 = vsel %vm1526_vm2, %v1696_v59, 0.0 }
 0x24f   :  { %v1598_v24 = vsel %vm1526_vm2, %v6437_v41, 0.0  ;;  %v1698_v21 = vmul.f32 %v6449_v20, %v6449_v20  ;;  %v1699_v59 = vmul.f32 %v6461_v55, %v6461_v55 }
 0x250   :  { %v6420_v33 = vpop.f32.mrf.mxu1  ;;  %v1789_v43 = vadd.f32 %v1788_v27, %v1787_v10  ;;  %v1595_v7 = vadd.f32 %v1594_v37, %v1593_v42  ;;  %v8677_v27 = vld [vmem:[#allocation45_spill] sm:$0xff]  ;;  %v8678_v10 = vld [vmem:[#allocation46_spill] sm:$0xff]  ;;  %v1600_v37 = vsel %vm1526_vm2, %v6449_v20, 0.0  ;;  %v8680_v42 = vld [vmem:[#allocation47_spill] sm:$0xff] }
 0x251   :  { %v924_v38 = vadd.f32 %v8677_v27, %v8676_v48  ;;  %v6476_v31 = vadd.f32 %v8678_v10, %v921_v13  ;;  %v1798_v13 = vsel %vm1526_vm2, %v1698_v21, 0.0  ;;  %v8683_v27 = vld [vmem:[#allocation50_spill] sm:$0xff]  ;;  %v1604_v21 = vsel %vm1526_vm2, %v6464_v28, 0.0 }
 0x252   :  { %v1791_v61 = vadd.f32 %v1790_v34, %v1789_v43  ;;  %v1597_v32 = vadd.f32 %v1596_v53, %v1595_v7  ;;  %v1796_v34 = vsel %vm1526_vm2, %v1697_v3, 0.0  ;;  %v8679_v43 = vld [vmem:[#allocation48_spill] sm:$0xff]  ;;  %v1602_v53 = vsel %vm1526_vm2, %v6461_v55, 0.0  ;;  %v8681_v3 = vld [vmem:[#allocation49_spill] sm:$0xff]  ;;  %v8682_v7 = vld [vmem:[#allocation51_spill] sm:$0xff] }
 0x253   :  { %v927_v52 = vadd.f32 %v8680_v42, %v8679_v43  ;;  %v930_v10 = vadd.f32 %v8683_v27, %v8682_v7  ;;  %v8686_v42 = vld [vmem:[#allocation53_spill] sm:$0xff]  ;;  %v8688_v27 = vld [vmem:[#allocation58_spill] sm:$0xff] }
 0x254   :  { %v1793_v54 = vadd.f32 %v1792_v49, %v1791_v61  ;;  %v1599_v48 = vadd.f32 %v1598_v24, %v1597_v32  ;;  %v1700_v49 = vmul.f32 %v6464_v28, %v6464_v28  ;;  %v6493_v61 = vadd.f32 %v8681_v3, %v924_v38  ;;  %v8684_v32 = vld [vmem:[#allocation52_spill] sm:$0xff]  ;;  %v8685_v38 = vld [vmem:[#allocation54_spill] sm:$0xff] }
 0x255   :  { %v6505_v43 = vadd.f32 %v8684_v32, %v927_v52  ;;  %v933_v3 = vadd.f32 %v8686_v42, %v8685_v38  ;;  %v936_v52 = vadd.f32 %v8689_v0, %v8688_v27  ;;  %v8692_v42 = vld [vmem:[#allocation59_spill] sm:$0xff] }
 0x256   :  { %v6453_v40 = vpop.f32.mrf.mxu2  ;;  %v1795_v2 = vadd.f32 %v1794_v16, %v1793_v54  ;;  %v1601_v35 = vadd.f32 %v1600_v37, %v1599_v48  ;;  %v1701_v16 = vmul.f32 %v6476_v31, %v6476_v31  ;;  %v1800_v54 = vsel %vm1526_vm2, %v1699_v59, 0.0  ;;  %v8687_v59 = vld [vmem:[#allocation55_spill] sm:$0xff] }
 0x257   :  { %v1606_v37 = vsel %vm1526_vm2, %v6476_v31, 0.0  ;;  %v6515_v48 = vadd.f32 %v8687_v59, %v930_v10  ;;  %v8691_v10 = vld [vmem:[#allocation62_spill] sm:$0xff] }
 0x258   :  { %v6466_v11 = vpop.f32.mrf.mxu1  ;;  %v1797_v41 = vadd.f32 %v1796_v34, %v1795_v2  ;;  %v1603_v7 = vadd.f32 %v1602_v53, %v1601_v35  ;;  %v1802_v34 = vsel %vm1526_vm2, %v1700_v49, 0.0  ;;  %v1702_v2 = vmul.f32 %v6493_v61, %v6493_v61 }
 0x259   :  { %v1804_v38 = vsel %vm1526_vm2, %v1701_v16, 0.0  ;;  %v1608_v35 = vsel %vm1526_vm2, %v6493_v61, 0.0  ;;  %v1703_v49 = vmul.f32 %v6505_v43, %v6505_v43  ;;  %v939_v59 = vadd.f32 %v8692_v42, %v8691_v10  ;;  %v6533_v16 = vpop.f32.mrf.mxu0  ;;  %v8695_v10 = vld [vmem:[#allocation60_spill] sm:$0xff] }
 0x25a   :  { %v1799_v17 = vadd.f32 %v1798_v13, %v1797_v41  ;;  %v1605_v44 = vadd.f32 %v1604_v21, %v1603_v7  ;;  %v8690_v13 = vld [vmem:[#allocation57_spill] sm:$0xff]  ;;  %v5012_v7 = vld [vmem:[%s8561_s4 + $0x50] sm:$0xff]  ;;  %v1806_v27 = vsel %vm1526_vm2, %v1702_v2, 0.0  ;;  %v1612_v2 = vsel %vm1526_vm2, %v6515_v48, 0.0 }
 0x25b   :  { %v6527_v53 = vadd.f32 %v8690_v13, %v933_v3  ;;  %v1610_v3 = vsel %vm1526_vm2, %v6505_v43, 0.0  ;;  %v1704_v13 = vmul.f32 %v6515_v48, %v6515_v48  ;;  %2985 = vmatpush.msrb.mxu0 %v5012_v7  ;;  %v8697_v42 = vld [vmem:[#allocation64_spill] sm:$0xff]  ;;  %v1808_v63 = vsel %vm1526_vm2, %v1703_v49, 0.0 }
 0x25c   :  { %v1801_v32 = vadd.f32 %v1800_v54, %v1799_v17  ;;  %v1607_v0 = vadd.f32 %v1606_v37, %v1605_v44  ;;  %v8693_v17 = vld [vmem:[#allocation65_spill] sm:$0xff]  ;;  %v6556_v45 = vadd.f32 %v8698_v18, %v939_v59 }
 0x25d   :  { %v8694_v54 = vld [vmem:[#allocation61_spill] sm:$0xff]  ;;  %v1705_v5 = vmul.f32 %v6527_v53, %v6527_v53 }
 0x25e   :  { %v6499_v24 = vpop.f32.mrf.mxu2  ;;  %v1803_v29 = vadd.f32 %v1802_v34, %v1801_v32  ;;  %v942_v21 = vadd.f32 %v8694_v54, %v8693_v17  ;;  %v6544_v34 = vadd.f32 %v8695_v10, %v936_v52  ;;  %v1609_v37 = vadd.f32 %v1608_v35, %v1607_v0  ;;  %v8696_v32 = vld [vmem:[#allocation68_spill] sm:$0xff]  ;;  %v8700_v10 = vld [vmem:[#allocation67_spill] sm:$0xff]  ;;  %v8701_v18 = vld [vmem:[#allocation69_spill] sm:$0xff] }
 0x25f   :  { %v945_v17 = vadd.f32 %v8697_v42, %v8696_v32  ;;  %v1810_v35 = vsel %vm1526_vm2, %v1704_v13, 0.0  ;;  %v1614_v0 = vsel %vm1526_vm2, %v6527_v53, 0.0  ;;  %v948_v32 = vadd.f32 %v8700_v10, %v6252_v8 }
 0x260   :  { %v6520_v41 = vpop.f32.mrf.mxu1  ;;  %v1805_v44 = vadd.f32 %v1804_v38, %v1803_v29  ;;  %v1611_v7 = vadd.f32 %v1610_v3, %v1609_v37  ;;  %v8699_v29 = vld [vmem:[#allocation66_spill] sm:$0xff]  ;;  %v1706_v49 = vmul.f32 %v6544_v34, %v6544_v34  ;;  %v1707_v3 = vmul.f32 %v6556_v45, %v6556_v45 }
 0x261   :  { %v6559_v38 = vadd.f32 %v8699_v29, %v942_v21  ;;  %v6569_v59 = vadd.f32 %v8701_v18, %v945_v17  ;;  %v1616_v21 = vsel %vm1526_vm2, %v6544_v34, 0.0  ;;  %v951_v13 = vadd.f32 %v6235_v23, %v6285_v12  ;;  %v567_v12 = vpop.f32.mrf.mxu0 }
 0x262   :  { %v1807_v52 = vadd.f32 %v1806_v27, %v1805_v44  ;;  %v1613_v4 = vadd.f32 %v1612_v2, %v1611_v7  ;;  %v1812_v27 = vsel %vm1526_vm2, %v1705_v5, 0.0  ;;  %v1814_v17 = vsel %vm1526_vm2, %v1706_v49, 0.0 }
 0x263   :  { %v1618_v5 = vsel %vm1526_vm2, %v6556_v45, 0.0  ;;  %v6586_v2 = vadd.f32 %v6254_v6, %v948_v32  ;;  %v6598_v49 = vadd.f32 %v6278_v51, %v951_v13  ;;  %v957_v6 = vadd.f32 %v6287_v14, %v6349_v1 }
 0x264   :  { %v1809_v42 = vadd.f32 %v1808_v63, %v1807_v52  ;;  %v1615_v37 = vadd.f32 %v1614_v0, %v1613_v4  ;;  %v1708_v63 = vmul.f32 %v6559_v38, %v6559_v38  ;;  %v954_v52 = vadd.f32 %v6261_v62, %v6318_v22 }
 0x265   :  { %v1709_v4 = vmul.f32 %v6569_v59, %v6569_v59  ;;  %v1620_v0 = vsel %vm1526_vm2, %v6559_v38, 0.0  ;;  %v1622_v32 = vsel %vm1526_vm2, %v6569_v59, 0.0  ;;  %v960_v51 = vadd.f32 %v6311_v60, %v6380_v39 }
 0x266   :  { %v6548_v54 = vpop.f32.mrf.mxu2  ;;  %v1811_v44 = vadd.f32 %v1810_v35, %v1809_v42  ;;  %v1617_v23 = vadd.f32 %v1616_v21, %v1615_v37  ;;  %v1816_v35 = vsel %vm1526_vm2, %v1707_v3, 0.0  ;;  %v1818_v10 = vsel %vm1526_vm2, %v1708_v63, 0.0 }
 0x267   :  { %v1710_v42 = vmul.f32 %v6586_v2, %v6586_v2  ;;  %v6608_v18 = vadd.f32 %v6304_v30, %v954_v52  ;;  %v1820_v14 = vsel %vm1526_vm2, %v1709_v4, 0.0  ;;  %v1624_v1 = vsel %vm1526_vm2, %v6586_v2, 0.0 }
 0x268   :  { %v6580_v8 = vpop.f32.mrf.mxu1  ;;  %v1813_v7 = vadd.f32 %v1812_v27, %v1811_v44  ;;  %v1619_v22 = vadd.f32 %v1618_v5, %v1617_v23  ;;  %v1711_v3 = vmul.f32 %v6598_v49, %v6598_v49  ;;  %v6618_v13 = vadd.f32 %v6330_v56, %v957_v6 }
 0x269   :  { %v963_v30 = vadd.f32 %v6337_v9, %v6418_v57  ;;  %v966_v60 = vadd.f32 %v6363_v47, %v6478_v26  ;;  %v1822_v39 = vsel %vm1526_vm2, %v1710_v42, 0.0  ;;  %v1626_v63 = vsel %vm1526_vm2, %v6598_v49, 0.0  ;;  %v570_v6 = vpop.f32.mrf.mxu0 }
 0x26a   :  { %v1815_v62 = vadd.f32 %v1814_v17, %v1813_v7  ;;  %v1621_v21 = vadd.f32 %v1620_v0, %v1619_v22  ;;  %v1712_v17 = vmul.f32 %v6608_v18, %v6608_v18  ;;  %v6630_v5 = vadd.f32 %v6356_v50, %v960_v51 }
 0x26b   :  { %v969_v9 = vadd.f32 %v6389_v25, %v6533_v16  ;;  %v1824_v47 = vsel %vm1526_vm2, %v1711_v3, 0.0  ;;  %v1628_v26 = vsel %vm1526_vm2, %v6608_v18, 0.0  ;;  %v1713_v23 = vmul.f32 %v6618_v13, %v6618_v13  ;;  %v582_v3 = vpop.f32.mrf.mxu3 }
 0x26c   :  { %v1817_v27 = vadd.f32 %v1816_v35, %v1815_v62  ;;  %v1623_v37 = vadd.f32 %v1622_v32, %v1621_v21  ;;  %v6640_v4 = vadd.f32 %v6382_v15, %v963_v30  ;;  %v6643_v0 = vadd.f32 %v6410_v36, %v966_v60 }
 0x26d   :  { %v1826_v25 = vsel %vm1526_vm2, %v1712_v17, 0.0  ;;  %v1630_v16 = vsel %vm1526_vm2, %v6618_v13, 0.0  ;;  %v1714_v62 = vmul.f32 %v6630_v5, %v6630_v5  ;;  %v972_v22 = vadd.f32 %v6420_v33, %v567_v12  ;;  %v8702_v17 = vld [vmem:[#allocation7_spill] sm:$0xff] }
 0x26e   :  { %v6592_v29 = vpop.f32.mrf.mxu2  ;;  %v1819_v44 = vadd.f32 %v1818_v10, %v1817_v27  ;;  %v1625_v52 = vadd.f32 %v1624_v1, %v1623_v37  ;;  %v6652_v15 = vadd.f32 %v6453_v40, %v969_v9  ;;  %v1828_v42 = vsel %vm1526_vm2, %v1713_v23, 0.0 }
 0x26f   :  { %v1632_v36 = vsel %vm1526_vm2, %v6630_v5, 0.0  ;;  %v1715_v51 = vmul.f32 %v6640_v4, %v6640_v4  ;;  %v975_v27 = vadd.f32 %v6466_v11, %v570_v6  ;;  %v1716_v33 = vmul.f32 %v6643_v0, %v6643_v0 }
 0x270   :  { %v1821_v56 = vadd.f32 %v1820_v14, %v1819_v44  ;;  %v983_v57 = vpop.f32.mrf.mxu1  ;;  %v1627_v35 = vadd.f32 %v1626_v63, %v1625_v52  ;;  %v1830_v12 = vsel %vm1526_vm2, %v1714_v62, 0.0  ;;  %v1634_v40 = vsel %vm1526_vm2, %v6640_v4, 0.0 }
 0x271   :  { %v6666_v1 = vadd.f32 %v6499_v24, %v972_v22  ;;  %v1717_v37 = vmul.f32 %v6652_v15, %v6652_v15  ;;  %v1636_v63 = vsel %vm1526_vm2, %v6643_v0, 0.0  ;;  %v6676_v52 = vadd.f32 %v6548_v54, %v975_v27  ;;  %v8704_v22 = vld [vmem:[#allocation9_spill] sm:$0xff] }
 0x272   :  { %v1823_v50 = vadd.f32 %v1822_v39, %v1821_v56  ;;  %v1629_v32 = vadd.f32 %v1628_v26, %v1627_v35  ;;  %v1832_v39 = vsel %vm1526_vm2, %v1715_v51, 0.0  ;;  %v978_v56 = vadd.f32 %v6520_v41, %v8702_v17 }
 0x273   :  { %v1638_v26 = vsel %vm1526_vm2, %v6652_v15, 0.0  ;;  %v1718_v23 = vmul.f32 %v6666_v1, %v6666_v1  ;;  %v1836_v54 = vsel %vm1526_vm2, %v1717_v37, 0.0  ;;  %v1719_v62 = vmul.f32 %v6676_v52, %v6676_v52  ;;  %v585_v37 = vpop.f32.mrf.mxu3 }
 0x274   :  { %v1825_v10 = vadd.f32 %v1824_v47, %v1823_v50  ;;  %v1631_v14 = vadd.f32 %v1630_v16, %v1629_v32  ;;  %v1834_v47 = vsel %vm1526_vm2, %v1716_v33, 0.0  ;;  %v8703_v50 = vld [vmem:[#allocation8_spill] sm:$0xff]  ;;  %v6686_v6 = vadd.f32 %v6592_v29, %v978_v56 }
 0x275   :  { %v981_v35 = vadd.f32 %v6580_v8, %v8703_v50  ;;  %v1640_v16 = vsel %vm1526_vm2, %v6666_v1, 0.0  ;;  %v1838_v29 = vsel %vm1526_vm2, %v1718_v23, 0.0  ;;  %v1642_v51 = vsel %vm1526_vm2, %v6676_v52, 0.0 }
 0x276   :  { %v1450_v7 = vpop.f32.mrf.mxu2  ;;  %v1827_v21 = vadd.f32 %v1826_v25, %v1825_v10  ;;  %v1633_v44 = vadd.f32 %v1632_v36, %v1631_v14  ;;  %v984_v10 = vadd.f32 %v983_v57, %v8704_v22  ;;  %v1720_v27 = vmul.f32 %v6686_v6, %v6686_v6 }
 0x277   :  { %v6694_v32 = vadd.f32 %v1450_v7, %v981_v35  ;;  %v1840_v57 = vsel %vm1526_vm2, %v1719_v62, 0.0  ;;  %v1644_v7 = vsel %vm1526_vm2, %v6686_v6, 0.0 }
 0x278   :  { %v1829_v30 = vadd.f32 %v1828_v42, %v1827_v21  ;;  %v986_v60 = vpop.f32.mrf.mxu1  ;;  %v1635_v9 = vadd.f32 %v1634_v40, %v1633_v44 }
 0x279   :  { %v987_v42 = vadd.f32 %v986_v60, %v582_v3  ;;  %v1721_v40 = vmul.f32 %v6694_v32, %v6694_v32 }
 0x27a   :  { %v1831_v24 = vadd.f32 %v1830_v12, %v1829_v30  ;;  %v1637_v25 = vadd.f32 %v1636_v63, %v1635_v9 }
 0x27c   :  { %v1833_v41 = vadd.f32 %v1832_v39, %v1831_v24  ;;  %v1639_v8 = vadd.f32 %v1638_v26, %v1637_v25  ;;  %v1646_v39 = vsel %vm1526_vm2, %v6694_v32, 0.0  ;;  %v1844_v24 = vsel %vm1526_vm2, %v1721_v40, 0.0 }
 0x27e   :  { %v1453_v11 = vpop.f32.mrf.mxu2  ;;  %v1835_v36 = vadd.f32 %v1834_v47, %v1833_v41  ;;  %v1641_v33 = vadd.f32 %v1640_v16, %v1639_v8 }
 0x27f   :  { %v6701_v21 = vadd.f32 %v1453_v11, %v984_v10  ;;  %v1842_v11 = vsel %vm1526_vm2, %v1720_v27, 0.0 }
 0x280   :  { %v1837_v14 = vadd.f32 %v1836_v54, %v1835_v36  ;;  %v1643_v44 = vadd.f32 %v1642_v51, %v1641_v33  ;;  %v989_v60 = vpop.f32.mrf.mxu1 }
 0x281   :  { %v1722_v63 = vmul.f32 %v6701_v21, %v6701_v21  ;;  %v1648_v9 = vsel %vm1526_vm2, %v6701_v21, 0.0  ;;  %v990_v26 = vadd.f32 %v989_v60, %v585_v37 }
 0x282   :  { %v1839_v30 = vadd.f32 %v1838_v29, %v1837_v14  ;;  %v1645_v56 = vadd.f32 %v1644_v7, %v1643_v44 }
 0x283   :  { %v1846_v35 = vsel %vm1526_vm2, %v1722_v63, 0.0 }
 0x284   :  { %v1841_v17 = vadd.f32 %v1840_v57, %v1839_v30  ;;  %v1647_v50 = vadd.f32 %v1646_v39, %v1645_v56 }
 0x286   :  { %v1456_v12 = vpop.f32.mrf.mxu2  ;;  %v1843_v23 = vadd.f32 %v1842_v11, %v1841_v17  ;;  %v1649_v54 = vadd.f32 %v1648_v9, %v1647_v50 }
 0x287   :  { %v6708_v3 = vadd.f32 %v1456_v12, %v987_v42 }
 0x288   :  { %v1845_v25 = vadd.f32 %v1844_v24, %v1843_v23 }
 0x289   :  { %v1723_v47 = vmul.f32 %v6708_v3, %v6708_v3  ;;  %v1650_v41 = vsel %vm1526_vm2, %v6708_v3, 0.0 }
 0x28a   :  { %v1847_v10 = vadd.f32 %v1846_v35, %v1845_v25  ;;  %v1651_v42 = vadd.f32 %v1650_v41, %v1649_v54  ;;  %v1862_v54 = vld [vmem:[%s8559_s2] sm:$0x1] }
 0x28b   :  { %v1848_v62 = vsel %vm1526_vm2, %v1723_v47, 0.0 }
 0x28c   :  { %v1849_v29 = vadd.f32 %v1848_v62, %v1847_v10 }
 0x28e   :  { %v1459_v16 = vpop.f32.mrf.mxu2 }
 0x28f   :  { %v1525_v22 = vadd.f32 %v1459_v16, %v990_v26 }
 0x291   :  { %v1652_v36 = vsel %vm1526_vm2, %v1525_v22, 0.0  ;;  %v1724_v8 = vmul.f32 %v1525_v22, %v1525_v22 }
 0x292   :  { %v1653_v51 = vadd.f32 %v1652_v36, %v1651_v42  ;;  %v1875_v42 = vld [vmem:[%s8560_s3] sm:$0x1]  ;;  %s4736_s3 = sshll.u32 %s8572_s15, 4  ;;  %s4737_s3 = int_to_ptr.hbm [resolvable:$true] %s4736_s3 }
 0x293   :  { %v1850_v27 = vsel %vm1526_vm2, %v1724_v8, 0.0 }
 0x294   :  { %v1654_v14 = vrot.slane %v1653_v51, 4  ;;  %v1851_v33 = vadd.f32 %v1850_v27, %v1849_v29 }
 0x296   :  { %v1655_v12 = vadd.f32 %v1654_v14, %v1653_v51  ;;  %v1852_v57 = vrot.slane %v1851_v33, 4 }
 0x298   :  { %v1656_v7 = vrot.slane %v1655_v12, 2  ;;  %v1853_v40 = vadd.f32 %v1852_v57, %v1851_v33 }
 0x29a   :  { %v1657_v30 = vadd.f32 %v1656_v7, %v1655_v12  ;;  %v1854_v44 = vrot.slane %v1853_v40, 2  ;;  %v8705_v12 = vld [vmem:[#allocation10_spill] sm:$0xff]  ;;  %v8706_v7 = vld [vmem:[#allocation11_spill] sm:$0xff] }
 0x29c   :  { %v1658_v37 = vrot.slane %v1657_v30, 1  ;;  %v1855_v60 = vadd.f32 %v1854_v44, %v1853_v40 }
 0x29e   :  { %v1659_v11 = vadd.f32 %v1658_v37, %v1657_v30  ;;  %v1856_v39 = vrot.slane %v1855_v60, 1  ;;  %v8707_v30 = vld [vmem:[#allocation12_spill] sm:$0xff]  ;;  %v8708_v37 = vld [vmem:[#allocation13_spill] sm:$0xff] }
 0x2a0   :  { %v1660_v63 = vmul.f32 0.001953125, %v1659_v11  ;;  %v1857_v17 = vadd.f32 %v1856_v39, %v1855_v60 }
 0x2a2   :  { %v1858_v56 = vmul.f32 0.001953125, %v1857_v17  ;;  %v1859_v24 = vmul.f32 %v1660_v63, %v1660_v63 }
 0x2a4   :  { %v1860_v9 = vsub.f32 %v1858_v56, %v1859_v24  ;;  %v8711_v56 = vld [vmem:[#allocation16_spill] sm:$0xff] }
 0x2a6   :  { %v1861_v47 = vmax.f32 %v1860_v9, 0.0  ;;  %v8712_v9 = vld [vmem:[#allocation17_spill] sm:$0xff] }
 0x2a8   :  { %v1863_v26 = vadd.f32 1e-05, %v1861_v47 }
 0x2aa   :  { %5156 = vrsqrt.f32 %v1863_v26  ;;  %vm1870_vm4 = vweird.f32 %v1863_v26 }
 0x2b0   :  { %v5157_v23 = vpop.eup %5156 }
 0x2b1   :  { %v1865_v50 = vmul.f32 %v5157_v23, %v1863_v26  ;;  %vm1871_vm3 = vweird.f32 %v5157_v23 }
 0x2b2   :  { %vm1872_vm5 = vmor %vm1870_vm4, %vm1871_vm3  ;;  %vm4566_vm3 = vcmask 1043459   ;;  %vm4569_vm4 = vcmask 1044484  }
 0x2b3   :  { %v1866_v35 = vmul.f32 %v5157_v23, %v1865_v50 }
 0x2b5   :  { %v1867_v41 = vmul.f32 0.5, %v1866_v35 }
 0x2b7   :  { %v1868_v25 = vsub.f32 1.5, %v1867_v41 }
 0x2b9   :  { %v1869_v16 = vmul.f32 %v5157_v23, %v1868_v25 }
 0x2bb   :  { %v1873_v62 = vsel %vm1872_vm5, %v5157_v23, %v1869_v16  ;;  %vm4572_vm5 = vcmask 1045509  }
 0x2bc   :  { %v1874_v10 = vmul.f32 %v1873_v62, %v1862_v54 }
 0x2be   :  { %v1876_v36 = vmul.f32 %v1874_v10, %v1660_v63  ;;  %v6732_v8 = vperm.slane %v1874_v10, 0  ;;  %v8710_v63 = vld [vmem:[#allocation15_spill] sm:$0xff] }
 0x2c0   :  { %v1877_v29 = vsub.f32 %v1875_v42, %v1876_v36  ;;  %v1944_v51 = vmul.f32 %v6732_v8, %v1525_v22  ;;  %v1881_v57 = vmul.f32 %v6732_v8, %v8705_v12  ;;  %v1882_v40 = vmul.f32 %v6732_v8, %v8706_v7  ;;  %v8709_v22 = vld [vmem:[#allocation14_spill] sm:$0xff] }
 0x2c1   :  { %v1883_v44 = vmul.f32 %v6732_v8, %v8707_v30  ;;  %v1884_v60 = vmul.f32 %v6732_v8, %v8708_v37  ;;  %v1885_v11 = vmul.f32 %v6732_v8, %v8709_v22  ;;  %v1886_v39 = vmul.f32 %v6732_v8, %v5585_v46 }
 0x2c2   :  { %v6735_v27 = vperm.slane %v1877_v29, 0  ;;  %v1887_v17 = vmul.f32 %v6732_v8, %v8710_v63  ;;  %v6755_v24 = vmul.f32 %v6732_v8, %v8711_v56  ;;  %v6759_v47 = vmul.f32 %v6732_v8, %v8712_v9 }
 0x2c3   :  { %v6763_v26 = vmul.f32 %v6732_v8, %v5641_v19  ;;  %v1918_v23 = vmul.f32 %v6732_v8, %v6449_v20  ;;  %v1919_v46 = vmul.f32 %v6732_v8, %v6461_v55  ;;  %v1920_v50 = vmul.f32 %v6732_v8, %v6464_v28 }
 0x2c4   :  { %v2011_v14 = vadd.f32 %v6735_v27, %v1944_v51  ;;  %v1921_v35 = vmul.f32 %v6732_v8, %v6476_v31  ;;  %v1922_v41 = vmul.f32 %v6732_v8, %v6493_v61  ;;  %v1923_v25 = vmul.f32 %v6732_v8, %v6505_v43 }
 0x2c5   :  { %v1924_v19 = vmul.f32 %v6732_v8, %v6515_v48  ;;  %v1925_v20 = vmul.f32 %v6732_v8, %v6527_v53  ;;  %v1926_v55 = vmul.f32 %v6732_v8, %v6544_v34  ;;  %v1927_v28 = vmul.f32 %v6732_v8, %v6556_v45 }
 0x2c6   :  { %v2075_v33 = vmax.f32 %v2011_v14, 0.0  ;;  %v1928_v31 = vmul.f32 %v6732_v8, %v6559_v38  ;;  %v1929_v61 = vmul.f32 %v6732_v8, %v6569_v59  ;;  %v1930_v43 = vmul.f32 %v6732_v8, %v6586_v2 }
 0x2c7   :  { %v1931_v48 = vmul.f32 %v6732_v8, %v6598_v49  ;;  %v1932_v53 = vmul.f32 %v6732_v8, %v6608_v18  ;;  %v1933_v34 = vmul.f32 %v6732_v8, %v6618_v13  ;;  %v1934_v45 = vmul.f32 %v6732_v8, %v6630_v5 }
 0x2c8   :  { %2139 = vst.msk [vmem:[#allocation2 + $0x1f8] sm:$0xff] %vm1526_vm2, %v2075_v33  ;;  %v1935_v38 = vmul.f32 %v6732_v8, %v6640_v4  ;;  %v1936_v59 = vmul.f32 %v6732_v8, %v6643_v0  ;;  %v1937_v2 = vmul.f32 %v6732_v8, %v6652_v15  ;;  %v1938_v49 = vmul.f32 %v6732_v8, %v6666_v1 }
 0x2c9   :  { %v1939_v18 = vmul.f32 %v6732_v8, %v6676_v52  ;;  %v1940_v13 = vmul.f32 %v6732_v8, %v6686_v6  ;;  %v1941_v5 = vmul.f32 %v6732_v8, %v6694_v32  ;;  %v1942_v4 = vmul.f32 %v6732_v8, %v6701_v21 }
 0x2ca   :  { %v1943_v0 = vmul.f32 %v6732_v8, %v6708_v3  ;;  %v1948_v15 = vadd.f32 %v6735_v27, %v1881_v57  ;;  %v1949_v54 = vadd.f32 %v6735_v27, %v1882_v40  ;;  %v1950_v1 = vadd.f32 %v6735_v27, %v1883_v44 }
 0x2cb   :  { %v1951_v52 = vadd.f32 %v6735_v27, %v1884_v60  ;;  %v1952_v16 = vadd.f32 %v6735_v27, %v1885_v11  ;;  %v1953_v6 = vadd.f32 %v6735_v27, %v1886_v39  ;;  %v1954_v32 = vadd.f32 %v6735_v27, %v1887_v17 }
 0x2cc   :  { %v6825_v62 = vadd.f32 %v6735_v27, %v1918_v23  ;;  %v6828_v21 = vadd.f32 %v6735_v27, %v1919_v46  ;;  %v6831_v3 = vadd.f32 %v6735_v27, %v1920_v50  ;;  %v6834_v10 = vadd.f32 %v6735_v27, %v1921_v35 }
 0x2cd   :  { %v6837_v42 = vadd.f32 %v6735_v27, %v1922_v41  ;;  %v6840_v36 = vadd.f32 %v6735_v27, %v1923_v25  ;;  %v6843_v29 = vadd.f32 %v6735_v27, %v1924_v19  ;;  %v6846_v51 = vadd.f32 %v6735_v27, %v1925_v20  ;;  %v8713_v19 = vld [vmem:[#allocation18_spill] sm:$0xff] }
 0x2ce   :  { %v6849_v14 = vadd.f32 %v6735_v27, %v1926_v55  ;;  %v6852_v33 = vadd.f32 %v6735_v27, %v1927_v28  ;;  %v6855_v12 = vadd.f32 %v6735_v27, %v1928_v31  ;;  %v6858_v57 = vadd.f32 %v6735_v27, %v1929_v61  ;;  %v8714_v31 = vld [vmem:[#allocation19_spill] sm:$0xff] }
 0x2cf   :  { %v6861_v7 = vadd.f32 %v6735_v27, %v1930_v43  ;;  %v6864_v40 = vadd.f32 %v6735_v27, %v1931_v48  ;;  %v6867_v30 = vadd.f32 %v6735_v27, %v1932_v53  ;;  %v6870_v44 = vadd.f32 %v6735_v27, %v1933_v34 }
 0x2d0   :  { %v6873_v37 = vadd.f32 %v6735_v27, %v1934_v45  ;;  %v6876_v60 = vadd.f32 %v6735_v27, %v1935_v38  ;;  %v6879_v22 = vadd.f32 %v6735_v27, %v1936_v59  ;;  %v6882_v11 = vadd.f32 %v6735_v27, %v1937_v2 }
 0x2d1   :  { %v6885_v39 = vadd.f32 %v6735_v27, %v1938_v49  ;;  %v6888_v63 = vadd.f32 %v6735_v27, %v1939_v18  ;;  %v6891_v17 = vadd.f32 %v6735_v27, %v1940_v13  ;;  %v6894_v56 = vadd.f32 %v6735_v27, %v1941_v5  ;;  %v8717_v13 = vld [vmem:[#allocation22_spill] sm:$0xff] }
 0x2d2   :  { %v6897_v9 = vadd.f32 %v6735_v27, %v1942_v4  ;;  %v6900_v23 = vadd.f32 %v6735_v27, %v1943_v0  ;;  %v2012_v46 = vmax.f32 %v1948_v15, 0.0  ;;  %v1955_v50 = vadd.f32 %v6735_v27, %v6755_v24  ;;  %v8715_v24 = vld [vmem:[#allocation20_spill] sm:$0xff] }
 0x2d3   :  { %v2013_v35 = vmax.f32 %v1949_v54, 0.0  ;;  %v2014_v41 = vmax.f32 %v1950_v1, 0.0  ;;  %v2015_v25 = vmax.f32 %v1951_v52, 0.0  ;;  %v1891_v20 = vmul.f32 %v6732_v8, %v8713_v19  ;;  %v8719_v52 = vld [vmem:[#allocation24_spill] sm:$0xff] }
 0x2d4   :  { %v1956_v55 = vadd.f32 %v6735_v27, %v6759_v47  ;;  %v2016_v28 = vmax.f32 %v1952_v16, 0.0  ;;  %2076 = vst.msk [vmem:[#allocation2] sm:$0xff] %vm1526_vm2, %v2012_v46  ;;  %v1892_v61 = vmul.f32 %v6732_v8, %v8714_v31  ;;  %v1957_v43 = vadd.f32 %v6735_v27, %v6763_v26  ;;  %v8716_v26 = vld [vmem:[#allocation21_spill] sm:$0xff] }
 0x2d5   :  { %v2017_v48 = vmax.f32 %v1953_v6, 0.0  ;;  %2077 = vst.msk [vmem:[#allocation2 + $0x8] sm:$0xff] %vm1526_vm2, %v2013_v35  ;;  %v1893_v53 = vmul.f32 %v6732_v8, %v8715_v24  ;;  %v1958_v34 = vadd.f32 %v6735_v27, %v1891_v20  ;;  %v2018_v45 = vmax.f32 %v1954_v32, 0.0  ;;  %v8720_v46 = vld [vmem:[#allocation25_spill] sm:$0xff] }
 0x2d6   :  { %2078 = vst.msk [vmem:[#allocation2 + $0x10] sm:$0xff] %vm1526_vm2, %v2014_v41  ;;  %v1894_v47 = vmul.f32 %v6732_v8, %v5697_v58  ;;  %v1959_v38 = vadd.f32 %v6735_v27, %v1892_v61  ;;  %v2019_v59 = vmax.f32 %v1955_v50, 0.0  ;;  %v1895_v2 = vmul.f32 %v6732_v8, %v8716_v26  ;;  %v8718_v58 = vld [vmem:[#allocation23_spill] sm:$0xff]  ;;  %v8725_v26 = vld [vmem:[#allocation30_spill] sm:$0xff] }
 0x2d7   :  { %2079 = vst.msk [vmem:[#allocation2 + $0x18] sm:$0xff] %vm1526_vm2, %v2015_v25  ;;  %v1960_v49 = vadd.f32 %v6735_v27, %v1893_v53  ;;  %v2020_v18 = vmax.f32 %v1956_v55, 0.0  ;;  %v1896_v5 = vmul.f32 %v6732_v8, %v8717_v13  ;;  %v2021_v0 = vmax.f32 %v1957_v43, 0.0  ;;  %v8721_v25 = vld [vmem:[#allocation26_spill] sm:$0xff]  ;;  %v8726_v13 = vld [vmem:[#allocation31_spill] sm:$0xff] }
 0x2d8   :  { %2080 = vst.msk [vmem:[#allocation2 + $0x20] sm:$0xff] %vm1526_vm2, %v2016_v28  ;;  %v1961_v4 = vadd.f32 %v6735_v27, %v1894_v47  ;;  %v1897_v15 = vmul.f32 %v6732_v8, %v8718_v58  ;;  %v1962_v54 = vadd.f32 %v6735_v27, %v1895_v2  ;;  %v2022_v1 = vmax.f32 %v1958_v34, 0.0  ;;  %v8722_v28 = vld [vmem:[#allocation27_spill] sm:$0xff]  ;;  %v8727_v58 = vld [vmem:[#allocation32_spill] sm:$0xff] }
 0x2d9   :  { %2081 = vst.msk [vmem:[#allocation2 + $0x28] sm:$0xff] %vm1526_vm2, %v2017_v48  ;;  %v1898_v16 = vmul.f32 %v6732_v8, %v8719_v52  ;;  %v1963_v6 = vadd.f32 %v6735_v27, %v1896_v5  ;;  %v2023_v32 = vmax.f32 %v1959_v38, 0.0  ;;  %v1899_v50 = vmul.f32 %v6732_v8, %v8720_v46  ;;  %v8723_v48 = vld [vmem:[#allocation28_spill] sm:$0xff]  ;;  %v8728_v52 = vld [vmem:[#allocation33_spill] sm:$0xff]  ;;  %v8729_v46 = vld [vmem:[#allocation34_spill] sm:$0xff] }
 0x2da   :  { %2082 = vst.msk [vmem:[#allocation2 + $0x30] sm:$0xff] %vm1526_vm2, %v2018_v45  ;;  %v1964_v35 = vadd.f32 %v6735_v27, %v1897_v15  ;;  %v2024_v41 = vmax.f32 %v1960_v49, 0.0  ;;  %v1900_v19 = vmul.f32 %v6732_v8, %v8721_v25  ;;  %v2025_v55 = vmax.f32 %v1961_v4, 0.0  ;;  %v8724_v45 = vld [vmem:[#allocation29_spill] sm:$0xff]  ;;  %v8730_v25 = vld [vmem:[#allocation35_spill] sm:$0xff] }
 0x2db   :  { %2083 = vst.msk [vmem:[#allocation2 + $0x38] sm:$0xff] %vm1526_vm2, %v2019_v59  ;;  %v1965_v20 = vadd.f32 %v6735_v27, %v1898_v16  ;;  %v1901_v31 = vmul.f32 %v6732_v8, %v8722_v28  ;;  %v1966_v61 = vadd.f32 %v6735_v27, %v1899_v50  ;;  %v2026_v43 = vmax.f32 %v1962_v54, 0.0  ;;  %v8731_v28 = vld [vmem:[#allocation36_spill] sm:$0xff] }
 0x2dc   :  { %2084 = vst.msk [vmem:[#allocation2 + $0x40] sm:$0xff] %vm1526_vm2, %v2020_v18  ;;  %v1902_v24 = vmul.f32 %v6732_v8, %v8723_v48  ;;  %v1967_v53 = vadd.f32 %v6735_v27, %v1900_v19  ;;  %v2027_v34 = vmax.f32 %v1963_v6, 0.0  ;;  %v1903_v47 = vmul.f32 %v6732_v8, %v8724_v45  ;;  %v8732_v48 = vld [vmem:[#allocation37_spill] sm:$0xff]  ;;  %v8733_v45 = vld [vmem:[#allocation38_spill] sm:$0xff] }
 0x2dd   :  { %2085 = vst.msk [vmem:[#allocation2 + $0x48] sm:$0xff] %vm1526_vm2, %v2021_v0  ;;  %v1968_v38 = vadd.f32 %v6735_v27, %v1901_v31  ;;  %v2028_v59 = vmax.f32 %v1964_v35, 0.0  ;;  %v1904_v2 = vmul.f32 %v6732_v8, %v8725_v26  ;;  %v2029_v18 = vmax.f32 %v1965_v20, 0.0  ;;  %v8734_v26 = vld [vmem:[#allocation39_spill] sm:$0xff] }
 0x2de   :  { %2086 = vst.msk [vmem:[#allocation2 + $0x50] sm:$0xff] %vm1526_vm2, %v2022_v1  ;;  %v1969_v49 = vadd.f32 %v6735_v27, %v1902_v24  ;;  %v1905_v5 = vmul.f32 %v6732_v8, %v8726_v13  ;;  %v1970_v4 = vadd.f32 %v6735_v27, %v1903_v47  ;;  %v2030_v0 = vmax.f32 %v1966_v61, 0.0  ;;  %v8735_v13 = vld [vmem:[#allocation40_spill] sm:$0xff] }
 0x2df   :  { %2087 = vst.msk [vmem:[#allocation2 + $0x58] sm:$0xff] %vm1526_vm2, %v2023_v32  ;;  %v1906_v15 = vmul.f32 %v6732_v8, %v8727_v58  ;;  %v1971_v54 = vadd.f32 %v6735_v27, %v1904_v2  ;;  %v2031_v1 = vmax.f32 %v1967_v53, 0.0  ;;  %v1907_v16 = vmul.f32 %v6732_v8, %v8728_v52  ;;  %v8736_v58 = vld [vmem:[#allocation41_spill] sm:$0xff]  ;;  %v8737_v52 = vld [vmem:[#allocation70_spill] sm:$0xff] }
 0x2e0   :  { %2088 = vst.msk [vmem:[#allocation2 + $0x60] sm:$0xff] %vm1526_vm2, %v2024_v41  ;;  %v1972_v6 = vadd.f32 %v6735_v27, %v1905_v5  ;;  %v2032_v32 = vmax.f32 %v1968_v38, 0.0  ;;  %v1908_v50 = vmul.f32 %v6732_v8, %v8729_v46  ;;  %v2033_v41 = vmax.f32 %v1969_v49, 0.0  ;;  %v8738_v46 = vld [vmem:[#allocation71_spill] sm:$0xff] }
 0x2e1   :  { %2089 = vst.msk [vmem:[#allocation2 + $0x68] sm:$0xff] %vm1526_vm2, %v2025_v55  ;;  %v1973_v35 = vadd.f32 %v6735_v27, %v1906_v15  ;;  %v1909_v19 = vmul.f32 %v6732_v8, %v8730_v25  ;;  %v1974_v20 = vadd.f32 %v6735_v27, %v1907_v16  ;;  %v2034_v55 = vmax.f32 %v1970_v4, 0.0 }
 0x2e2   :  { %2090 = vst.msk [vmem:[#allocation2 + $0x70] sm:$0xff] %vm1526_vm2, %v2026_v43  ;;  %v1910_v31 = vmul.f32 %v6732_v8, %v8731_v28  ;;  %v1975_v61 = vadd.f32 %v6735_v27, %v1908_v50  ;;  %v2035_v43 = vmax.f32 %v1971_v54, 0.0  ;;  %v1911_v24 = vmul.f32 %v6732_v8, %v8732_v48  ;;  %v4944_v48 = vld [vmem:[%s8561_s4 + $0x30] sm:$0xff] }
 0x2e3   :  { %2091 = vst.msk [vmem:[#allocation2 + $0x78] sm:$0xff] %vm1526_vm2, %v2027_v34  ;;  %v1976_v53 = vadd.f32 %v6735_v27, %v1909_v19  ;;  %v2036_v34 = vmax.f32 %v1972_v6, 0.0  ;;  %v1912_v47 = vmul.f32 %v6732_v8, %v8733_v45  ;;  %v1913_v2 = vmul.f32 %v6732_v8, %v8734_v26  ;;  %v5010_v45 = vld [vmem:[%s8561_s4 + $0x40] sm:$0xff] }
 0x2e4   :  { %2092 = vst.msk [vmem:[#allocation2 + $0x80] sm:$0xff] %vm1526_vm2, %v2028_v59  ;;  %v1977_v38 = vadd.f32 %v6735_v27, %v1910_v31  ;;  %v2037_v59 = vmax.f32 %v1973_v35, 0.0  ;;  %v1978_v49 = vadd.f32 %v6735_v27, %v1911_v24  ;;  %v1914_v5 = vmul.f32 %v6732_v8, %v8735_v13  ;;  %v2206_v13 = vld [vmem:[#allocation2 + $0x11] ss:$2 sm:$0xff] }
 0x2e5   :  { %2093 = vst.msk [vmem:[#allocation2 + $0x88] sm:$0xff] %vm1526_vm2, %v2029_v18  ;;  %v2038_v18 = vmax.f32 %v1974_v20, 0.0  ;;  %v1979_v4 = vadd.f32 %v6735_v27, %v1912_v47  ;;  %v1915_v15 = vmul.f32 %v6732_v8, %v8736_v58  ;;  %v1980_v54 = vadd.f32 %v6735_v27, %v1913_v2  ;;  %v4942_v47 = vld [vmem:[%s8561_s4 + $0x20] sm:$0xff] }
 0x2e6   :  { %2094 = vst.msk [vmem:[#allocation2 + $0x90] sm:$0xff] %vm1526_vm2, %v2030_v0  ;;  %v2039_v0 = vmax.f32 %v1975_v61, 0.0  ;;  %v1916_v16 = vmul.f32 %v6732_v8, %v8737_v52  ;;  %v1981_v6 = vadd.f32 %v6735_v27, %v1914_v5  ;;  %v1917_v50 = vmul.f32 %v6732_v8, %v8738_v46  ;;  %v2144_v5 = vld [vmem:[#allocation2 + $0x20] ss:$2 sm:$0xff] }
 0x2e7   :  { %2095 = vst.msk [vmem:[#allocation2 + $0x98] sm:$0xff] %vm1526_vm2, %v2031_v1  ;;  %v2040_v1 = vmax.f32 %v1976_v53, 0.0  ;;  %v1982_v35 = vadd.f32 %v6735_v27, %v1915_v15  ;;  %v2043_v19 = vmax.f32 %v1979_v4, 0.0  ;;  %v2050_v24 = vmax.f32 %v6828_v21, 0.0  ;;  %v4943_v53 = vld [vmem:[%s8561_s4 + $0x28] sm:$0xff] }
 0x2e8   :  { %2096 = vst.msk [vmem:[#allocation2 + $0xa0] sm:$0xff] %vm1526_vm2, %v2032_v32  ;;  %v2041_v32 = vmax.f32 %v1977_v38, 0.0  ;;  %v1983_v25 = vadd.f32 %v6735_v27, %v1916_v16  ;;  %v1984_v20 = vadd.f32 %v6735_v27, %v1917_v50  ;;  %v2045_v28 = vmax.f32 %v1981_v6, 0.0  ;;  %v2148_v52 = vld [vmem:[#allocation2 + $0x40] ss:$2 sm:$0xff] }
 0x2e9   :  { %2097 = vst.msk [vmem:[#allocation2 + $0xa8] sm:$0xff] %vm1526_vm2, %v2033_v41  ;;  %v2042_v41 = vmax.f32 %v1978_v49, 0.0  ;;  %v2046_v31 = vmax.f32 %v1982_v35, 0.0  ;;  %v2049_v27 = vmax.f32 %v6825_v62, 0.0  ;;  %v5011_v62 = vld [vmem:[%s8561_s4 + $0x48] sm:$0xff]  ;;  %v2052_v21 = vmax.f32 %v6834_v10, 0.0 }
 0x2ea   :  { %2098 = vst.msk [vmem:[#allocation2 + $0xb0] sm:$0xff] %vm1526_vm2, %v2034_v55  ;;  %v2044_v55 = vmax.f32 %v1980_v54, 0.0  ;;  %v2047_v8 = vmax.f32 %v1983_v25, 0.0  ;;  %v2048_v61 = vmax.f32 %v1984_v20, 0.0  ;;  %2986 = vmatpush.msrb.mxu0 %v5011_v62  ;;  %v2054_v38 = vmax.f32 %v6840_v36, 0.0  ;;  %v2383_v10 = vld [vmem:[%s8561_s4 + $0x18] sm:$0xff] }
 0x2eb   :  { %2099 = vst.msk [vmem:[#allocation2 + $0xb8] sm:$0xff] %vm1526_vm2, %v2035_v43  ;;  %v4945_v43 = vld [vmem:[%s8561_s4 + $0x38] sm:$0xff]  ;;  %v2056_v26 = vmax.f32 %v6846_v51, 0.0  ;;  %v2058_v36 = vmax.f32 %v6852_v33, 0.0  ;;  %v2060_v2 = vmax.f32 %v6858_v57, 0.0  ;;  %v2061_v51 = vmax.f32 %v6861_v7, 0.0 }
 0x2ec   :  { %2100 = vst.msk [vmem:[#allocation2 + $0xc0] sm:$0xff] %vm1526_vm2, %v2036_v34  ;;  %2529 = vmatpush.msrb.mxu3 %v4945_v43  ;;  %v2051_v34 = vmax.f32 %v6831_v3, 0.0  ;;  %v2053_v3 = vmax.f32 %v6837_v42, 0.0  ;;  %2987 = vmatpush.msrb.mxu0 %v5010_v45  ;;  %v2057_v42 = vmax.f32 %v6849_v14, 0.0  ;;  %v2062_v14 = vmax.f32 %v6864_v40, 0.0 }
 0x2ed   :  { %2101 = vst.msk [vmem:[#allocation2 + $0xc8] sm:$0xff] %vm1526_vm2, %v2037_v59  ;;  %v2055_v59 = vmax.f32 %v6843_v29, 0.0  ;;  %v2059_v29 = vmax.f32 %v6855_v12, 0.0  ;;  %v2063_v33 = vmax.f32 %v6867_v30, 0.0  ;;  %v2064_v12 = vmax.f32 %v6870_v44, 0.0 }
 0x2ee   :  { %2102 = vst.msk [vmem:[#allocation2 + $0xd0] sm:$0xff] %vm1526_vm2, %v2038_v18  ;;  %2530 = vmatpush.msrb.mxu3 %v4944_v48  ;;  %v2065_v57 = vmax.f32 %v6873_v37, 0.0  ;;  %v2066_v7 = vmax.f32 %v6876_v60, 0.0  ;;  %v2067_v40 = vmax.f32 %v6879_v22, 0.0  ;;  %v2068_v30 = vmax.f32 %v6882_v11, 0.0 }
 0x2ef   :  { %2103 = vst.msk [vmem:[#allocation2 + $0xd8] sm:$0xff] %vm1526_vm2, %v2039_v0  ;;  %v2069_v44 = vmax.f32 %v6885_v39, 0.0  ;;  %v2070_v37 = vmax.f32 %v6888_v63, 0.0  ;;  %v2071_v60 = vmax.f32 %v6891_v17, 0.0  ;;  %v2072_v22 = vmax.f32 %v6894_v56, 0.0 }
 0x2f0   :  { %2104 = vst.msk [vmem:[#allocation2 + $0xe0] sm:$0xff] %vm1526_vm2, %v2040_v1  ;;  %2531 = vmatpush.msrb.mxu3 %v4943_v53  ;;  %v2140_v49 = vld [vmem:[#allocation2] ss:$2 sm:$0xff]  ;;  %v2204_v11 = vld [vmem:[#allocation2 + $0x1] ss:$2 sm:$0xff]  ;;  %v2073_v18 = vmax.f32 %v6897_v9, 0.0 }
 0x2f1   :  { %2105 = vst.msk [vmem:[#allocation2 + $0xe8] sm:$0xff] %vm1526_vm2, %v2041_v32  ;;  %v2142_v39 = vld [vmem:[#allocation2 + $0x10] ss:$2 sm:$0xff]  ;;  %v2074_v63 = vmax.f32 %v6900_v23, 0.0  ;;  %v2208_v17 = vld [vmem:[#allocation2 + $0x21] ss:$2 sm:$0xff]  ;;  %v2267_v4 = vmax.f32 %v2140_v49, %v2204_v11 }
 0x2f2   :  { %2106 = vst.msk [vmem:[#allocation2 + $0xf0] sm:$0xff] %vm1526_vm2, %v2042_v41  ;;  %2532 = vmatpush.msrb.mxu3 %v4942_v47  ;;  %v2146_v56 = vld [vmem:[#allocation2 + $0x30] ss:$2 sm:$0xff]  ;;  %v2210_v0 = vld [vmem:[#allocation2 + $0x31] ss:$2 sm:$0xff]  ;;  %v2268_v58 = vmax.f32 %v2142_v39, %v2206_v13  ;;  %v2269_v9 = vmax.f32 %v2144_v5, %v2208_v17  ;;  %v8607_v23 = vmov 0.0  }
 0x2f3   :  { %2107 = vst.msk [vmem:[#allocation2 + $0xf8] sm:$0xff] %vm1526_vm2, %v2043_v19  ;;  %v2270_v15 = vmax.f32 %v2146_v56, %v2210_v0  ;;  %v2212_v16 = vld [vmem:[#allocation2 + $0x41] ss:$2 sm:$0xff]  ;;  %v2150_v6 = vld [vmem:[#allocation2 + $0x50] ss:$2 sm:$0xff] }
 0x2f4   :  { %2108 = vst.msk [vmem:[#allocation2 + $0x100] sm:$0xff] %vm1526_vm2, %v2044_v55  ;;  %2738 = vmatpush.msra.mxu3 %v2383_v10  ;;  %v2214_v32 = vld [vmem:[#allocation2 + $0x51] ss:$2 sm:$0xff]  ;;  %v2152_v46 = vld [vmem:[#allocation2 + $0x60] ss:$2 sm:$0xff]  ;;  %v2271_v19 = vmax.f32 %v2148_v52, %v2212_v16 }
 0x2f5   :  { %2109 = vst.msk [vmem:[#allocation2 + $0x108] sm:$0xff] %vm1526_vm2, %v2045_v28  ;;  %v2216_v50 = vld [vmem:[#allocation2 + $0x61] ss:$2 sm:$0xff]  ;;  %v2154_v41 = vld [vmem:[#allocation2 + $0x70] ss:$2 sm:$0xff] }
 0x2f6   :  { %2110 = vst.msk [vmem:[#allocation2 + $0x110] sm:$0xff] %vm1526_vm2, %v2046_v31  ;;  %v2218_v20 = vld [vmem:[#allocation2 + $0x71] ss:$2 sm:$0xff]  ;;  %v2156_v55 = vld [vmem:[#allocation2 + $0x80] ss:$2 sm:$0xff]  ;;  %v2272_v31 = vmax.f32 %v2150_v6, %v2214_v32 }
 0x2f7   :  { %2111 = vst.msk [vmem:[#allocation2 + $0x118] sm:$0xff] %vm1526_vm2, %v2047_v8  ;;  %v2220_v28 = vld [vmem:[#allocation2 + $0x81] ss:$2 sm:$0xff]  ;;  %v2273_v8 = vmax.f32 %v2152_v46, %v2216_v50  ;;  %v2222_v43 = vld [vmem:[#allocation2 + $0x91] ss:$2 sm:$0xff] }
 0x2f8   :  { %2112 = vst.msk [vmem:[#allocation2 + $0x120] sm:$0xff] %vm1526_vm2, %v2048_v61  ;;  %v2158_v61 = vld [vmem:[#allocation2 + $0x90] ss:$2 sm:$0xff]  ;;  %v2160_v48 = vld [vmem:[#allocation2 + $0xa0] ss:$2 sm:$0xff]  ;;  %v2275_v53 = vmax.f32 %v2156_v55, %v2220_v28 }
 0x2f9   :  { %2113 = vst.msk [vmem:[#allocation2 + $0x128] sm:$0xff] %vm1526_vm2, %v2049_v27  ;;  %v2274_v27 = vmax.f32 %v2154_v41, %v2218_v20  ;;  %v2226_v62 = vld [vmem:[#allocation2 + $0xb1] ss:$2 sm:$0xff]  ;;  %v2164_v45 = vld [vmem:[#allocation2 + $0xc0] ss:$2 sm:$0xff]  ;;  %v2276_v47 = vmax.f32 %v2158_v61, %v2222_v43 }
 0x2fa   :  { %2114 = vst.msk [vmem:[#allocation2 + $0x130] sm:$0xff] %vm1526_vm2, %v2050_v24  ;;  %v2224_v24 = vld [vmem:[#allocation2 + $0xa1] ss:$2 sm:$0xff] }
 0x2fb   :  { %2115 = vst.msk [vmem:[#allocation2 + $0x138] sm:$0xff] %vm1526_vm2, %v2051_v34  ;;  %v2162_v34 = vld [vmem:[#allocation2 + $0xb0] ss:$2 sm:$0xff] }
 0x2fc   :  { %2116 = vst.msk [vmem:[#allocation2 + $0x140] sm:$0xff] %vm1526_vm2, %v2052_v21  ;;  %v2228_v21 = vld [vmem:[#allocation2 + $0xc1] ss:$2 sm:$0xff] }
 0x2fd   :  { %2117 = vst.msk [vmem:[#allocation2 + $0x148] sm:$0xff] %vm1526_vm2, %v2053_v3  ;;  %v2277_v3 = vmax.f32 %v2160_v48, %v2224_v24 }
 0x2fe   :  { %2118 = vst.msk [vmem:[#allocation2 + $0x150] sm:$0xff] %vm1526_vm2, %v2054_v38  ;;  %v2166_v38 = vld [vmem:[#allocation2 + $0xd0] ss:$2 sm:$0xff] }
 0x2ff   :  { %2119 = vst.msk [vmem:[#allocation2 + $0x158] sm:$0xff] %vm1526_vm2, %v2055_v59  ;;  %v2230_v59 = vld [vmem:[#allocation2 + $0xd1] ss:$2 sm:$0xff] }
 0x300   :  { %2120 = vst.msk [vmem:[#allocation2 + $0x160] sm:$0xff] %vm1526_vm2, %v2056_v26  ;;  %v2278_v26 = vmax.f32 %v2162_v34, %v2226_v62 }
 0x301   :  { %2121 = vst.msk [vmem:[#allocation2 + $0x168] sm:$0xff] %vm1526_vm2, %v2057_v42  ;;  %v2168_v42 = vld [vmem:[#allocation2 + $0xe0] ss:$2 sm:$0xff] }
 0x302   :  { %2122 = vst.msk [vmem:[#allocation2 + $0x170] sm:$0xff] %vm1526_vm2, %v2058_v36  ;;  %v2232_v36 = vld [vmem:[#allocation2 + $0xe1] ss:$2 sm:$0xff]  ;;  %v2178_v49 = vld [vmem:[#allocation2 + $0x130] ss:$2 sm:$0xff] }
 0x303   :  { %2123 = vst.msk [vmem:[#allocation2 + $0x178] sm:$0xff] %vm1526_vm2, %v2059_v29  ;;  %v2242_v11 = vld [vmem:[#allocation2 + $0x131] ss:$2 sm:$0xff] }
 0x304   :  { %2124 = vst.msk [vmem:[#allocation2 + $0x180] sm:$0xff] %vm1526_vm2, %v2060_v2  ;;  %v2279_v2 = vmax.f32 %v2164_v45, %v2228_v21  ;;  %v2244_v39 = vld [vmem:[#allocation2 + $0x141] ss:$2 sm:$0xff]  ;;  %v2286_v56 = vmax.f32 %v2178_v49, %v2242_v11  ;;  %v2382_v21 = vld [vmem:[%s8561_s4 + $0x10] sm:$0xff] }
 0x305   :  { %2125 = vst.msk [vmem:[#allocation2 + $0x188] sm:$0xff] %vm1526_vm2, %v2061_v51  ;;  %v2170_v51 = vld [vmem:[#allocation2 + $0xf0] ss:$2 sm:$0xff]  ;;  %2739 = vmatpush.msra.mxu3 %v2382_v21 }
 0x306   :  { %2126 = vst.msk [vmem:[#allocation2 + $0x190] sm:$0xff] %vm1526_vm2, %v2062_v14  ;;  %v2234_v14 = vld [vmem:[#allocation2 + $0xf1] ss:$2 sm:$0xff]  ;;  %v2182_v5 = vld [vmem:[#allocation2 + $0x150] ss:$2 sm:$0xff] }
 0x307   :  { %2127 = vst.msk [vmem:[#allocation2 + $0x198] sm:$0xff] %vm1526_vm2, %v2063_v33  ;;  %v2172_v33 = vld [vmem:[#allocation2 + $0x100] ss:$2 sm:$0xff]  ;;  %v2246_v17 = vld [vmem:[#allocation2 + $0x151] ss:$2 sm:$0xff] }
 0x308   :  { %2128 = vst.msk [vmem:[#allocation2 + $0x1a0] sm:$0xff] %vm1526_vm2, %v2064_v12  ;;  %v2236_v12 = vld [vmem:[#allocation2 + $0x101] ss:$2 sm:$0xff]  ;;  %v2184_v0 = vld [vmem:[#allocation2 + $0x160] ss:$2 sm:$0xff]  ;;  %v2288_v6 = vmax.f32 %v2182_v5, %v2246_v17 }
 0x309   :  { %2129 = vst.msk [vmem:[#allocation2 + $0x1a8] sm:$0xff] %vm1526_vm2, %v2065_v57  ;;  %v2280_v57 = vmax.f32 %v2166_v38, %v2230_v59 }
 0x30a   :  { %2130 = vst.msk [vmem:[#allocation2 + $0x1b0] sm:$0xff] %vm1526_vm2, %v2066_v7  ;;  %v2281_v7 = vmax.f32 %v2168_v42, %v2232_v36 }
 0x30b   :  { %2131 = vst.msk [vmem:[#allocation2 + $0x1b8] sm:$0xff] %vm1526_vm2, %v2067_v40  ;;  %v2174_v40 = vld [vmem:[#allocation2 + $0x110] ss:$2 sm:$0xff] }
 0x30c   :  { %2132 = vst.msk [vmem:[#allocation2 + $0x1c0] sm:$0xff] %vm1526_vm2, %v2068_v30  ;;  %v2238_v30 = vld [vmem:[#allocation2 + $0x111] ss:$2 sm:$0xff]  ;;  %v2188_v52 = vld [vmem:[#allocation2 + $0x180] ss:$2 sm:$0xff] }
 0x30d   :  { %2133 = vst.msk [vmem:[#allocation2 + $0x1c8] sm:$0xff] %vm1526_vm2, %v2069_v44  ;;  %v2282_v44 = vmax.f32 %v2170_v51, %v2234_v14  ;;  %v2284_v13 = vmax.f32 %v2174_v40, %v2238_v30  ;;  %v2252_v16 = vld [vmem:[#allocation2 + $0x181] ss:$2 sm:$0xff] }
 0x30e   :  { %2134 = vst.msk [vmem:[#allocation2 + $0x1d0] sm:$0xff] %vm1526_vm2, %v2070_v37  ;;  %v2176_v37 = vld [vmem:[#allocation2 + $0x120] ss:$2 sm:$0xff]  ;;  %v2190_v46 = vld [vmem:[#allocation2 + $0x190] ss:$2 sm:$0xff]  ;;  %v2291_v20 = vmax.f32 %v2188_v52, %v2252_v16 }
 0x30f   :  { %2135 = vst.msk [vmem:[#allocation2 + $0x1d8] sm:$0xff] %vm1526_vm2, %v2071_v60  ;;  %v2240_v60 = vld [vmem:[#allocation2 + $0x121] ss:$2 sm:$0xff]  ;;  %v2254_v50 = vld [vmem:[#allocation2 + $0x191] ss:$2 sm:$0xff] }
 0x310   :  { %2136 = vst.msk [vmem:[#allocation2 + $0x1e0] sm:$0xff] %vm1526_vm2, %v2072_v22  ;;  %v2283_v22 = vmax.f32 %v2172_v33, %v2236_v12 }
 0x311   :  { %2137 = vst.msk [vmem:[#allocation2 + $0x1e8] sm:$0xff] %vm1526_vm2, %v2073_v18  ;;  %v2180_v18 = vld [vmem:[#allocation2 + $0x140] ss:$2 sm:$0xff] }
 0x312   :  { %2138 = vst.msk [vmem:[#allocation2 + $0x1f0] sm:$0xff] %vm1526_vm2, %v2074_v63  ;;  %v2285_v63 = vmax.f32 %v2176_v37, %v2240_v60  ;;  %v2194_v55 = vld [vmem:[#allocation2 + $0x1b0] ss:$2 sm:$0xff]  ;;  %v2258_v28 = vld [vmem:[#allocation2 + $0x1b1] ss:$2 sm:$0xff] }
 0x313   :  { %2308 = vst.msk [vmem:[#allocation3 + $0x1] sm:$0xff] %vm1526_vm2, %v2267_v4 }
 0x314   :  { %2309 = vst.msk [vmem:[#allocation3 + $0x9] sm:$0xff] %vm1526_vm2, %v2268_v58  ;;  %v2248_v58 = vld [vmem:[#allocation2 + $0x161] ss:$2 sm:$0xff] }
 0x315   :  { %2310 = vst.msk [vmem:[#allocation3 + $0x11] sm:$0xff] %vm1526_vm2, %v2269_v9  ;;  %v2289_v32 = vmax.f32 %v2184_v0, %v2248_v58 }
 0x316   :  { %2311 = vst.msk [vmem:[#allocation3 + $0x19] sm:$0xff] %vm1526_vm2, %v2270_v15  ;;  %v2287_v15 = vmax.f32 %v2180_v18, %v2244_v39  ;;  %v2198_v61 = vld [vmem:[#allocation2 + $0x1d0] ss:$2 sm:$0xff] }
 0x317   :  { %2340 = vst.msk [vmem:[#allocation3 + $0x21] sm:$0x1] %vm2299_vm6, %v8607_v23 }
 0x318   :  { %2300 = vst.msk [vmem:[#allocation3] sm:$0x1] %vm2299_vm6, %v8607_v23  ;;  %v2200_v48 = vld [vmem:[#allocation2 + $0x1e0] ss:$2 sm:$0xff]  ;;  %v2264_v34 = vld [vmem:[#allocation2 + $0x1e1] ss:$2 sm:$0xff] }
 0x319   :  { %2301 = vst.msk [vmem:[#allocation3 + $0x28] sm:$0x1] %vm2299_vm6, %v8607_v23  ;;  %v2202_v62 = vld [vmem:[#allocation2 + $0x1f0] ss:$2 sm:$0xff]  ;;  %v2297_v59 = vmax.f32 %v2200_v48, %v2264_v34 }
 0x31a   :  { %v2384_v54 = vld [vmem:[#allocation3 + $0x1] sm:$0xff]  ;;  %2302 = vst.msk [vmem:[#allocation3 + $0x50] sm:$0x1] %vm2299_vm6, %v8607_v23 }
 0x31b   :  { %4946 = vmatmul.msk.f32.vlgmr.msrb.gmra.mxu3 %vm1526_vm2, %v2384_v54  ;;  %v2839_v1 = vld [vmem:[#allocation3 + $0x2] sm:$0xff]  ;;  %2303 = vst.msk [vmem:[#allocation3 + $0x78] sm:$0x1] %vm2299_vm6, %v8607_v23  ;;  %v2186_v54 = vld [vmem:[#allocation2 + $0x170] ss:$2 sm:$0xff] }
 0x31c   :  { %5014 = vmatmul.msk.f32.vlgmr.msrb.gmra.mxu0 %vm1526_vm2, %v2839_v1  ;;  %2304 = vst.msk [vmem:[#allocation3 + $0xa0] sm:$0x1] %vm2299_vm6, %v8607_v23  ;;  %v2385_v35 = vld [vmem:[#allocation3 + $0x9] sm:$0xff]  ;;  %v2386_v10 = vld [vmem:[#allocation3 + $0x11] sm:$0xff] }
 0x31d   :  { %2305 = vst.msk [vmem:[#allocation3 + $0xc8] sm:$0x1] %vm2299_vm6, %v8607_v23  ;;  %v2840_v25 = vld [vmem:[#allocation3 + $0xa] sm:$0xff]  ;;  %v2841_v29 = vld [vmem:[#allocation3 + $0x12] sm:$0xff] }
 0x31e   :  { %2306 = vst.msk [vmem:[#allocation3 + $0xf0] sm:$0x1] %vm2299_vm6, %v8607_v23  ;;  %v2387_v4 = vld [vmem:[#allocation3 + $0x19] sm:$0xff] }
 0x31f   :  { %2307 = vst.msk [vmem:[#allocation3 + $0x118] sm:$0x1] %vm2299_vm6, %v8607_v23  ;;  %v2842_v9 = vld [vmem:[#allocation3 + $0x1a] sm:$0xff] }
 0x320   :  { %2341 = vst.msk [vmem:[#allocation3 + $0x49] sm:$0x1] %vm2299_vm6, %v8607_v23  ;;  %v2250_v1 = vld [vmem:[#allocation2 + $0x171] ss:$2 sm:$0xff]  ;;  %v7176_v42 = vld [vmem:[#allocation3] sm:$0xff] }
 0x321   :  { %2342 = vst.msk [vmem:[#allocation3 + $0x71] sm:$0x1] %vm2299_vm6, %v8607_v23  ;;  %v2290_v41 = vmax.f32 %v2186_v54, %v2250_v1 }
 0x322   :  { %2343 = vst.msk [vmem:[#allocation3 + $0x99] sm:$0x1] %vm2299_vm6, %v8607_v23 }
 0x323   :  { %4947 = vmatmul.msk.f32.gmra.mxu3 %vm1526_vm2, %v2385_v35  ;;  %2344 = vst.msk [vmem:[#allocation3 + $0xc1] sm:$0x1] %vm2299_vm6, %v8607_v23  ;;  %v2196_v35 = vld [vmem:[#allocation2 + $0x1c0] ss:$2 sm:$0xff] }
 0x324   :  { %5015 = vmatmul.msk.f32.gmra.mxu0 %vm1526_vm2, %v2840_v25  ;;  %2345 = vst.msk [vmem:[#allocation3 + $0xe9] sm:$0x1] %vm2299_vm6, %v8607_v23  ;;  %v2192_v25 = vld [vmem:[#allocation2 + $0x1a0] ss:$2 sm:$0xff] }
 0x325   :  { %2346 = vst.msk [vmem:[#allocation3 + $0x111] sm:$0x1] %vm2299_vm6, %v8607_v23 }
 0x326   :  { %2347 = vst.msk [vmem:[#allocation3 + $0x139] sm:$0x1] %vm2299_vm6, %v8607_v23 }
 0x327   :  { %2312 = vst.msk [vmem:[#allocation3 + $0x29] sm:$0xff] %vm1526_vm2, %v2271_v19  ;;  %v2256_v19 = vld [vmem:[#allocation2 + $0x1a1] ss:$2 sm:$0xff] }
 0x328   :  { %2313 = vst.msk [vmem:[#allocation3 + $0x31] sm:$0xff] %vm1526_vm2, %v2272_v31  ;;  %v2260_v31 = vld [vmem:[#allocation2 + $0x1c1] ss:$2 sm:$0xff]  ;;  %v2293_v43 = vmax.f32 %v2192_v25, %v2256_v19 }
 0x329   :  { %2314 = vst.msk [vmem:[#allocation3 + $0x39] sm:$0xff] %vm1526_vm2, %v2273_v8  ;;  %v2292_v8 = vmax.f32 %v2190_v46, %v2254_v50  ;;  %v2381_v19 = vld [vmem:[%s8561_s4 + $0x8] sm:$0xff] }
 0x32a   :  { %2315 = vst.msk [vmem:[#allocation3 + $0x41] sm:$0xff] %vm1526_vm2, %v2274_v27  ;;  %v2262_v27 = vld [vmem:[#allocation2 + $0x1d1] ss:$2 sm:$0xff]  ;;  %2740 = vmatpush.msra.mxu3 %v2381_v19 }
 0x32b   :  { %4948 = vmatmul.msk.f32.gmra.mxu3 %vm1526_vm2, %v2386_v10  ;;  %2316 = vst.msk [vmem:[#allocation3 + $0x51] sm:$0xff] %vm1526_vm2, %v2275_v53  ;;  %v2294_v53 = vmax.f32 %v2194_v55, %v2258_v28  ;;  %v2296_v38 = vmax.f32 %v2198_v61, %v2262_v27 }
 0x32c   :  { %5016 = vmatmul.msk.f32.gmra.mxu0 %vm1526_vm2, %v2841_v29  ;;  %2317 = vst.msk [vmem:[#allocation3 + $0x59] sm:$0xff] %vm1526_vm2, %v2276_v47  ;;  %v2295_v47 = vmax.f32 %v2196_v35, %v2260_v31  ;;  %v7181_v29 = vld [vmem:[#allocation3 + $0x10] sm:$0xff] }
 0x32d   :  { %2318 = vst.msk [vmem:[#allocation3 + $0x61] sm:$0xff] %vm1526_vm2, %v2277_v3  ;;  %v2266_v3 = vld [vmem:[#allocation2 + $0x1f1] ss:$2 sm:$0xff] }
 0x32e   :  { %2319 = vst.msk [vmem:[#allocation3 + $0x69] sm:$0xff] %vm1526_vm2, %v2278_v26  ;;  %v2388_v24 = vld [vmem:[#allocation3 + $0x29] sm:$0xff]  ;;  %v2298_v10 = vmax.f32 %v2202_v62, %v2266_v3  ;;  %v2380_v3 = vld [vmem:[%s8561_s4] sm:$0xff] }
 0x32f   :  { %2320 = vst.msk [vmem:[#allocation3 + $0x79] sm:$0xff] %vm1526_vm2, %v2279_v2  ;;  %v2843_v45 = vld [vmem:[#allocation3 + $0x2a] sm:$0xff]  ;;  %2741 = vmatpush.msra.mxu3 %v2380_v3  ;;  %v2351_v3 = vld [vmem:[#allocation3 + $0x18] sm:$0xff] }
 0x330   :  { %2321 = vst.msk [vmem:[#allocation3 + $0x81] sm:$0xff] %vm1526_vm2, %v2280_v57  ;;  %v2389_v26 = vld [vmem:[#allocation3 + $0x31] sm:$0xff]  ;;  %v7186_v2 = vld [vmem:[#allocation3 + $0x28] sm:$0xff]  ;;  %v2390_v51 = vld [vmem:[#allocation3 + $0x39] sm:$0xff] }
 0x331   :  { %2322 = vst.msk [vmem:[#allocation3 + $0x89] sm:$0xff] %vm1526_vm2, %v2281_v7  ;;  %v2844_v36 = vld [vmem:[#allocation3 + $0x32] sm:$0xff]  ;;  %v2845_v60 = vld [vmem:[#allocation3 + $0x3a] sm:$0xff]  ;;  %v2846_v52 = vld [vmem:[#allocation3 + $0x42] sm:$0xff] }
 0x332   :  { %2323 = vst.msk [vmem:[#allocation3 + $0x91] sm:$0xff] %vm1526_vm2, %v2282_v44  ;;  %v7190_v14 = vld [vmem:[#allocation3 + $0x38] sm:$0xff]  ;;  %v7194_v33 = vld [vmem:[#allocation3 + $0x50] sm:$0xff]  ;;  %v2391_v1 = vld [vmem:[#allocation3 + $0x41] sm:$0xff] }
 0x333   :  { %4949 = vmatmul.msk.f32.gmra.mxu3 %vm1526_vm2, %v2387_v4  ;;  %2324 = vst.msk [vmem:[#allocation3 + $0xa1] sm:$0xff] %vm1526_vm2, %v2283_v22  ;;  %v2392_v16 = vld [vmem:[#allocation3 + $0x51] sm:$0xff] }
 0x334   :  { %5017 = vmatmul.msk.f32.gmra.mxu0 %vm1526_vm2, %v2842_v9  ;;  %2325 = vst.msk [vmem:[#allocation3 + $0xa9] sm:$0xff] %vm1526_vm2, %v2284_v13  ;;  %v2848_v12 = vld [vmem:[#allocation3 + $0x5a] sm:$0xff] }
 0x335   :  { %2326 = vst.msk [vmem:[#allocation3 + $0xb1] sm:$0xff] %vm1526_vm2, %v2285_v63  ;;  %v2394_v57 = vld [vmem:[#allocation3 + $0x61] sm:$0xff]  ;;  %v2395_v50 = vld [vmem:[#allocation3 + $0x69] sm:$0xff] }
 0x336   :  { %2327 = vst.msk [vmem:[#allocation3 + $0xb9] sm:$0xff] %vm1526_vm2, %v2286_v56  ;;  %v7198_v7 = vld [vmem:[#allocation3 + $0x60] sm:$0xff]  ;;  %v7202_v40 = vld [vmem:[#allocation3 + $0x78] sm:$0xff]  ;;  %v2850_v35 = vld [vmem:[#allocation3 + $0x6a] sm:$0xff] }
 0x337   :  { %2328 = vst.msk [vmem:[#allocation3 + $0xc9] sm:$0xff] %vm1526_vm2, %v2287_v15  ;;  %v2849_v46 = vld [vmem:[#allocation3 + $0x62] sm:$0xff]  ;;  %v2851_v25 = vld [vmem:[#allocation3 + $0x7a] sm:$0xff] }
 0x338   :  { %2329 = vst.msk [vmem:[#allocation3 + $0xd1] sm:$0xff] %vm1526_vm2, %v2288_v6  ;;  %v2852_v30 = vld [vmem:[#allocation3 + $0x82] sm:$0xff]  ;;  %v2847_v6 = vld [vmem:[#allocation3 + $0x52] sm:$0xff] }
 0x339   :  { %2330 = vst.msk [vmem:[#allocation3 + $0xd9] sm:$0xff] %vm1526_vm2, %v2289_v32  ;;  %v2398_v44 = vld [vmem:[#allocation3 + $0x89] sm:$0xff]  ;;  %v2393_v32 = vld [vmem:[#allocation3 + $0x59] sm:$0xff]  ;;  %v2399_v28 = vld [vmem:[#allocation3 + $0x91] sm:$0xff] }
 0x33a   :  { %2331 = vst.msk [vmem:[#allocation3 + $0xe1] sm:$0xff] %vm1526_vm2, %v2290_v41  ;;  %v7206_v37 = vld [vmem:[#allocation3 + $0x88] sm:$0xff]  ;;  %v7210_v22 = vld [vmem:[#allocation3 + $0xa0] sm:$0xff]  ;;  %v2854_v31 = vld [vmem:[#allocation3 + $0x92] sm:$0xff] }
 0x33b   :  { %4950 = vmatmul.msk.f32.gmra.mxu3 %vm1526_vm2, %v2388_v24  ;;  %2332 = vst.msk [vmem:[#allocation3 + $0xf1] sm:$0xff] %vm1526_vm2, %v2291_v20  ;;  %v2396_v41 = vld [vmem:[#allocation3 + $0x79] sm:$0xff]  ;;  %v2397_v20 = vld [vmem:[#allocation3 + $0x81] sm:$0xff]  ;;  %v2853_v55 = vld [vmem:[#allocation3 + $0x8a] sm:$0xff] }
 0x33c   :  { %5018 = vmatmul.msk.f32.gmra.mxu0 %vm1526_vm2, %v2843_v45  ;;  %2333 = vst.msk [vmem:[#allocation3 + $0xf9] sm:$0xff] %vm1526_vm2, %v2292_v8  ;;  %v7213_v49 = vld [vmem:[#allocation3 + $0xaa] sm:$0xff]  ;;  %v2400_v8 = vld [vmem:[#allocation3 + $0xa1] sm:$0xff] }
 0x33d   :  { %2334 = vst.msk [vmem:[#allocation3 + $0x101] sm:$0xff] %vm1526_vm2, %v2293_v43  ;;  %v7215_v11 = vld [vmem:[#allocation3 + $0xb1] sm:$0xff]  ;;  %v2855_v61 = vld [vmem:[#allocation3 + $0xa2] sm:$0xff]  ;;  %v2403_v34 = vld [vmem:[#allocation3 + $0xb9] sm:$0xff] }
 0x33e   :  { %2335 = vst.msk [vmem:[#allocation3 + $0x109] sm:$0xff] %vm1526_vm2, %v2294_v53  ;;  %v7219_v18 = vld [vmem:[#allocation3 + $0xb0] sm:$0xff]  ;;  %v7224_v39 = vld [vmem:[#allocation3 + $0xc8] sm:$0xff]  ;;  %v2858_v62 = vld [vmem:[#allocation3 + $0xba] sm:$0xff] }
 0x33f   :  { %2336 = vst.msk [vmem:[#allocation3 + $0x119] sm:$0xff] %vm1526_vm2, %v2295_v47  ;;  %v2401_v27 = vld [vmem:[#allocation3 + $0xa9] sm:$0xff]  ;;  %v2857_v24 = vld [vmem:[#allocation3 + $0xb2] sm:$0xff] }
 0x340   :  { %2337 = vst.msk [vmem:[#allocation3 + $0x121] sm:$0xff] %vm1526_vm2, %v2296_v38  ;;  %v7226_v13 = vld [vmem:[#allocation3 + $0xd2] sm:$0xff]  ;;  %v2404_v21 = vld [vmem:[#allocation3 + $0xc9] sm:$0xff] }
 0x341   :  { %2338 = vst.msk [vmem:[#allocation3 + $0x129] sm:$0xff] %vm1526_vm2, %v2297_v59  ;;  %v7228_v63 = vld [vmem:[#allocation3 + $0xd9] sm:$0xff]  ;;  %v2859_v47 = vld [vmem:[#allocation3 + $0xca] sm:$0xff] }
 0x342   :  { %2339 = vst.msk [vmem:[#allocation3 + $0x131] sm:$0xff] %vm1526_vm2, %v2298_v10  ;;  %v7232_v5 = vld [vmem:[#allocation3 + $0xd8] sm:$0xff]  ;;  %v7236_v17 = vld [vmem:[#allocation3 + $0xf0] sm:$0xff] }
 0x343   :  { %4951 = vmatmul.msk.f32.gmra.mxu3 %vm1526_vm2, %v2389_v26  ;;  %3490 = vst.msk [vmem:[#allocation3] sm:$0x1] %vm2299_vm6, %v8607_v23  ;;  %v2405_v59 = vld [vmem:[#allocation3 + $0xd1] sm:$0xff] }
 0x344   :  { %5019 = vmatmul.msk.f32.gmra.mxu0 %vm1526_vm2, %v2844_v36  ;;  %3514 = vst.msk [vmem:[#allocation3 + $0x11] sm:$0x1] %vm2299_vm6, %v8607_v23  ;;  %v7238_v4 = vld [vmem:[#allocation3 + $0xfa] sm:$0xff] }
 0x345   :  { %3491 = vst.msk [vmem:[#allocation3 + $0x28] sm:$0x1] %vm2299_vm6, %v8607_v23  ;;  %v7240_v56 = vld [vmem:[#allocation3 + $0x101] sm:$0xff]  ;;  %v3541_v10 = vld [vmem:[%s8564_s7 + $0x18] sm:$0xff] }
 0x346   :  { %3515 = vst.msk [vmem:[#allocation3 + $0x39] sm:$0x1] %vm2299_vm6, %v8607_v23  ;;  %v7244_v0 = vld [vmem:[#allocation3 + $0x100] sm:$0xff]  ;;  %v7248_v58 = vld [vmem:[#allocation3 + $0x118] sm:$0xff]  ;;  %3736 = vmatpush.msra.mxu2 %v3541_v10  ;;  %v2353_v10 = vld [vmem:[#allocation3 + $0x30] sm:$0xff] }
 0x347   :  { %3492 = vst.msk [vmem:[#allocation3 + $0x50] sm:$0x1] %vm2299_vm6, %v8607_v23  ;;  %v5049_v36 = vld [vmem:[%s8564_s7 + $0x38] sm:$0xff] }
 0x348   :  { %3516 = vst.msk [vmem:[#allocation3 + $0x61] sm:$0x1] %vm2299_vm6, %v8607_v23  ;;  %v7250_v9 = vld [vmem:[#allocation3 + $0x122] sm:$0xff]  ;;  %3623 = vmatpush.msra.mxu1 %v5049_v36  ;;  %v3540_v36 = vld [vmem:[%s8564_s7 + $0x10] sm:$0xff] }
 0x349   :  { %3493 = vst.msk [vmem:[#allocation3 + $0x78] sm:$0x1] %vm2299_vm6, %v8607_v23  ;;  %v7252_v15 = vld [vmem:[#allocation3 + $0x129] sm:$0xff]  ;;  %3737 = vmatpush.msra.mxu2 %v3540_v36 }
 0x34a   :  { %3517 = vst.msk [vmem:[#allocation3 + $0x89] sm:$0x1] %vm2299_vm6, %v8607_v23  ;;  %v7256_v54 = vld [vmem:[#allocation3 + $0x128] sm:$0xff]  ;;  %v2369_v36 = vld [vmem:[#allocation3 + $0xd0] sm:$0xff] }
 0x34b   :  { %4952 = vmatmul.msk.f32.gmra.mxu3 %vm1526_vm2, %v2390_v51  ;;  %3494 = vst.msk [vmem:[#allocation3 + $0xa0] sm:$0x1] %vm2299_vm6, %v8607_v23  ;;  %v2861_v51 = vld [vmem:[#allocation3 + $0xda] sm:$0xff] }
 0x34c   :  { %5020 = vmatmul.msk.f32.gmra.mxu0 %vm1526_vm2, %v2845_v60  ;;  %3518 = vst.msk [vmem:[#allocation3 + $0xb1] sm:$0x1] %vm2299_vm6, %v8607_v23 }
 0x34d   :  { %3495 = vst.msk [vmem:[#allocation3 + $0xc8] sm:$0x1] %vm2299_vm6, %v8607_v23 }
 0x34e   :  { %3519 = vst.msk [vmem:[#allocation3 + $0xd9] sm:$0x1] %vm2299_vm6, %v8607_v23 }
 0x34f   :  { %3496 = vst.msk [vmem:[#allocation3 + $0xf0] sm:$0x1] %vm2299_vm6, %v8607_v23 }
 0x350   :  { %3520 = vst.msk [vmem:[#allocation3 + $0x101] sm:$0x1] %vm2299_vm6, %v8607_v23 }
 0x351   :  { %3497 = vst.msk [vmem:[#allocation3 + $0x118] sm:$0x1] %vm2299_vm6, %v8607_v23 }
 0x352   :  { %3521 = vst.msk [vmem:[#allocation3 + $0x129] sm:$0x1] %vm2299_vm6, %v8607_v23  ;;  %v2375_v23 = vld [vmem:[#allocation3 + $0x108] sm:$0xff] }
 0x353   :  { %4953 = vmatmul.msk.f32.gmra.mxu3 %vm1526_vm2, %v2391_v1 }
 0x354   :  { %5021 = vmatmul.msk.f32.gmra.mxu0 %vm1526_vm2, %v2846_v52  ;;  %v2409_v52 = vld [vmem:[#allocation3 + $0xf9] sm:$0xff] }
 0x35b   :  { %4954 = vmatmul.msk.f32.gmra.mxu3 %vm1526_vm2, %v2392_v16 }
 0x35c   :  { %5022 = vmatmul.msk.f32.gmra.mxu0 %vm1526_vm2, %v2847_v6  ;;  %v2865_v6 = vld [vmem:[#allocation3 + $0x102] sm:$0xff] }
 0x363   :  { %4955 = vmatmul.msk.f32.gmra.mxu3 %vm1526_vm2, %v2393_v32 }
 0x364   :  { %5023 = vmatmul.msk.f32.gmra.mxu0 %vm1526_vm2, %v2848_v12 }
 0x36b   :  { %4956 = vmatmul.msk.f32.gmra.mxu3 %vm1526_vm2, %v2394_v57 }
 0x36c   :  { %5024 = vmatmul.msk.f32.gmra.mxu0 %vm1526_vm2, %v2849_v46 }
 0x373   :  { %4957 = vmatmul.msk.f32.gmra.mxu3 %vm1526_vm2, %v2395_v50  ;;  %v2411_v50 = vld [vmem:[#allocation3 + $0x109] sm:$0xff] }
 0x374   :  { %5025 = vmatmul.msk.f32.gmra.mxu0 %vm1526_vm2, %v2850_v35  ;;  %v2866_v35 = vld [vmem:[#allocation3 + $0x10a] sm:$0xff] }
 0x37b   :  { %4958 = vmatmul.msk.f32.gmra.mxu3 %vm1526_vm2, %v2396_v41 }
 0x37c   :  { %5026 = vmatmul.msk.f32.gmra.mxu0 %vm1526_vm2, %v2851_v25  ;;  %v2412_v25 = vld [vmem:[#allocation3 + $0x119] sm:$0xff] }
 0x383   :  { %4959 = vmatmul.msk.f32.gmra.mxu3 %vm1526_vm2, %v2397_v20 }
 0x384   :  { %5027 = vmatmul.msk.f32.gmra.mxu0 %vm1526_vm2, %v2852_v30  ;;  %v2407_v30 = vld [vmem:[#allocation3 + $0xe1] sm:$0xff] }
 0x38b   :  { %4960 = vmatmul.msk.f32.gmra.mxu3 %vm1526_vm2, %v2398_v44  ;;  %v2862_v44 = vld [vmem:[#allocation3 + $0xe2] sm:$0xff] }
 0x38c   :  { %5028 = vmatmul.msk.f32.gmra.mxu0 %vm1526_vm2, %v2853_v55  ;;  %v2413_v55 = vld [vmem:[#allocation3 + $0x121] sm:$0xff] }
 0x393   :  { %4961 = vmatmul.msk.f32.gmra.mxu3 %vm1526_vm2, %v2399_v28 }
 0x394   :  { %5029 = vmatmul.msk.f32.gmra.mxu0 %vm1526_vm2, %v2854_v31 }
 0x399   :  { %v7320_v12 = vpop.f32.mrf.mxu0 }
 0x39b   :  { %4962 = vmatmul.msk.f32.gmra.mxu3 %vm1526_vm2, %v2400_v8  ;;  %v2869_v8 = vld [vmem:[#allocation3 + $0x12a] sm:$0xff] }
 0x39c   :  { %5030 = vmatmul.msk.f32.gmra.mxu0 %vm1526_vm2, %v2855_v61 }
 0x39e   :  { %v7283_v43 = vpop.f32.mrf.mxu3 }
 0x3a3   :  { %4963 = vmatmul.msk.f32.gmra.mxu3 %vm1526_vm2, %v2401_v27  ;;  %v2415_v27 = vld [vmem:[#allocation3 + $0x131] sm:$0xff] }
 0x3a4   :  { %5031 = vmatmul.msk.f32.gmra.mxu0 %vm1526_vm2, %v7213_v49  ;;  %v7328_v49 = vpop.f32.mrf.mxu0 }
 0x3a6   :  { %v7288_v48 = vpop.f32.mrf.mxu3 }
 0x3ab   :  { %4964 = vmatmul.msk.f32.gmra.mxu3 %vm1526_vm2, %v7215_v11  ;;  %v2408_v11 = vld [vmem:[#allocation3 + $0xf1] sm:$0xff] }
 0x3ac   :  { %5032 = vmatmul.msk.f32.gmra.mxu0 %vm1526_vm2, %v2857_v24  ;;  %v7334_v1 = vpop.f32.mrf.mxu0  ;;  %v2870_v24 = vld [vmem:[#allocation3 + $0x132] sm:$0xff] }
 0x3ae   :  { %v7293_v53 = vpop.f32.mrf.mxu3 }
 0x3b3   :  { %4965 = vmatmul.msk.f32.gmra.mxu3 %vm1526_vm2, %v2403_v34 }
 0x3b4   :  { %5033 = vmatmul.msk.f32.gmra.mxu0 %vm1526_vm2, %v2858_v62  ;;  %v7343_v32 = vpop.f32.mrf.mxu0 }
 0x3b6   :  { %v7297_v45 = vpop.f32.mrf.mxu3 }
 0x3bb   :  { %4966 = vmatmul.msk.f32.gmra.mxu3 %vm1526_vm2, %v2404_v21 }
 0x3bc   :  { %5034 = vmatmul.msk.f32.gmra.mxu0 %vm1526_vm2, %v2859_v47  ;;  %v7350_v41 = vpop.f32.mrf.mxu0 }
 0x3be   :  { %v7304_v38 = vpop.f32.mrf.mxu3 }
 0x3c3   :  { %4967 = vmatmul.msk.f32.gmra.mxu3 %vm1526_vm2, %v2405_v59 }
 0x3c4   :  { %5035 = vmatmul.msk.f32.gmra.mxu0 %vm1526_vm2, %v7226_v13  ;;  %v2863_v13 = vld [vmem:[#allocation3 + $0xf2] sm:$0xff]  ;;  %v7358_v20 = vpop.f32.mrf.mxu0 }
 0x3c6   :  { %v7312_v26 = vpop.f32.mrf.mxu3 }
 0x3cb   :  { %4968 = vmatmul.msk.f32.gmra.mxu3 %vm1526_vm2, %v7228_v63 }
 0x3cc   :  { %5036 = vmatmul.msk.f32.gmra.mxu0 %vm1526_vm2, %v2861_v51  ;;  %v7365_v31 = vpop.f32.mrf.mxu0  ;;  %v5048_v51 = vld [vmem:[%s8564_s7 + $0x30] sm:$0xff] }
 0x3cd   :  { %3624 = vmatpush.msra.mxu1 %v5048_v51 }
 0x3ce   :  { %v7322_v57 = vpop.f32.mrf.mxu3 }
 0x3d3   :  { %4969 = vmatmul.msk.f32.gmra.mxu3 %vm1526_vm2, %v2407_v30  ;;  %v2355_v30 = vld [vmem:[#allocation3 + $0x40] sm:$0xff] }
 0x3d4   :  { %5037 = vmatmul.msk.f32.gmra.mxu0 %vm1526_vm2, %v2862_v44  ;;  %v7373_v34 = vpop.f32.mrf.mxu0 }
 0x3d6   :  { %v7326_v60 = vpop.f32.mrf.mxu3 }
 0x3db   :  { %4970 = vmatmul.msk.f32.gmra.mxu3 %vm1526_vm2, %v2408_v11 }
 0x3dc   :  { %5038 = vmatmul.msk.f32.gmra.mxu0 %vm1526_vm2, %v2863_v13  ;;  %v2357_v13 = vld [vmem:[#allocation3 + $0x58] sm:$0xff] }
 0x3de   :  { %v7332_v63 = vpop.f32.mrf.mxu3 }
 0x3e3   :  { %4971 = vmatmul.msk.f32.gmra.mxu3 %vm1526_vm2, %v2409_v52 }
 0x3e4   :  { %5039 = vmatmul.msk.f32.gmra.mxu0 %vm1526_vm2, %v7238_v4 }
 0x3e6   :  { %v7339_v16 = vpop.f32.mrf.mxu3 }
 0x3eb   :  { %4972 = vmatmul.msk.f32.gmra.mxu3 %vm1526_vm2, %v7240_v56  ;;  %v2867_v56 = vld [vmem:[#allocation3 + $0x11a] sm:$0xff] }
 0x3ec   :  { %5040 = vmatmul.msk.f32.gmra.mxu0 %vm1526_vm2, %v2865_v6  ;;  %v2359_v6 = vld [vmem:[#allocation3 + $0x68] sm:$0xff] }
 0x3ee   :  { %v7346_v46 = vpop.f32.mrf.mxu3 }
 0x3f3   :  { %4973 = vmatmul.msk.f32.gmra.mxu3 %vm1526_vm2, %v2411_v50 }
 0x3f4   :  { %5041 = vmatmul.msk.f32.gmra.mxu0 %vm1526_vm2, %v2866_v35  ;;  %v2361_v35 = vld [vmem:[#allocation3 + $0x80] sm:$0xff] }
 0x3f6   :  { %v7352_v4 = vpop.f32.mrf.mxu3 }
 0x3fb   :  { %4974 = vmatmul.msk.f32.gmra.mxu3 %vm1526_vm2, %v2412_v25 }
 0x3fc   :  { %5042 = vmatmul.msk.f32.gmra.mxu0 %vm1526_vm2, %v2867_v56  ;;  %v2363_v56 = vld [vmem:[#allocation3 + $0x90] sm:$0xff] }
 0x3fe   :  { %v7356_v19 = vpop.f32.mrf.mxu3 }
 0x403   :  { %4975 = vmatmul.msk.f32.gmra.mxu3 %vm1526_vm2, %v2413_v55 }
 0x404   :  { %5043 = vmatmul.msk.f32.gmra.mxu0 %vm1526_vm2, %v7250_v9 }
 0x406   :  { %v7363_v28 = vpop.f32.mrf.mxu3 }
 0x40b   :  { %4976 = vmatmul.msk.f32.gmra.mxu3 %vm1526_vm2, %v7252_v15  ;;  %v2349_v15 = vld [vmem:[#allocation3 + $0x8] sm:$0xff] }
 0x40c   :  { %5044 = vmatmul.msk.f32.gmra.mxu0 %vm1526_vm2, %v2869_v8  ;;  %v2365_v8 = vld [vmem:[#allocation3 + $0xa8] sm:$0xff] }
 0x40e   :  { %v7370_v61 = vpop.f32.mrf.mxu3 }
 0x413   :  { %4977 = vmatmul.msk.f32.gmra.mxu3 %vm1526_vm2, %v2415_v27 }
 0x414   :  { %5045 = vmatmul.msk.f32.gmra.mxu0 %vm1526_vm2, %v2870_v24  ;;  %v7451_v24 = vpop.f32.mrf.mxu0 }
 0x416   :  { %v7376_v9 = vpop.f32.mrf.mxu3 }
 0x41b   :  { %4978 = vmatmul.msk.f32.vlgmr.msra.gmra.mxu3 %vm1526_vm2, %v7176_v42 }
 0x41e   :  { %v7380_v62 = vpop.f32.mrf.mxu3 }
 0x423   :  { %4979 = vmatmul.msk.f32.gmra.mxu3 %vm1526_vm2, %v2349_v15  ;;  %v2367_v15 = vld [vmem:[#allocation3 + $0xb8] sm:$0xff] }
 0x426   :  { %v7383_v21 = vpop.f32.mrf.mxu3 }
 0x42b   :  { %4980 = vmatmul.msk.f32.gmra.mxu3 %vm1526_vm2, %v7181_v29 }
 0x42e   :  { %v7387_v47 = vpop.f32.mrf.mxu3 }
 0x433   :  { %4981 = vmatmul.msk.f32.gmra.mxu3 %vm1526_vm2, %v2351_v3 }
 0x436   :  { %v7390_v59 = vpop.f32.mrf.mxu3 }
 0x437   :  { %8739 = vst [vmem:[#allocation42_spill] sm:$0xff] %v7390_v59 }
 0x43b   :  { %4982 = vmatmul.msk.f32.gmra.mxu3 %vm1526_vm2, %v7186_v2 }
 0x43e   :  { %v7394_v42 = vpop.f32.mrf.mxu3 }
 0x43f   :  { %8740 = vst [vmem:[#allocation43_spill] sm:$0xff] %v7394_v42 }
 0x443   :  { %4983 = vmatmul.msk.f32.gmra.mxu3 %vm1526_vm2, %v2353_v10 }
 0x446   :  { %v7400_v29 = vpop.f32.mrf.mxu3 }
 0x447   :  { %8741 = vst [vmem:[#allocation44_spill] sm:$0xff] %v7400_v29 }
 0x44b   :  { %4984 = vmatmul.msk.f32.gmra.mxu3 %vm1526_vm2, %v7190_v14 }
 0x44e   :  { %v7407_v2 = vpop.f32.mrf.mxu3 }
 0x44f   :  { %8742 = vst [vmem:[#allocation45_spill] sm:$0xff] %v7407_v2 }
 0x453   :  { %4985 = vmatmul.msk.f32.gmra.mxu3 %vm1526_vm2, %v2355_v30  ;;  %v3539_v30 = vld [vmem:[%s8564_s7 + $0x8] sm:$0xff] }
 0x454   :  { %3738 = vmatpush.msra.mxu2 %v3539_v30 }
 0x456   :  { %v7410_v44 = vpop.f32.mrf.mxu3 }
 0x457   :  { %8743 = vst [vmem:[#allocation46_spill] sm:$0xff] %v7410_v44 }
 0x45b   :  { %4986 = vmatmul.msk.f32.gmra.mxu3 %vm1526_vm2, %v7194_v33 }
 0x45e   :  { %v7414_v11 = vpop.f32.mrf.mxu3 }
 0x45f   :  { %8744 = vst [vmem:[#allocation48_spill] sm:$0xff] %v7414_v11 }
 0x463   :  { %4987 = vmatmul.msk.f32.gmra.mxu3 %vm1526_vm2, %v2357_v13  ;;  %v5085_v13 = vld [vmem:[%s8564_s7 + $0x58] sm:$0xff] }
 0x464   :  { %3870 = vmatpush.msrb.mxu3 %v5085_v13 }
 0x466   :  { %v7417_v52 = vpop.f32.mrf.mxu3 }
 0x467   :  { %8745 = vst [vmem:[#allocation47_spill] sm:$0xff] %v7417_v52 }
 0x46b   :  { %4988 = vmatmul.msk.f32.gmra.mxu3 %vm1526_vm2, %v7198_v7 }
 0x46e   :  { %v7421_v14 = vpop.f32.mrf.mxu3 }
 0x46f   :  { %8746 = vst [vmem:[#allocation49_spill] sm:$0xff] %v7421_v14 }
 0x473   :  { %4989 = vmatmul.msk.f32.gmra.mxu3 %vm1526_vm2, %v2359_v6  ;;  %v5047_v6 = vld [vmem:[%s8564_s7 + $0x28] sm:$0xff] }
 0x474   :  { %3625 = vmatpush.msra.mxu1 %v5047_v6 }
 0x476   :  { %v7424_v50 = vpop.f32.mrf.mxu3 }
 0x477   :  { %8747 = vst [vmem:[#allocation51_spill] sm:$0xff] %v7424_v50  ;;  %v2379_v50 = vld [vmem:[#allocation3 + $0x130] sm:$0xff] }
 0x47b   :  { %4990 = vmatmul.msk.f32.gmra.mxu3 %vm1526_vm2, %v7202_v40 }
 0x47e   :  { %v7428_v33 = vpop.f32.mrf.mxu3 }
 0x47f   :  { %8748 = vst [vmem:[#allocation50_spill] sm:$0xff] %v7428_v33 }
 0x483   :  { %4991 = vmatmul.msk.f32.gmra.mxu3 %vm1526_vm2, %v2361_v35 }
 0x486   :  { %v7431_v25 = vpop.f32.mrf.mxu3 }
 0x487   :  { %8749 = vst [vmem:[#allocation52_spill] sm:$0xff] %v7431_v25  ;;  %v2377_v25 = vld [vmem:[#allocation3 + $0x120] sm:$0xff] }
 0x48b   :  { %4992 = vmatmul.msk.f32.gmra.mxu3 %vm1526_vm2, %v7206_v37 }
 0x48e   :  { %v7435_v7 = vpop.f32.mrf.mxu3 }
 0x48f   :  { %8750 = vst [vmem:[#allocation54_spill] sm:$0xff] %v7435_v7 }
 0x493   :  { %4993 = vmatmul.msk.f32.gmra.mxu3 %vm1526_vm2, %v2363_v56  ;;  %v2371_v56 = vld [vmem:[#allocation3 + $0xe0] sm:$0xff] }
 0x496   :  { %v7438_v55 = vpop.f32.mrf.mxu3 }
 0x497   :  { %8751 = vst [vmem:[#allocation53_spill] sm:$0xff] %v7438_v55 }
 0x49b   :  { %4994 = vmatmul.msk.f32.gmra.mxu3 %vm1526_vm2, %v7210_v22  ;;  %v7458_v22 = vpop.f32.mrf.mxu0 }
 0x49e   :  { %v7442_v40 = vpop.f32.mrf.mxu3 }
 0x4a3   :  { %4995 = vmatmul.msk.f32.gmra.mxu3 %vm1526_vm2, %v2365_v8 }
 0x4a6   :  { %v7445_v27 = vpop.f32.mrf.mxu3 }
 0x4ab   :  { %4996 = vmatmul.msk.f32.gmra.mxu3 %vm1526_vm2, %v7219_v18  ;;  %v7463_v18 = vpop.f32.mrf.mxu0 }
 0x4ae   :  { %v7449_v37 = vpop.f32.mrf.mxu3 }
 0x4b3   :  { %4997 = vmatmul.msk.f32.gmra.mxu3 %vm1526_vm2, %v2367_v15  ;;  %v7480_v35 = vpop.f32.mrf.mxu0 }
 0x4b6   :  { %v7454_v3 = vpop.f32.mrf.mxu3 }
 0x4bb   :  { %4998 = vmatmul.msk.f32.gmra.mxu3 %vm1526_vm2, %v7224_v39 }
 0x4be   :  { %v7460_v10 = vpop.f32.mrf.mxu3 }
 0x4c3   :  { %4999 = vmatmul.msk.f32.gmra.mxu3 %vm1526_vm2, %v2369_v36  ;;  %v2373_v36 = vld [vmem:[#allocation3 + $0xf8] sm:$0xff] }
 0x4c6   :  { %v7465_v51 = vpop.f32.mrf.mxu3 }
 0x4cb   :  { %5000 = vmatmul.msk.f32.gmra.mxu3 %vm1526_vm2, %v7232_v5  ;;  %v7485_v5 = vpop.f32.mrf.mxu0 }
 0x4ce   :  { %v7472_v39 = vpop.f32.mrf.mxu3 }
 0x4d3   :  { %5001 = vmatmul.msk.f32.gmra.mxu3 %vm1526_vm2, %v2371_v56  ;;  %v7492_v30 = vpop.f32.mrf.mxu0 }
 0x4d6   :  { %v7483_v8 = vpop.f32.mrf.mxu3 }
 0x4db   :  { %5002 = vmatmul.msk.f32.gmra.mxu3 %vm1526_vm2, %v7236_v17  ;;  %v7498_v6 = vpop.f32.mrf.mxu0 }
 0x4de   :  { %v7489_v15 = vpop.f32.mrf.mxu3 }
 0x4e3   :  { %5003 = vmatmul.msk.f32.gmra.mxu3 %vm1526_vm2, %v2373_v36  ;;  %v7505_v55 = vpop.f32.mrf.mxu0 }
 0x4e6   :  { %v7494_v13 = vpop.f32.mrf.mxu3 }
 0x4eb   :  { %5004 = vmatmul.msk.f32.gmra.mxu3 %vm1526_vm2, %v7244_v0  ;;  %v7511_v7 = vpop.f32.mrf.mxu0 }
 0x4ee   :  { %v7500_v56 = vpop.f32.mrf.mxu3 }
 0x4f3   :  { %5005 = vmatmul.msk.f32.gmra.mxu3 %vm1526_vm2, %v2375_v23  ;;  %v7518_v23 = vpop.f32.mrf.mxu0 }
 0x4f6   :  { %v7503_v17 = vpop.f32.mrf.mxu3 }
 0x4fb   :  { %5006 = vmatmul.msk.f32.gmra.mxu3 %vm1526_vm2, %v7248_v58  ;;  %v5084_v58 = vld [vmem:[%s8564_s7 + $0x50] sm:$0xff]  ;;  %v7526_v14 = vpop.f32.mrf.mxu0 }
 0x4fc   :  { %3871 = vmatpush.msrb.mxu3 %v5084_v58  ;;  %8752 = vst [vmem:[#allocation55_spill] sm:$0xff] %v7526_v14 }
 0x4fe   :  { %v7509_v36 = vpop.f32.mrf.mxu3 }
 0x503   :  { %5007 = vmatmul.msk.f32.gmra.mxu3 %vm1526_vm2, %v2377_v25  ;;  %v7532_v11 = vpop.f32.mrf.mxu0 }
 0x504   :  { %8753 = vst [vmem:[#allocation58_spill] sm:$0xff] %v7532_v11  ;;  %v3538_v11 = vld [vmem:[%s8564_s7] sm:$0xff] }
 0x505   :  { %3739 = vmatpush.msra.mxu2 %v3538_v11  ;;  %v2744_v11 = vadd.f32 %v7442_v40, %v7283_v43  ;;  %v2756_v43 = vadd.f32 %v7460_v10, %v7304_v38 }
 0x506   :  { %v7514_v0 = vpop.f32.mrf.mxu3 }
 0x50b   :  { %5008 = vmatmul.msk.f32.gmra.mxu3 %vm1526_vm2, %v7256_v54  ;;  %v7536_v44 = vpop.f32.mrf.mxu0 }
 0x50c   :  { %8754 = vst [vmem:[#allocation56_spill] sm:$0xff] %v7536_v44 }
 0x50e   :  { %v7520_v33 = vpop.f32.mrf.mxu3 }
 0x513   :  { %5009 = vmatmul.msk.f32.gmra.mxu3 %vm1526_vm2, %v2379_v50  ;;  %v7540_v29 = vpop.f32.mrf.mxu0 }
 0x514   :  { %8755 = vst [vmem:[#allocation57_spill] sm:$0xff] %v7540_v29  ;;  %v5083_v29 = vld [vmem:[%s8564_s7 + $0x48] sm:$0xff] }
 0x515   :  { %3872 = vmatpush.msrb.mxu3 %v5083_v29  ;;  %v2753_v29 = vadd.f32 %v7454_v3, %v7297_v45 }
 0x516   :  { %v7528_v25 = vpop.f32.mrf.mxu3 }
 0x51b   :  { %v7544_v42 = vpop.f32.mrf.mxu0 }
 0x51c   :  { %8757 = vst [vmem:[#allocation59_spill] sm:$0xff] %v7544_v42  ;;  %v5046_v42 = vld [vmem:[%s8564_s7 + $0x20] sm:$0xff] }
 0x51d   :  { %3626 = vmatpush.msra.mxu1 %v5046_v42  ;;  %v7579_v42 = vadd.f32 %v7320_v12, %v2744_v11  ;;  %v2762_v12 = vadd.f32 %v7472_v39, %v7322_v57 }
 0x51e   :  { %v7530_v52 = vpop.f32.mrf.mxu3 }
 0x51f   :  { %v3187_v45 = vmul.f32 %v7579_v42, %v7579_v42  ;;  %v7622_v39 = vadd.f32 %v7365_v31, %v2762_v12 }
 0x521   :  { %v3219_v10 = vsel %vm1526_vm2, %v3187_v45, 0.0 }
 0x523   :  { %v7553_v59 = vpop.f32.mrf.mxu0 }
 0x524   :  { %8760 = vst [vmem:[#allocation60_spill] sm:$0xff] %v7553_v59  ;;  %v2750_v59 = vadd.f32 %v7449_v37, %v7293_v53  ;;  %v7589_v53 = vadd.f32 %v7343_v32, %v2753_v29  ;;  %v7604_v32 = vadd.f32 %v7350_v41, %v2756_v43  ;;  %v2765_v41 = vadd.f32 %v7483_v8, %v7326_v60 }
 0x525   :  { %v2771_v60 = vadd.f32 %v7494_v13, %v7339_v16 }
 0x526   :  { %v7534_v54 = vpop.f32.mrf.mxu3  ;;  %v3190_v57 = vmul.f32 %v7589_v53, %v7589_v53  ;;  %v3122_v11 = vsel %vm1526_vm2, %v7589_v53, 0.0  ;;  %v3191_v29 = vmul.f32 %v7604_v32, %v7604_v32  ;;  %v3124_v31 = vsel %vm1526_vm2, %v7604_v32, 0.0 }
 0x527   :  { %v7639_v45 = vadd.f32 %v7373_v34, %v2765_v41 }
 0x528   :  { %v3224_v8 = vsel %vm1526_vm2, %v3190_v57, 0.0 }
 0x52e   :  { %v7538_v2 = vpop.f32.mrf.mxu3 }
 0x536   :  { %v7542_v58 = vpop.f32.mrf.mxu3 }
 0x537   :  { %8756 = vst [vmem:[#allocation62_spill] sm:$0xff] %v7542_v58 }
 0x53e   :  { %v7546_v50 = vpop.f32.mrf.mxu3 }
 0x53f   :  { %8758 = vst [vmem:[#allocation65_spill] sm:$0xff] %v7546_v50  ;;  %v2747_v50 = vadd.f32 %v7445_v27, %v7288_v48 }
 0x546   :  { %v7548_v14 = vpop.f32.mrf.mxu3 }
 0x547   :  { %8759 = vst [vmem:[#allocation61_spill] sm:$0xff] %v7548_v14  ;;  %v7563_v14 = vpop.f32.mrf.mxu0 }
 0x548   :  { %8762 = vst [vmem:[#allocation64_spill] sm:$0xff] %v7563_v14  ;;  %v7582_v14 = vadd.f32 %v7334_v1, %v2750_v59 }
 0x54a   :  { %v3189_v1 = vmul.f32 %v7582_v14, %v7582_v14  ;;  %v3120_v37 = vsel %vm1526_vm2, %v7582_v14, 0.0 }
 0x54e   :  { %v7555_v44 = vpop.f32.mrf.mxu3 }
 0x54f   :  { %8761 = vst [vmem:[#allocation68_spill] sm:$0xff] %v7555_v44  ;;  %v7572_v44 = vadd.f32 %v7328_v49, %v2747_v50  ;;  %v2759_v49 = vadd.f32 %v7465_v51, %v7312_v26  ;;  %v7593_v40 = vpop.f32.mrf.mxu0  ;;  %v3117_v26 = vsel %vm1526_vm2, %v7579_v42, 0.0  ;;  %v3222_v50 = vsel %vm1526_vm2, %v3189_v1, 0.0 }
 0x550   :  { %v2774_v1 = vadd.f32 %v7500_v56, %v7346_v46  ;;  %v2777_v46 = vadd.f32 %v7503_v17, %v7352_v4 }
 0x551   :  { %v3188_v48 = vmul.f32 %v7572_v44, %v7572_v44  ;;  %v3118_v38 = vsel %vm1526_vm2, %v7572_v44, 0.0  ;;  %v7616_v3 = vadd.f32 %v7358_v20, %v2759_v49  ;;  %v2768_v20 = vadd.f32 %v7489_v15, %v7332_v63 }
 0x552   :  { %v3119_v51 = vadd.f32 %v3118_v38, %v3117_v26  ;;  %v3193_v63 = vmul.f32 %v7622_v39, %v7622_v39  ;;  %v3226_v15 = vsel %vm1526_vm2, %v3191_v29, 0.0  ;;  %v7671_v29 = vadd.f32 %v7463_v18, %v2774_v1 }
 0x553   :  { %v3220_v59 = vsel %vm1526_vm2, %v3188_v48, 0.0  ;;  %v3192_v49 = vmul.f32 %v7616_v3, %v7616_v3  ;;  %v3126_v16 = vsel %vm1526_vm2, %v7616_v3, 0.0  ;;  %v7647_v13 = vadd.f32 %v7451_v24, %v2768_v20 }
 0x554   :  { %v3221_v43 = vadd.f32 %v3220_v59, %v3219_v10  ;;  %v3121_v48 = vadd.f32 %v3120_v37, %v3119_v51  ;;  %v7654_v37 = vadd.f32 %v7458_v22, %v2771_v60  ;;  %v3128_v10 = vsel %vm1526_vm2, %v7622_v39, 0.0 }
 0x555   :  { %v3228_v41 = vsel %vm1526_vm2, %v3192_v49, 0.0  ;;  %v3194_v24 = vmul.f32 %v7639_v45, %v7639_v45  ;;  %v3130_v22 = vsel %vm1526_vm2, %v7639_v45, 0.0  ;;  %v2780_v20 = vadd.f32 %v7509_v36, %v7356_v19 }
 0x556   :  { %v7574_v58 = vpop.f32.mrf.mxu3  ;;  %v3223_v12 = vadd.f32 %v3222_v50, %v3221_v43  ;;  %v3123_v38 = vadd.f32 %v3122_v11, %v3121_v48  ;;  %v3230_v50 = vsel %vm1526_vm2, %v3193_v63, 0.0  ;;  %v3195_v11 = vmul.f32 %v7647_v13, %v7647_v13 }
 0x557   :  { %v7651_v26 = vpop.f32.mrf.mxu0  ;;  %v3196_v4 = vmul.f32 %v7654_v37, %v7654_v37  ;;  %v3232_v17 = vsel %vm1526_vm2, %v3194_v24, 0.0  ;;  %v3132_v60 = vsel %vm1526_vm2, %v7647_v13, 0.0  ;;  %v2783_v18 = vadd.f32 %v7514_v0, %v7363_v28 }
 0x558   :  { %v3225_v34 = vadd.f32 %v3224_v8, %v3223_v12  ;;  %v3125_v59 = vadd.f32 %v3124_v31, %v3123_v38  ;;  %v7681_v8 = vadd.f32 %v7480_v35, %v2777_v46  ;;  %v2786_v19 = vadd.f32 %v7520_v33, %v7370_v61 }
 0x559   :  { %v3234_v36 = vsel %vm1526_vm2, %v3195_v11, 0.0  ;;  %v3134_v12 = vsel %vm1526_vm2, %v7654_v37, 0.0  ;;  %v3197_v38 = vmul.f32 %v7671_v29, %v7671_v29  ;;  %v7693_v63 = vadd.f32 %v7485_v5, %v2780_v20 }
 0x55a   :  { %v3227_v56 = vadd.f32 %v3226_v15, %v3225_v34  ;;  %v3127_v51 = vadd.f32 %v3126_v16, %v3125_v59  ;;  %v3236_v28 = vsel %vm1526_vm2, %v3196_v4, 0.0  ;;  %v3136_v61 = vsel %vm1526_vm2, %v7671_v29, 0.0 }
 0x55b   :  { %v3198_v33 = vmul.f32 %v7681_v8, %v7681_v8  ;;  %v7703_v16 = vadd.f32 %v7492_v30, %v2783_v18  ;;  %v2789_v1 = vadd.f32 %v7528_v25, %v7376_v9  ;;  %v3138_v24 = vsel %vm1526_vm2, %v7681_v8, 0.0 }
 0x55c   :  { %v3229_v43 = vadd.f32 %v3228_v41, %v3227_v56  ;;  %v3129_v48 = vadd.f32 %v3128_v10, %v3127_v51  ;;  %v7710_v41 = vadd.f32 %v7498_v6, %v2786_v19  ;;  %v3238_v10 = vsel %vm1526_vm2, %v3197_v38, 0.0  ;;  %v8765_v38 = vld [vmem:[#allocation55_spill] sm:$0xff] }
 0x55d   :  { %v3199_v46 = vmul.f32 %v7693_v63, %v7693_v63  ;;  %v2792_v30 = vadd.f32 %v7530_v52, %v7380_v62  ;;  %v2795_v25 = vadd.f32 %v7534_v54, %v7383_v21  ;;  %v3240_v51 = vsel %vm1526_vm2, %v3198_v33, 0.0 }
 0x55e   :  { %v7609_v27 = vpop.f32.mrf.mxu3  ;;  %v3231_v31 = vadd.f32 %v3230_v50, %v3229_v43  ;;  %v3131_v49 = vadd.f32 %v3130_v22, %v3129_v48  ;;  %v3140_v6 = vsel %vm1526_vm2, %v7693_v63, 0.0  ;;  %v3200_v50 = vmul.f32 %v7703_v16, %v7703_v16 }
 0x55f   :  { %v7707_v5 = vpop.f32.mrf.mxu0  ;;  %v7727_v22 = vadd.f32 %v7505_v55, %v2789_v1  ;;  %v3201_v62 = vmul.f32 %v7710_v41, %v7710_v41  ;;  %v3242_v52 = vsel %vm1526_vm2, %v3199_v46, 0.0  ;;  %v3142_v21 = vsel %vm1526_vm2, %v7703_v16, 0.0  ;;  %v8768_v46 = vld [vmem:[#allocation58_spill] sm:$0xff] }
 0x560   :  { %v3233_v35 = vadd.f32 %v3232_v17, %v3231_v31  ;;  %v3133_v15 = vadd.f32 %v3132_v60, %v3131_v49  ;;  %v7735_v54 = vadd.f32 %v7511_v7, %v2792_v30  ;;  %v2798_v43 = vadd.f32 %v7538_v2, %v7387_v47  ;;  %v8763_v7 = vld [vmem:[#allocation42_spill] sm:$0xff] }
 0x561   :  { %v7740_v55 = vadd.f32 %v7518_v23, %v2795_v25  ;;  %v3244_v60 = vsel %vm1526_vm2, %v3200_v50, 0.0  ;;  %v3144_v18 = vsel %vm1526_vm2, %v7710_v41, 0.0  ;;  %v3202_v31 = vmul.f32 %v7727_v22, %v7727_v22  ;;  %v8764_v49 = vld [vmem:[#allocation62_spill] sm:$0xff]  ;;  %v8771_v50 = vld [vmem:[#allocation45_spill] sm:$0xff] }
 0x562   :  { %v3235_v34 = vadd.f32 %v3234_v36, %v3233_v35  ;;  %v3135_v59 = vadd.f32 %v3134_v12, %v3133_v15  ;;  %v2801_v19 = vadd.f32 %v8764_v49, %v8763_v7  ;;  %v3246_v2 = vsel %vm1526_vm2, %v3201_v62, 0.0  ;;  %v8766_v15 = vld [vmem:[#allocation43_spill] sm:$0xff] }
 0x563   :  { %v3146_v23 = vsel %vm1526_vm2, %v7727_v22, 0.0  ;;  %v3203_v12 = vmul.f32 %v7735_v54, %v7735_v54  ;;  %v7757_v35 = vadd.f32 %v8765_v38, %v2798_v43  ;;  %v8773_v43 = vld [vmem:[#allocation56_spill] sm:$0xff]  ;;  %v8776_v38 = vld [vmem:[#allocation59_spill] sm:$0xff] }
 0x564   :  { %v3237_v56 = vadd.f32 %v3236_v28, %v3235_v34  ;;  %v3137_v9 = vadd.f32 %v3136_v61, %v3135_v59  ;;  %v8767_v28 = vld [vmem:[#allocation65_spill] sm:$0xff]  ;;  %v3204_v59 = vmul.f32 %v7740_v55, %v7740_v55  ;;  %v7769_v30 = vadd.f32 %v8768_v46, %v2801_v19  ;;  %v8778_v46 = vld [vmem:[#allocation47_spill] sm:$0xff] }
 0x565   :  { %v2804_v61 = vadd.f32 %v8767_v28, %v8766_v15  ;;  %v3250_v62 = vsel %vm1526_vm2, %v3203_v12, 0.0  ;;  %v3152_v7 = vsel %vm1526_vm2, %v7757_v35, 0.0  ;;  %v8774_v19 = vld [vmem:[#allocation57_spill] sm:$0xff] }
 0x566   :  { %v7656_v57 = vpop.f32.mrf.mxu3  ;;  %v3239_v11 = vadd.f32 %v3238_v10, %v3237_v56  ;;  %v3139_v20 = vadd.f32 %v3138_v24, %v3137_v9  ;;  %v3248_v10 = vsel %vm1526_vm2, %v3202_v31, 0.0  ;;  %v3148_v24 = vsel %vm1526_vm2, %v7735_v54, 0.0  ;;  %v8769_v56 = vld [vmem:[#allocation44_spill] sm:$0xff]  ;;  %v8770_v9 = vld [vmem:[#allocation61_spill] sm:$0xff] }
 0x567   :  { %v7761_v33 = vpop.f32.mrf.mxu0  ;;  %v2807_v25 = vadd.f32 %v8770_v9, %v8769_v56  ;;  %v3206_v49 = vmul.f32 %v7769_v30, %v7769_v30 }
 0x568   :  { %v3241_v48 = vadd.f32 %v3240_v51, %v3239_v11  ;;  %v3141_v4 = vadd.f32 %v3140_v6, %v3139_v20  ;;  %v8772_v11 = vld [vmem:[#allocation68_spill] sm:$0xff] }
 0x569   :  { %v2810_v20 = vadd.f32 %v8772_v11, %v8771_v50  ;;  %v3256_v56 = vsel %vm1526_vm2, %v3206_v49, 0.0 }
 0x56a   :  { %v3243_v36 = vadd.f32 %v3242_v52, %v3241_v48  ;;  %v3143_v47 = vadd.f32 %v3142_v21, %v3141_v4  ;;  %v3150_v52 = vsel %vm1526_vm2, %v7740_v55, 0.0  ;;  %v3205_v21 = vmul.f32 %v7757_v35, %v7757_v35 }
 0x56b   :  { %v7781_v48 = vadd.f32 %v8773_v43, %v2804_v61  ;;  %v7794_v15 = vadd.f32 %v8776_v38, %v2810_v20  ;;  %v3154_v61 = vsel %vm1526_vm2, %v7769_v30, 0.0  ;;  %v8781_v43 = vld [vmem:[#allocation49_spill] sm:$0xff] }
 0x56c   :  { %v3245_v1 = vadd.f32 %v3244_v60, %v3243_v36  ;;  %v3145_v34 = vadd.f32 %v3144_v18, %v3143_v47  ;;  %v3252_v18 = vsel %vm1526_vm2, %v3204_v59, 0.0  ;;  %v7789_v36 = vadd.f32 %v8774_v19, %v2807_v25  ;;  %v8775_v47 = vld [vmem:[#allocation46_spill] sm:$0xff] }
 0x56d   :  { %v3254_v28 = vsel %vm1526_vm2, %v3205_v21, 0.0  ;;  %v3156_v9 = vsel %vm1526_vm2, %v7781_v48, 0.0 }
 0x56e   :  { %v7696_v0 = vpop.f32.mrf.mxu3  ;;  %v3247_v51 = vadd.f32 %v3246_v2, %v3245_v1  ;;  %v3147_v6 = vadd.f32 %v3146_v23, %v3145_v34  ;;  %v2813_v2 = vadd.f32 %v7574_v58, %v8775_v47  ;;  %v3207_v1 = vmul.f32 %v7781_v48, %v7781_v48  ;;  %v8777_v34 = vld [vmem:[#allocation48_spill] sm:$0xff] }
 0x56f   :  { %v2816_v59 = vadd.f32 %v7609_v27, %v8777_v34  ;;  %v2819_v58 = vadd.f32 %v7656_v57, %v8778_v46  ;;  %v3208_v25 = vmul.f32 %v7789_v36, %v7789_v36  ;;  %v3076_v50 = vpop.f32.mrf.mxu0  ;;  %v3209_v27 = vmul.f32 %v7794_v15, %v7794_v15  ;;  %v8783_v34 = vld [vmem:[#allocation50_spill] sm:$0xff] }
 0x570   :  { %v3249_v4 = vadd.f32 %v3248_v10, %v3247_v51  ;;  %v3149_v60 = vadd.f32 %v3148_v24, %v3147_v6  ;;  %v8779_v51 = vld [vmem:[#allocation60_spill] sm:$0xff]  ;;  %v3158_v57 = vsel %vm1526_vm2, %v7789_v36, 0.0  ;;  %v3160_v47 = vsel %vm1526_vm2, %v7794_v15, 0.0 }
 0x571   :  { %v7811_v6 = vadd.f32 %v8779_v51, %v2813_v2  ;;  %v3260_v19 = vsel %vm1526_vm2, %v3208_v25, 0.0 }
 0x572   :  { %v3251_v23 = vadd.f32 %v3250_v62, %v3249_v4  ;;  %v3151_v12 = vadd.f32 %v3150_v52, %v3149_v60  ;;  %v3258_v62 = vsel %vm1526_vm2, %v3207_v1, 0.0  ;;  %v8780_v52 = vld [vmem:[#allocation64_spill] sm:$0xff]  ;;  %v2822_v4 = vadd.f32 %v7696_v0, %v8781_v43 }
 0x573   :  { %v7819_v21 = vadd.f32 %v8780_v52, %v2816_v59  ;;  %v3210_v2 = vmul.f32 %v7811_v6, %v7811_v6  ;;  %v3262_v0 = vsel %vm1526_vm2, %v3209_v27, 0.0 }
 0x574   :  { %v3253_v10 = vadd.f32 %v3252_v18, %v3251_v23  ;;  %v3153_v24 = vadd.f32 %v3152_v7, %v3151_v12  ;;  %v7824_v7 = vadd.f32 %v7593_v40, %v2819_v58  ;;  %v8782_v23 = vld [vmem:[#allocation51_spill] sm:$0xff]  ;;  %v3162_v40 = vsel %vm1526_vm2, %v7811_v6, 0.0 }
 0x575   :  { %v7839_v1 = vadd.f32 %v7651_v26, %v2822_v4  ;;  %v3264_v46 = vsel %vm1526_vm2, %v3210_v2, 0.0  ;;  %v3164_v58 = vsel %vm1526_vm2, %v7819_v21, 0.0 }
 0x576   :  { %v7742_v17 = vpop.f32.mrf.mxu3  ;;  %v3255_v11 = vadd.f32 %v3254_v28, %v3253_v10  ;;  %v3155_v20 = vadd.f32 %v3154_v61, %v3153_v24  ;;  %v3211_v61 = vmul.f32 %v7819_v21, %v7819_v21 }
 0x577   :  { %v2825_v12 = vadd.f32 %v7742_v17, %v8782_v23  ;;  %v3212_v17 = vmul.f32 %v7824_v7, %v7824_v7  ;;  %v3168_v4 = vsel %vm1526_vm2, %v7839_v1, 0.0 }
 0x578   :  { %v3257_v60 = vadd.f32 %v3256_v56, %v3255_v11  ;;  %v3157_v18 = vadd.f32 %v3156_v9, %v3155_v20  ;;  %v8784_v9 = vld [vmem:[#allocation52_spill] sm:$0xff]  ;;  %v3266_v11 = vsel %vm1526_vm2, %v3211_v61, 0.0  ;;  %v3213_v20 = vmul.f32 %v7839_v1, %v7839_v1 }
 0x579   :  { %v7848_v56 = vadd.f32 %v7707_v5, %v2825_v12  ;;  %v3268_v5 = vsel %vm1526_vm2, %v3212_v17, 0.0 }
 0x57a   :  { %v3259_v38 = vadd.f32 %v3258_v62, %v3257_v60  ;;  %v3159_v28 = vadd.f32 %v3158_v57, %v3157_v18  ;;  %v3079_v62 = vpop.f32.mrf.mxu0 }
 0x57b   :  { %v3214_v60 = vmul.f32 %v7848_v56, %v7848_v56  ;;  %v3170_v23 = vsel %vm1526_vm2, %v7848_v56, 0.0 }
 0x57c   :  { %v3261_v10 = vadd.f32 %v3260_v19, %v3259_v38  ;;  %v3161_v24 = vadd.f32 %v3160_v47, %v3159_v28 }
 0x57e   :  { %v2827_v31 = vpop.f32.mrf.mxu3  ;;  %v3263_v51 = vadd.f32 %v3262_v0, %v3261_v10  ;;  %v3163_v26 = vadd.f32 %v3162_v40, %v3161_v24  ;;  %v3272_v40 = vsel %vm1526_vm2, %v3214_v60, 0.0 }
 0x57f   :  { %v2828_v59 = vadd.f32 %v2827_v31, %v8783_v34  ;;  %v3166_v31 = vsel %vm1526_vm2, %v7824_v7, 0.0 }
 0x580   :  { %v3265_v57 = vadd.f32 %v3264_v46, %v3263_v51  ;;  %v3165_v52 = vadd.f32 %v3164_v58, %v3163_v26  ;;  %v8786_v26 = vld [vmem:[#allocation53_spill] sm:$0xff] }
 0x581   :  { %v7857_v27 = vadd.f32 %v7761_v33, %v2828_v59  ;;  %v3270_v33 = vsel %vm1526_vm2, %v3213_v20, 0.0 }
 0x582   :  { %v3267_v47 = vadd.f32 %v3266_v11, %v3265_v57  ;;  %v3167_v2 = vadd.f32 %v3166_v31, %v3165_v52  ;;  %v3082_v31 = vpop.f32.mrf.mxu0 }
 0x583   :  { %v3215_v12 = vmul.f32 %v7857_v27, %v7857_v27 }
 0x584   :  { %v3269_v28 = vadd.f32 %v3268_v5, %v3267_v47  ;;  %v3169_v0 = vadd.f32 %v3168_v4, %v3167_v2 }
 0x585   :  { %v3274_v10 = vsel %vm1526_vm2, %v3215_v12, 0.0 }
 0x586   :  { %v2830_v49 = vpop.f32.mrf.mxu3  ;;  %v3271_v34 = vadd.f32 %v3270_v33, %v3269_v28  ;;  %v3171_v59 = vadd.f32 %v3170_v23, %v3169_v0 }
 0x587   :  { %v2831_v25 = vadd.f32 %v2830_v49, %v8784_v9  ;;  %v8785_v49 = vld [vmem:[#allocation54_spill] sm:$0xff] }
 0x588   :  { %v3273_v46 = vadd.f32 %v3272_v40, %v3271_v34 }
 0x589   :  { %v7864_v18 = vadd.f32 %v3076_v50, %v2831_v25  ;;  %v3172_v50 = vsel %vm1526_vm2, %v7857_v27, 0.0 }
 0x58a   :  { %v3173_v58 = vadd.f32 %v3172_v50, %v3171_v59  ;;  %v3275_v20 = vadd.f32 %v3274_v10, %v3273_v46 }
 0x58b   :  { %v3216_v61 = vmul.f32 %v7864_v18, %v7864_v18  ;;  %v3174_v24 = vsel %vm1526_vm2, %v7864_v18, 0.0 }
 0x58d   :  { %v3276_v25 = vsel %vm1526_vm2, %v3216_v61, 0.0 }
 0x58e   :  { %v2833_v43 = vpop.f32.mrf.mxu3  ;;  %v3277_v5 = vadd.f32 %v3276_v25, %v3275_v20  ;;  %v5082_v20 = vld [vmem:[%s8564_s7 + $0x40] sm:$0xff] }
 0x58f   :  { %v2834_v19 = vadd.f32 %v2833_v43, %v8785_v49  ;;  %3873 = vmatpush.msrb.mxu3 %v5082_v20 }
 0x591   :  { %v7872_v38 = vadd.f32 %v3079_v62, %v2834_v19  ;;  %v3175_v62 = vadd.f32 %v3174_v24, %v3173_v58 }
 0x593   :  { %v3217_v17 = vmul.f32 %v7872_v38, %v7872_v38  ;;  %v3176_v51 = vsel %vm1526_vm2, %v7872_v38, 0.0 }
 0x594   :  { %v3177_v43 = vadd.f32 %v3176_v51, %v3175_v62 }
 0x595   :  { %v3278_v57 = vsel %vm1526_vm2, %v3217_v17, 0.0 }
 0x596   :  { %v2836_v9 = vpop.f32.mrf.mxu3  ;;  %v3279_v49 = vadd.f32 %v3278_v57, %v3277_v5  ;;  %v3292_v5 = vld [vmem:[%s8562_s5] sm:$0x1] }
 0x597   :  { %v2837_v11 = vadd.f32 %v2836_v9, %v8786_v26 }
 0x599   :  { %v3116_v52 = vadd.f32 %v3082_v31, %v2837_v11 }
 0x59b   :  { %v3178_v4 = vsel %vm1526_vm2, %v3116_v52, 0.0  ;;  %v3218_v60 = vmul.f32 %v3116_v52, %v3116_v52 }
 0x59c   :  { %v3179_v19 = vadd.f32 %v3178_v4, %v3177_v43 }
 0x59d   :  { %v3280_v47 = vsel %vm1526_vm2, %v3218_v60, 0.0 }
 0x59e   :  { %v3180_v2 = vrot.slane %v3179_v19, 4  ;;  %v3281_v33 = vadd.f32 %v3280_v47, %v3279_v49  ;;  %v3305_v49 = vld [vmem:[%s8563_s6] sm:$0x1] }
 0x5a0   :  { %v3181_v23 = vadd.f32 %v3180_v2, %v3179_v19  ;;  %v3282_v12 = vrot.slane %v3281_v33, 4 }
 0x5a2   :  { %v3182_v28 = vrot.slane %v3181_v23, 2  ;;  %v3283_v0 = vadd.f32 %v3282_v12, %v3281_v33 }
 0x5a4   :  { %v3183_v40 = vadd.f32 %v3182_v28, %v3181_v23  ;;  %v3284_v50 = vrot.slane %v3283_v0, 2 }
 0x5a6   :  { %v3184_v61 = vrot.slane %v3183_v40, 1  ;;  %v3285_v34 = vadd.f32 %v3284_v50, %v3283_v0 }
 0x5a8   :  { %v3185_v59 = vadd.f32 %v3184_v61, %v3183_v40  ;;  %v3286_v10 = vrot.slane %v3285_v34, 1 }
 0x5aa   :  { %v3186_v24 = vmul.f32 0.00390625, %v3185_v59  ;;  %v3287_v17 = vadd.f32 %v3286_v10, %v3285_v34 }
 0x5ac   :  { %v3288_v46 = vmul.f32 0.00390625, %v3287_v17  ;;  %v3289_v58 = vmul.f32 %v3186_v24, %v3186_v24 }
 0x5ae   :  { %v3290_v9 = vsub.f32 %v3288_v46, %v3289_v58 }
 0x5b0   :  { %v3291_v25 = vmax.f32 %v3290_v9, 0.0 }
 0x5b2   :  { %v3293_v51 = vadd.f32 1e-05, %v3291_v25 }
 0x5b4   :  { %5158 = vrsqrt.f32 %v3293_v51  ;;  %vm3300_vm8 = vweird.f32 %v3293_v51 }
 0x5ba   :  { %v5159_v26 = vpop.eup %5158 }
 0x5bb   :  { %v3295_v11 = vmul.f32 %v5159_v26, %v3293_v51  ;;  %vm3301_vm7 = vweird.f32 %v5159_v26 }
 0x5bc   :  { %vm3302_vm9 = vmor %vm3300_vm8, %vm3301_vm7  ;;  %vm4578_vm7 = vcmask 1047559   ;;  %vm4727_vm8 = vcmask 56320  }
 0x5bd   :  { %v3296_v31 = vmul.f32 %v5159_v26, %v3295_v11 }
 0x5bf   :  { %v3297_v62 = vmul.f32 0.5, %v3296_v31 }
 0x5c1   :  { %v3298_v57 = vsub.f32 1.5, %v3297_v62 }
 0x5c3   :  { %v3299_v43 = vmul.f32 %v5159_v26, %v3298_v57 }
 0x5c5   :  { %v3303_v4 = vsel %vm3302_vm9, %v5159_v26, %v3299_v43 }
 0x5c6   :  { %v3304_v60 = vmul.f32 %v3303_v4, %v3292_v5 }
 0x5c8   :  { %v3306_v19 = vmul.f32 %v3304_v60, %v3186_v24  ;;  %v7900_v47 = vperm.slane %v3304_v60, 0 }
 0x5ca   :  { %v3307_v2 = vsub.f32 %v3305_v49, %v3306_v19  ;;  %v3341_v33 = vmul.f32 %v7900_v47, %v7872_v38  ;;  %v3342_v23 = vmul.f32 %v7900_v47, %v3116_v52  ;;  %v3311_v61 = vmul.f32 %v7900_v47, %v7579_v42 }
 0x5cb   :  { %v3312_v38 = vmul.f32 %v7900_v47, %v7572_v44  ;;  %v3313_v52 = vmul.f32 %v7900_v47, %v7582_v14  ;;  %v3314_v34 = vmul.f32 %v7900_v47, %v7589_v53  ;;  %v3315_v24 = vmul.f32 %v7900_v47, %v7604_v32 }
 0x5cc   :  { %v7905_v12 = vperm.slane %v3307_v2, 0  ;;  %v3316_v42 = vmul.f32 %v7900_v47, %v7616_v3  ;;  %v3317_v14 = vmul.f32 %v7900_v47, %v7622_v39  ;;  %v3318_v53 = vmul.f32 %v7900_v47, %v7639_v45 }
 0x5cd   :  { %v3319_v3 = vmul.f32 %v7900_v47, %v7647_v13  ;;  %v3320_v20 = vmul.f32 %v7900_v47, %v7654_v37  ;;  %v3321_v62 = vmul.f32 %v7900_v47, %v7671_v29  ;;  %v3322_v13 = vmul.f32 %v7900_v47, %v7681_v8 }
 0x5ce   :  { %v3376_v28 = vadd.f32 %v7905_v12, %v3341_v33  ;;  %v3377_v0 = vadd.f32 %v7905_v12, %v3342_v23  ;;  %v3346_v59 = vadd.f32 %v7905_v12, %v3311_v61  ;;  %v3347_v10 = vadd.f32 %v7905_v12, %v3312_v38 }
 0x5cf   :  { %v3348_v17 = vadd.f32 %v7905_v12, %v3313_v52  ;;  %v3349_v44 = vadd.f32 %v7905_v12, %v3314_v34  ;;  %v3350_v9 = vadd.f32 %v7905_v12, %v3315_v24  ;;  %v3351_v32 = vadd.f32 %v7905_v12, %v3316_v42 }
 0x5d0   :  { %v3408_v40 = vmax.f32 %v3376_v28, 0.0  ;;  %v3409_v50 = vmax.f32 %v3377_v0, 0.0  ;;  %v3378_v51 = vmax.f32 %v3346_v59, 0.0  ;;  %v3379_v26 = vmax.f32 %v3347_v10, 0.0 }
 0x5d1   :  { %v3352_v11 = vadd.f32 %v7905_v12, %v3317_v14  ;;  %v3380_v31 = vmax.f32 %v3348_v17, 0.0  ;;  %v3353_v39 = vadd.f32 %v7905_v12, %v3318_v53  ;;  %v3381_v45 = vmax.f32 %v3349_v44, 0.0 }
 0x5d2   :  { %3440 = vst.msk [vmem:[#allocation2 + $0x1d0] sm:$0xff] %vm1526_vm2, %v3408_v40  ;;  %v3354_v57 = vadd.f32 %v7905_v12, %v3319_v3  ;;  %v3382_v5 = vmax.f32 %v3350_v9, 0.0  ;;  %v3355_v43 = vadd.f32 %v7905_v12, %v3320_v20  ;;  %v3383_v4 = vmax.f32 %v3351_v32, 0.0 }
 0x5d3   :  { %3441 = vst.msk [vmem:[#allocation2 + $0x1d8] sm:$0xff] %vm1526_vm2, %v3409_v50  ;;  %v3323_v37 = vmul.f32 %v7900_v47, %v7693_v63  ;;  %v3356_v60 = vadd.f32 %v7905_v12, %v3321_v62  ;;  %v3384_v49 = vmax.f32 %v3352_v11, 0.0  ;;  %v3324_v29 = vmul.f32 %v7900_v47, %v7703_v16 }
 0x5d4   :  { %3410 = vst.msk [vmem:[#allocation2] sm:$0xff] %vm1526_vm2, %v3378_v51  ;;  %v3357_v19 = vadd.f32 %v7905_v12, %v3322_v13  ;;  %v3385_v2 = vmax.f32 %v3353_v39, 0.0  ;;  %v3325_v8 = vmul.f32 %v7900_v47, %v7710_v41  ;;  %v3386_v23 = vmax.f32 %v3354_v57, 0.0 }
 0x5d5   :  { %3411 = vst.msk [vmem:[#allocation2 + $0x8] sm:$0xff] %vm1526_vm2, %v3379_v26  ;;  %v3358_v33 = vadd.f32 %v7905_v12, %v3323_v37  ;;  %v3326_v63 = vmul.f32 %v7900_v47, %v7727_v22  ;;  %v3359_v28 = vadd.f32 %v7905_v12, %v3324_v29  ;;  %v3387_v0 = vmax.f32 %v3355_v43, 0.0 }
 0x5d6   :  { %3412 = vst.msk [vmem:[#allocation2 + $0x10] sm:$0xff] %vm1526_vm2, %v3380_v31  ;;  %v3327_v16 = vmul.f32 %v7900_v47, %v7735_v54  ;;  %v3360_v40 = vadd.f32 %v7905_v12, %v3325_v8  ;;  %v3388_v50 = vmax.f32 %v3356_v60, 0.0  ;;  %v3328_v41 = vmul.f32 %v7900_v47, %v7740_v55 }
 0x5d7   :  { %3413 = vst.msk [vmem:[#allocation2 + $0x18] sm:$0xff] %vm1526_vm2, %v3381_v45  ;;  %v3361_v61 = vadd.f32 %v7905_v12, %v3326_v63  ;;  %v3389_v38 = vmax.f32 %v3357_v19, 0.0  ;;  %v3329_v22 = vmul.f32 %v7900_v47, %v7757_v35  ;;  %v3390_v34 = vmax.f32 %v3358_v33, 0.0 }
 0x5d8   :  { %3414 = vst.msk [vmem:[#allocation2 + $0x40] sm:$0xff] %vm1526_vm2, %v3382_v5  ;;  %v3362_v52 = vadd.f32 %v7905_v12, %v3327_v16  ;;  %v3330_v54 = vmul.f32 %v7900_v47, %v7769_v30  ;;  %v3363_v59 = vadd.f32 %v7905_v12, %v3328_v41  ;;  %v3391_v10 = vmax.f32 %v3359_v28, 0.0 }
 0x5d9   :  { %3415 = vst.msk [vmem:[#allocation2 + $0x48] sm:$0xff] %vm1526_vm2, %v3383_v4  ;;  %v3331_v55 = vmul.f32 %v7900_v47, %v7781_v48  ;;  %v3364_v24 = vadd.f32 %v7905_v12, %v3329_v22  ;;  %v3392_v17 = vmax.f32 %v3360_v40, 0.0  ;;  %v3332_v35 = vmul.f32 %v7900_v47, %v7789_v36 }
 0x5da   :  { %v3457_v46 = vld [vmem:[#allocation2 + $0x1d0] ss:$2 sm:$0xff]  ;;  %v3473_v58 = vld [vmem:[#allocation2 + $0x1d1] ss:$2 sm:$0xff]  ;;  %3416 = vst.msk [vmem:[#allocation2 + $0x50] sm:$0xff] %vm1526_vm2, %v3384_v49  ;;  %v3365_v42 = vadd.f32 %v7905_v12, %v3330_v54  ;;  %v3393_v44 = vmax.f32 %v3361_v61, 0.0  ;;  %v3333_v30 = vmul.f32 %v7900_v47, %v7794_v15  ;;  %v3334_v48 = vmul.f32 %v7900_v47, %v7811_v6 }
 0x5db   :  { %v3489_v25 = vmax.f32 %v3457_v46, %v3473_v58  ;;  %3417 = vst.msk [vmem:[#allocation2 + $0x58] sm:$0xff] %vm1526_vm2, %v3385_v2  ;;  %v3366_v46 = vadd.f32 %v7905_v12, %v3331_v55  ;;  %v3394_v58 = vmax.f32 %v3362_v52, 0.0  ;;  %v3367_v14 = vadd.f32 %v7905_v12, %v3332_v35 }
 0x5dc   :  { %3418 = vst.msk [vmem:[#allocation2 + $0x80] sm:$0xff] %vm1526_vm2, %v3386_v23  ;;  %v3395_v53 = vmax.f32 %v3363_v59, 0.0  ;;  %v3335_v36 = vmul.f32 %v7900_v47, %v7819_v21  ;;  %v3368_v9 = vadd.f32 %v7905_v12, %v3333_v30  ;;  %v3336_v15 = vmul.f32 %v7900_v47, %v7824_v7  ;;  %v3442_v43 = vld [vmem:[#allocation2] ss:$2 sm:$0xff]  ;;  %v3458_v4 = vld [vmem:[#allocation2 + $0x1] ss:$2 sm:$0xff] }
 0x5dd   :  { %3513 = vst.msk [vmem:[#allocation3 + $0x121] sm:$0xff] %vm1526_vm2, %v3489_v25  ;;  %v3396_v25 = vmax.f32 %v3364_v24, 0.0  ;;  %v3369_v32 = vadd.f32 %v7905_v12, %v3334_v48  ;;  %v3397_v51 = vmax.f32 %v3365_v42, 0.0  ;;  %v3337_v6 = vmul.f32 %v7900_v47, %v7839_v1 }
 0x5de   :  { %3419 = vst.msk [vmem:[#allocation2 + $0x88] sm:$0xff] %vm1526_vm2, %v3387_v0  ;;  %v3370_v26 = vadd.f32 %v7905_v12, %v3335_v36  ;;  %v3398_v3 = vmax.f32 %v3366_v46, 0.0  ;;  %v3338_v21 = vmul.f32 %v7900_v47, %v7848_v56  ;;  %v3371_v11 = vadd.f32 %v7905_v12, %v3336_v15  ;;  %v3459_v49 = vld [vmem:[#allocation2 + $0x11] ss:$2 sm:$0xff] }
 0x5df   :  { %3420 = vst.msk [vmem:[#allocation2 + $0x90] sm:$0xff] %vm1526_vm2, %v3388_v50  ;;  %v3399_v31 = vmax.f32 %v3367_v14, 0.0  ;;  %v3339_v7 = vmul.f32 %v7900_v47, %v7857_v27  ;;  %v3372_v20 = vadd.f32 %v7905_v12, %v3337_v6  ;;  %v3400_v39 = vmax.f32 %v3368_v9, 0.0 }
 0x5e0   :  { %3421 = vst.msk [vmem:[#allocation2 + $0x98] sm:$0xff] %vm1526_vm2, %v3389_v38  ;;  %v3340_v1 = vmul.f32 %v7900_v47, %v7864_v18  ;;  %v3373_v45 = vadd.f32 %v7905_v12, %v3338_v21  ;;  %v3401_v62 = vmax.f32 %v3369_v32, 0.0  ;;  %v3402_v57 = vmax.f32 %v3370_v26, 0.0  ;;  %v3443_v47 = vld [vmem:[#allocation2 + $0x10] ss:$2 sm:$0xff] }
 0x5e1   :  { %3422 = vst.msk [vmem:[#allocation2 + $0xc0] sm:$0xff] %vm1526_vm2, %v3390_v34  ;;  %v3374_v56 = vadd.f32 %v7905_v12, %v3339_v7  ;;  %v3403_v5 = vmax.f32 %v3371_v11, 0.0  ;;  %v3404_v13 = vmax.f32 %v3372_v20, 0.0  ;;  %v3444_v60 = vld [vmem:[#allocation2 + $0x40] ss:$2 sm:$0xff]  ;;  %v3474_v33 = vmax.f32 %v3442_v43, %v3458_v4 }
 0x5e2   :  { %3423 = vst.msk [vmem:[#allocation2 + $0xc8] sm:$0xff] %vm1526_vm2, %v3391_v10  ;;  %v3375_v27 = vadd.f32 %v7905_v12, %v3340_v1  ;;  %v3405_v18 = vmax.f32 %v3373_v45, 0.0  ;;  %v3445_v12 = vld [vmem:[#allocation2 + $0x50] ss:$2 sm:$0xff]  ;;  %v3460_v19 = vld [vmem:[#allocation2 + $0x41] ss:$2 sm:$0xff]  ;;  %v3475_v28 = vmax.f32 %v3443_v47, %v3459_v49 }
 0x5e3   :  { %3424 = vst.msk [vmem:[#allocation2 + $0xd0] sm:$0xff] %vm1526_vm2, %v3392_v17  ;;  %v3406_v37 = vmax.f32 %v3374_v56, 0.0  ;;  %v3461_v8 = vld [vmem:[#allocation2 + $0x51] ss:$2 sm:$0xff]  ;;  %v3476_v40 = vmax.f32 %v3444_v60, %v3460_v19  ;;  %v8787_v11 = vmov 0.0  }
 0x5e4   :  { %3425 = vst.msk [vmem:[#allocation2 + $0xd8] sm:$0xff] %vm1526_vm2, %v3393_v44  ;;  %v3407_v29 = vmax.f32 %v3375_v27, 0.0  ;;  %v3477_v61 = vmax.f32 %v3445_v12, %v3461_v8 }
 0x5e5   :  { %3426 = vst.msk [vmem:[#allocation2 + $0x100] sm:$0xff] %vm1526_vm2, %v3394_v58  ;;  %v3446_v2 = vld [vmem:[#allocation2 + $0x80] ss:$2 sm:$0xff]  ;;  %v3462_v63 = vld [vmem:[#allocation2 + $0x81] ss:$2 sm:$0xff] }
 0x5e6   :  { %3427 = vst.msk [vmem:[#allocation2 + $0x108] sm:$0xff] %vm1526_vm2, %v3395_v53  ;;  %v3478_v52 = vmax.f32 %v3446_v2, %v3462_v63 }
 0x5e7   :  { %3428 = vst.msk [vmem:[#allocation2 + $0x110] sm:$0xff] %vm1526_vm2, %v3396_v25  ;;  %v3447_v23 = vld [vmem:[#allocation2 + $0x90] ss:$2 sm:$0xff]  ;;  %v3463_v16 = vld [vmem:[#allocation2 + $0x91] ss:$2 sm:$0xff] }
 0x5e8   :  { %3429 = vst.msk [vmem:[#allocation2 + $0x118] sm:$0xff] %vm1526_vm2, %v3397_v51  ;;  %v3479_v59 = vmax.f32 %v3447_v23, %v3463_v16 }
 0x5e9   :  { %3430 = vst.msk [vmem:[#allocation2 + $0x140] sm:$0xff] %vm1526_vm2, %v3398_v3  ;;  %v3448_v0 = vld [vmem:[#allocation2 + $0xc0] ss:$2 sm:$0xff]  ;;  %v3464_v41 = vld [vmem:[#allocation2 + $0xc1] ss:$2 sm:$0xff] }
 0x5ea   :  { %3431 = vst.msk [vmem:[#allocation2 + $0x148] sm:$0xff] %vm1526_vm2, %v3399_v31  ;;  %v3480_v24 = vmax.f32 %v3448_v0, %v3464_v41 }
 0x5eb   :  { %3432 = vst.msk [vmem:[#allocation2 + $0x150] sm:$0xff] %vm1526_vm2, %v3400_v39  ;;  %v3449_v50 = vld [vmem:[#allocation2 + $0xd0] ss:$2 sm:$0xff]  ;;  %v3465_v22 = vld [vmem:[#allocation2 + $0xd1] ss:$2 sm:$0xff] }
 0x5ec   :  { %3433 = vst.msk [vmem:[#allocation2 + $0x158] sm:$0xff] %vm1526_vm2, %v3401_v62  ;;  %v3481_v42 = vmax.f32 %v3449_v50, %v3465_v22 }
 0x5ed   :  { %3434 = vst.msk [vmem:[#allocation2 + $0x180] sm:$0xff] %vm1526_vm2, %v3402_v57  ;;  %v3450_v38 = vld [vmem:[#allocation2 + $0x100] ss:$2 sm:$0xff]  ;;  %v3466_v54 = vld [vmem:[#allocation2 + $0x101] ss:$2 sm:$0xff] }
 0x5ee   :  { %3435 = vst.msk [vmem:[#allocation2 + $0x188] sm:$0xff] %vm1526_vm2, %v3403_v5  ;;  %v3482_v46 = vmax.f32 %v3450_v38, %v3466_v54 }
 0x5ef   :  { %3436 = vst.msk [vmem:[#allocation2 + $0x190] sm:$0xff] %vm1526_vm2, %v3404_v13  ;;  %v3451_v34 = vld [vmem:[#allocation2 + $0x110] ss:$2 sm:$0xff]  ;;  %v3467_v55 = vld [vmem:[#allocation2 + $0x111] ss:$2 sm:$0xff] }
 0x5f0   :  { %3437 = vst.msk [vmem:[#allocation2 + $0x198] sm:$0xff] %vm1526_vm2, %v3405_v18  ;;  %v3483_v14 = vmax.f32 %v3451_v34, %v3467_v55 }
 0x5f1   :  { %3438 = vst.msk [vmem:[#allocation2 + $0x1c0] sm:$0xff] %vm1526_vm2, %v3406_v37  ;;  %v3452_v10 = vld [vmem:[#allocation2 + $0x140] ss:$2 sm:$0xff]  ;;  %v3468_v35 = vld [vmem:[#allocation2 + $0x141] ss:$2 sm:$0xff] }
 0x5f2   :  { %3439 = vst.msk [vmem:[#allocation2 + $0x1c8] sm:$0xff] %vm1526_vm2, %v3407_v29  ;;  %v3484_v9 = vmax.f32 %v3452_v10, %v3468_v35  ;;  %v3804_v35 = vld [vmem:[#allocation3 + $0x122] sm:$0xff] }
 0x5f3   :  { %3498 = vst.msk [vmem:[#allocation3 + $0x1] sm:$0xff] %vm1526_vm2, %v3474_v33  ;;  %v3453_v17 = vld [vmem:[#allocation2 + $0x150] ss:$2 sm:$0xff]  ;;  %v3469_v30 = vld [vmem:[#allocation2 + $0x151] ss:$2 sm:$0xff] }
 0x5f4   :  { %3499 = vst.msk [vmem:[#allocation3 + $0x9] sm:$0xff] %vm1526_vm2, %v3475_v28  ;;  %v3485_v15 = vmax.f32 %v3453_v17, %v3469_v30 }
 0x5f5   :  { %3500 = vst.msk [vmem:[#allocation3 + $0x29] sm:$0xff] %vm1526_vm2, %v3476_v40  ;;  %v3454_v44 = vld [vmem:[#allocation2 + $0x180] ss:$2 sm:$0xff]  ;;  %v3470_v48 = vld [vmem:[#allocation2 + $0x181] ss:$2 sm:$0xff] }
 0x5f6   :  { %3501 = vst.msk [vmem:[#allocation3 + $0x31] sm:$0xff] %vm1526_vm2, %v3477_v61  ;;  %v3486_v6 = vmax.f32 %v3454_v44, %v3470_v48  ;;  %v3557_v40 = vld [vmem:[#allocation3 + $0x121] sm:$0xff] }
 0x5f7   :  { %3502 = vst.msk [vmem:[#allocation3 + $0x51] sm:$0xff] %vm1526_vm2, %v3478_v52  ;;  %v3455_v58 = vld [vmem:[#allocation2 + $0x190] ss:$2 sm:$0xff]  ;;  %v3471_v36 = vld [vmem:[#allocation2 + $0x191] ss:$2 sm:$0xff] }
 0x5f8   :  { %3503 = vst.msk [vmem:[#allocation3 + $0x59] sm:$0xff] %vm1526_vm2, %v3479_v59  ;;  %v3487_v3 = vmax.f32 %v3455_v58, %v3471_v36 }
 0x5f9   :  { %v3456_v53 = vld [vmem:[#allocation2 + $0x1c0] ss:$2 sm:$0xff]  ;;  %3504 = vst.msk [vmem:[#allocation3 + $0x79] sm:$0xff] %vm1526_vm2, %v3480_v24  ;;  %v3472_v25 = vld [vmem:[#allocation2 + $0x1c1] ss:$2 sm:$0xff] }
 0x5fa   :  { %v3542_v32 = vld [vmem:[#allocation3 + $0x1] sm:$0xff]  ;;  %3505 = vst.msk [vmem:[#allocation3 + $0x81] sm:$0xff] %vm1526_vm2, %v3481_v42  ;;  %v3488_v21 = vmax.f32 %v3456_v53, %v3472_v25 }
 0x5fb   :  { %v3522_v51 = vld [vmem:[#allocation3] sm:$0xff]  ;;  %5050 = vmatmul.msk.f32.vlgmr.msra.gmra.mxu1 %vm1526_vm2, %v3542_v32  ;;  %3506 = vst.msk [vmem:[#allocation3 + $0xa1] sm:$0xff] %vm1526_vm2, %v3482_v46  ;;  %v3543_v31 = vld [vmem:[#allocation3 + $0x9] sm:$0xff] }
 0x5fc   :  { %5066 = vmatmul.msk.f32.vlgmr.msra.gmra.mxu2 %vm1526_vm2, %v3522_v51  ;;  %v3789_v26 = vld [vmem:[#allocation3 + $0x2] sm:$0xff]  ;;  %3507 = vst.msk [vmem:[#allocation3 + $0xa9] sm:$0xff] %vm1526_vm2, %v3483_v14  ;;  %v3790_v20 = vld [vmem:[#allocation3 + $0xa] sm:$0xff] }
 0x5fd   :  { %5086 = vmatmul.msk.f32.vlgmr.msrb.gmra.mxu3 %vm1526_vm2, %v3789_v26  ;;  %3508 = vst.msk [vmem:[#allocation3 + $0xc9] sm:$0xff] %vm1526_vm2, %v3484_v9  ;;  %v3523_v7 = vld [vmem:[#allocation3 + $0x8] sm:$0xff]  ;;  %v3545_v45 = vld [vmem:[#allocation3 + $0x31] sm:$0xff] }
 0x5fe   :  { %3509 = vst.msk [vmem:[#allocation3 + $0xd1] sm:$0xff] %vm1526_vm2, %v3485_v15  ;;  %v3524_v39 = vld [vmem:[#allocation3 + $0x28] sm:$0xff]  ;;  %v3525_v62 = vld [vmem:[#allocation3 + $0x30] sm:$0xff] }
 0x5ff   :  { %3510 = vst.msk [vmem:[#allocation3 + $0xf1] sm:$0xff] %vm1526_vm2, %v3486_v6  ;;  %v3791_v1 = vld [vmem:[#allocation3 + $0x2a] sm:$0xff]  ;;  %v3793_v57 = vld [vmem:[#allocation3 + $0x52] sm:$0xff]  ;;  %v3794_v38 = vld [vmem:[#allocation3 + $0x5a] sm:$0xff] }
 0x600   :  { %3511 = vst.msk [vmem:[#allocation3 + $0xf9] sm:$0xff] %vm1526_vm2, %v3487_v3  ;;  %v3526_v56 = vld [vmem:[#allocation3 + $0x50] sm:$0xff]  ;;  %v3547_v27 = vld [vmem:[#allocation3 + $0x59] sm:$0xff] }
 0x601   :  { %3512 = vst.msk [vmem:[#allocation3 + $0x119] sm:$0xff] %vm1526_vm2, %v3488_v21  ;;  %v3527_v5 = vld [vmem:[#allocation3 + $0x58] sm:$0xff]  ;;  %v3549_v18 = vld [vmem:[#allocation3 + $0x81] sm:$0xff]  ;;  %v3544_v4 = vld [vmem:[#allocation3 + $0x29] sm:$0xff] }
 0x602   :  { %4144 = vst.msk [vmem:[#allocation3] sm:$0x1] %vm2299_vm6, %v8787_v11  ;;  %v3528_v13 = vld [vmem:[#allocation3 + $0x78] sm:$0xff]  ;;  %v3529_v47 = vld [vmem:[#allocation3 + $0x80] sm:$0xff] }
 0x603   :  { %5051 = vmatmul.msk.f32.gmra.mxu1 %vm1526_vm2, %v3543_v31  ;;  %4160 = vst.msk [vmem:[#allocation3 + $0x9] sm:$0x1] %vm2299_vm6, %v8787_v11  ;;  %v3795_v43 = vld [vmem:[#allocation3 + $0x7a] sm:$0xff]  ;;  %v3797_v60 = vld [vmem:[#allocation3 + $0xa2] sm:$0xff]  ;;  %v3792_v41 = vld [vmem:[#allocation3 + $0x32] sm:$0xff] }
 0x604   :  { %5067 = vmatmul.msk.f32.gmra.mxu2 %vm1526_vm2, %v3523_v7  ;;  %4145 = vst.msk [vmem:[#allocation3 + $0x28] sm:$0x1] %vm2299_vm6, %v8787_v11  ;;  %v3530_v37 = vld [vmem:[#allocation3 + $0xa0] sm:$0xff]  ;;  %v3551_v49 = vld [vmem:[#allocation3 + $0xa9] sm:$0xff]  ;;  %v3546_v61 = vld [vmem:[#allocation3 + $0x51] sm:$0xff] }
 0x605   :  { %5087 = vmatmul.msk.f32.gmra.mxu3 %vm1526_vm2, %v3790_v20  ;;  %4161 = vst.msk [vmem:[#allocation3 + $0x31] sm:$0x1] %vm2299_vm6, %v8787_v11  ;;  %v3531_v29 = vld [vmem:[#allocation3 + $0xa8] sm:$0xff]  ;;  %v3553_v2 = vld [vmem:[#allocation3 + $0xd1] sm:$0xff]  ;;  %v3548_v22 = vld [vmem:[#allocation3 + $0x79] sm:$0xff] }
 0x606   :  { %4146 = vst.msk [vmem:[#allocation3 + $0x50] sm:$0x1] %vm2299_vm6, %v8787_v11  ;;  %v3532_v12 = vld [vmem:[#allocation3 + $0xc8] sm:$0xff]  ;;  %v3533_v8 = vld [vmem:[#allocation3 + $0xd0] sm:$0xff] }
 0x607   :  { %4162 = vst.msk [vmem:[#allocation3 + $0x59] sm:$0x1] %vm2299_vm6, %v8787_v11  ;;  %v3799_v19 = vld [vmem:[#allocation3 + $0xca] sm:$0xff]  ;;  %v3801_v23 = vld [vmem:[#allocation3 + $0xf2] sm:$0xff]  ;;  %v3796_v52 = vld [vmem:[#allocation3 + $0x82] sm:$0xff] }
 0x608   :  { %4147 = vst.msk [vmem:[#allocation3 + $0x78] sm:$0x1] %vm2299_vm6, %v8787_v11  ;;  %v3534_v33 = vld [vmem:[#allocation3 + $0xf0] sm:$0xff]  ;;  %v3555_v63 = vld [vmem:[#allocation3 + $0xf9] sm:$0xff]  ;;  %v3550_v34 = vld [vmem:[#allocation3 + $0xa1] sm:$0xff] }
 0x609   :  { %4163 = vst.msk [vmem:[#allocation3 + $0x81] sm:$0x1] %vm2299_vm6, %v8787_v11  ;;  %v3535_v28 = vld [vmem:[#allocation3 + $0xf8] sm:$0xff]  ;;  %v3537_v50 = vld [vmem:[#allocation3 + $0x120] sm:$0xff]  ;;  %v3798_v54 = vld [vmem:[#allocation3 + $0xaa] sm:$0xff] }
 0x60a   :  { %4148 = vst.msk [vmem:[#allocation3 + $0xa0] sm:$0x1] %vm2299_vm6, %v8787_v11  ;;  %v3536_v0 = vld [vmem:[#allocation3 + $0x118] sm:$0xff]  ;;  %v3552_v59 = vld [vmem:[#allocation3 + $0xc9] sm:$0xff] }
 0x60b   :  { %5052 = vmatmul.msk.f32.gmra.mxu1 %vm1526_vm2, %v3544_v4  ;;  %4164 = vst.msk [vmem:[#allocation3 + $0xa9] sm:$0x1] %vm2299_vm6, %v8787_v11  ;;  %v3803_v16 = vld [vmem:[#allocation3 + $0x11a] sm:$0xff]  ;;  %v3800_v10 = vld [vmem:[#allocation3 + $0xd2] sm:$0xff] }
 0x60c   :  { %5068 = vmatmul.msk.f32.gmra.mxu2 %vm1526_vm2, %v3524_v39  ;;  %4149 = vst.msk [vmem:[#allocation3 + $0xc8] sm:$0x1] %vm2299_vm6, %v8787_v11  ;;  %v3554_v55 = vld [vmem:[#allocation3 + $0xf1] sm:$0xff]  ;;  %v3802_v24 = vld [vmem:[#allocation3 + $0xfa] sm:$0xff] }
 0x60d   :  { %5088 = vmatmul.msk.f32.gmra.mxu3 %vm1526_vm2, %v3791_v1  ;;  %4165 = vst.msk [vmem:[#allocation3 + $0xd1] sm:$0x1] %vm2299_vm6, %v8787_v11  ;;  %v3556_v17 = vld [vmem:[#allocation3 + $0x119] sm:$0xff] }
 0x60e   :  { %4150 = vst.msk [vmem:[#allocation3 + $0xf0] sm:$0x1] %vm2299_vm6, %v8787_v11 }
 0x60f   :  { %4166 = vst.msk [vmem:[#allocation3 + $0xf9] sm:$0x1] %vm2299_vm6, %v8787_v11 }
 0x610   :  { %4151 = vst.msk [vmem:[#allocation3 + $0x118] sm:$0x1] %vm2299_vm6, %v8787_v11 }
 0x611   :  { %4167 = vst.msk [vmem:[#allocation3 + $0x121] sm:$0x1] %vm2299_vm6, %v8787_v11  ;;  %vm4575_vm6 = vcmask 1046534  }
 0x613   :  { %5053 = vmatmul.msk.f32.gmra.mxu1 %vm1526_vm2, %v3545_v45 }
 0x614   :  { %5069 = vmatmul.msk.f32.gmra.mxu2 %vm1526_vm2, %v3525_v62  ;;  %v4179_v62 = vld [vmem:[%s8567_s10 + $0x18] sm:$0xff] }
 0x615   :  { %5089 = vmatmul.msk.f32.gmra.mxu3 %vm1526_vm2, %v3792_v41  ;;  %4294 = vmatpush.msrb.mxu2 %v4179_v62 }
 0x61b   :  { %5054 = vmatmul.msk.f32.gmra.mxu1 %vm1526_vm2, %v3546_v61 }
 0x61c   :  { %5070 = vmatmul.msk.f32.gmra.mxu2 %vm1526_vm2, %v3526_v56 }
 0x61d   :  { %5090 = vmatmul.msk.f32.gmra.mxu3 %vm1526_vm2, %v3793_v57 }
 0x623   :  { %5055 = vmatmul.msk.f32.gmra.mxu1 %vm1526_vm2, %v3547_v27 }
 0x624   :  { %5071 = vmatmul.msk.f32.gmra.mxu2 %vm1526_vm2, %v3527_v5  ;;  %v5125_v5 = vld [vmem:[%s8567_s10 + $0x58] sm:$0xff] }
 0x625   :  { %5091 = vmatmul.msk.f32.gmra.mxu3 %vm1526_vm2, %v3794_v38 }
 0x626   :  { %4372 = vmatpush.msra.mxu3 %v5125_v5 }
 0x62b   :  { %5056 = vmatmul.msk.f32.gmra.mxu1 %vm1526_vm2, %v3548_v22 }
 0x62c   :  { %5072 = vmatmul.msk.f32.gmra.mxu2 %vm1526_vm2, %v3528_v13  ;;  %v5105_v13 = vld [vmem:[%s8567_s10 + $0x38] sm:$0xff] }
 0x62d   :  { %5092 = vmatmul.msk.f32.gmra.mxu3 %vm1526_vm2, %v3795_v43  ;;  %4229 = vmatpush.msrb.mxu1 %v5105_v13 }
 0x633   :  { %5057 = vmatmul.msk.f32.gmra.mxu1 %vm1526_vm2, %v3549_v18 }
 0x634   :  { %5073 = vmatmul.msk.f32.gmra.mxu2 %vm1526_vm2, %v3529_v47 }
 0x635   :  { %5093 = vmatmul.msk.f32.gmra.mxu3 %vm1526_vm2, %v3796_v52 }
 0x63b   :  { %5058 = vmatmul.msk.f32.gmra.mxu1 %vm1526_vm2, %v3550_v34 }
 0x63c   :  { %5074 = vmatmul.msk.f32.gmra.mxu2 %vm1526_vm2, %v3530_v37 }
 0x63d   :  { %5094 = vmatmul.msk.f32.gmra.mxu3 %vm1526_vm2, %v3797_v60 }
 0x643   :  { %5059 = vmatmul.msk.f32.gmra.mxu1 %vm1526_vm2, %v3551_v49 }
 0x644   :  { %5075 = vmatmul.msk.f32.gmra.mxu2 %vm1526_vm2, %v3531_v29 }
 0x645   :  { %5095 = vmatmul.msk.f32.gmra.mxu3 %vm1526_vm2, %v3798_v54 }
 0x64b   :  { %5060 = vmatmul.msk.f32.gmra.mxu1 %vm1526_vm2, %v3552_v59 }
 0x64c   :  { %5076 = vmatmul.msk.f32.gmra.mxu2 %vm1526_vm2, %v3532_v12 }
 0x64d   :  { %5096 = vmatmul.msk.f32.gmra.mxu3 %vm1526_vm2, %v3799_v19  ;;  %v4178_v19 = vld [vmem:[%s8567_s10 + $0x10] sm:$0xff] }
 0x64e   :  { %4295 = vmatpush.msrb.mxu2 %v4178_v19 }
 0x653   :  { %5061 = vmatmul.msk.f32.gmra.mxu1 %vm1526_vm2, %v3553_v2 }
 0x654   :  { %5077 = vmatmul.msk.f32.gmra.mxu2 %vm1526_vm2, %v3533_v8 }
 0x655   :  { %5097 = vmatmul.msk.f32.gmra.mxu3 %vm1526_vm2, %v3800_v10 }
 0x65b   :  { %5062 = vmatmul.msk.f32.gmra.mxu1 %vm1526_vm2, %v3554_v55 }
 0x65c   :  { %5078 = vmatmul.msk.f32.gmra.mxu2 %vm1526_vm2, %v3534_v33 }
 0x65d   :  { %5098 = vmatmul.msk.f32.gmra.mxu3 %vm1526_vm2, %v3801_v23  ;;  %v5124_v23 = vld [vmem:[%s8567_s10 + $0x50] sm:$0xff] }
 0x65e   :  { %4373 = vmatpush.msra.mxu3 %v5124_v23 }
 0x663   :  { %5063 = vmatmul.msk.f32.gmra.mxu1 %vm1526_vm2, %v3555_v63  ;;  %v5104_v63 = vld [vmem:[%s8567_s10 + $0x30] sm:$0xff] }
 0x664   :  { %5079 = vmatmul.msk.f32.gmra.mxu2 %vm1526_vm2, %v3535_v28  ;;  %4230 = vmatpush.msrb.mxu1 %v5104_v63 }
 0x665   :  { %5099 = vmatmul.msk.f32.gmra.mxu3 %vm1526_vm2, %v3802_v24 }
 0x66b   :  { %5064 = vmatmul.msk.f32.gmra.mxu1 %vm1526_vm2, %v3556_v17 }
 0x66c   :  { %5080 = vmatmul.msk.f32.gmra.mxu2 %vm1526_vm2, %v3536_v0 }
 0x66d   :  { %5100 = vmatmul.msk.f32.gmra.mxu3 %vm1526_vm2, %v3803_v16 }
 0x673   :  { %5065 = vmatmul.msk.f32.gmra.mxu1 %vm1526_vm2, %v3557_v40 }
 0x674   :  { %5081 = vmatmul.msk.f32.gmra.mxu2 %vm1526_vm2, %v3537_v50 }
 0x675   :  { %5101 = vmatmul.msk.f32.gmra.mxu3 %vm1526_vm2, %v3804_v35 }
 0x678   :  { %v3628_v42 = vpop.f32.mrf.mxu1 }
 0x67f   :  { %v3741_v44 = vpop.f32.mrf.mxu2 }
 0x680   :  { %v3875_v30 = vpop.f32.mrf.mxu3  ;;  %v3631_v46 = vpop.f32.mrf.mxu1  ;;  %v3742_v16 = vadd.f32 %v3741_v44, %v3628_v42 }
 0x682   :  { %v8153_v41 = vadd.f32 %v3875_v30, %v3742_v16 }
 0x684   :  { %v3977_v52 = vmul.f32 %v8153_v41, %v8153_v41  ;;  %v3939_v10 = vsel %vm1526_vm2, %v8153_v41, 0.0 }
 0x687   :  { %v3744_v58 = vpop.f32.mrf.mxu2 }
 0x688   :  { %v3745_v48 = vadd.f32 %v3744_v58, %v3631_v46  ;;  %v3878_v14 = vpop.f32.mrf.mxu3  ;;  %v3634_v53 = vpop.f32.mrf.mxu1  ;;  %v3993_v46 = vsel %vm1526_vm2, %v3977_v52, 0.0 }
 0x68a   :  { %v8127_v36 = vadd.f32 %v3878_v14, %v3745_v48 }
 0x68c   :  { %v3978_v38 = vmul.f32 %v8127_v36, %v8127_v36  ;;  %v3940_v54 = vsel %vm1526_vm2, %v8127_v36, 0.0 }
 0x68d   :  { %v3941_v58 = vadd.f32 %v3940_v54, %v3939_v10 }
 0x68e   :  { %v3994_v55 = vsel %vm1526_vm2, %v3978_v38, 0.0 }
 0x68f   :  { %v3747_v9 = vpop.f32.mrf.mxu2 }
 0x690   :  { %v3748_v25 = vadd.f32 %v3747_v9, %v3634_v53  ;;  %v3881_v15 = vpop.f32.mrf.mxu3  ;;  %v3637_v32 = vpop.f32.mrf.mxu1 }
 0x692   :  { %v8129_v51 = vadd.f32 %v3881_v15, %v3748_v25  ;;  %v3995_v15 = vadd.f32 %v3994_v55, %v3993_v46 }
 0x694   :  { %v3979_v59 = vmul.f32 %v8129_v51, %v8129_v51  ;;  %v3942_v17 = vsel %vm1526_vm2, %v8129_v51, 0.0 }
 0x696   :  { %v3996_v14 = vsel %vm1526_vm2, %v3979_v59, 0.0 }
 0x697   :  { %v3750_v6 = vpop.f32.mrf.mxu2 }
 0x698   :  { %v3751_v26 = vadd.f32 %v3750_v6, %v3637_v32  ;;  %v3884_v3 = vpop.f32.mrf.mxu3  ;;  %v3640_v21 = vpop.f32.mrf.mxu1  ;;  %v3943_v32 = vadd.f32 %v3942_v17, %v3941_v58 }
 0x69a   :  { %v8131_v11 = vadd.f32 %v3884_v3, %v3751_v26 }
 0x69c   :  { %v3980_v35 = vmul.f32 %v8131_v11, %v8131_v11  ;;  %v3944_v53 = vsel %vm1526_vm2, %v8131_v11, 0.0 }
 0x69e   :  { %v3998_v3 = vsel %vm1526_vm2, %v3980_v35, 0.0 }
 0x69f   :  { %v3753_v31 = vpop.f32.mrf.mxu2 }
 0x6a0   :  { %v3754_v7 = vadd.f32 %v3753_v31, %v3640_v21  ;;  %v3887_v20 = vpop.f32.mrf.mxu3  ;;  %v3643_v39 = vpop.f32.mrf.mxu1 }
 0x6a2   :  { %v8133_v1 = vadd.f32 %v3887_v20, %v3754_v7  ;;  %v3997_v20 = vadd.f32 %v3996_v14, %v3995_v15 }
 0x6a4   :  { %v3981_v9 = vmul.f32 %v8133_v1, %v8133_v1  ;;  %v3946_v21 = vsel %vm1526_vm2, %v8133_v1, 0.0  ;;  %v3999_v5 = vadd.f32 %v3998_v3, %v3997_v20 }
 0x6a6   :  { %v4000_v62 = vsel %vm1526_vm2, %v3981_v9, 0.0 }
 0x6a7   :  { %v3756_v45 = vpop.f32.mrf.mxu2 }
 0x6a8   :  { %v3890_v56 = vpop.f32.mrf.mxu3  ;;  %v3646_v57 = vpop.f32.mrf.mxu1  ;;  %v3757_v22 = vadd.f32 %v3756_v45, %v3643_v39  ;;  %v3945_v39 = vadd.f32 %v3944_v53, %v3943_v32 }
 0x6aa   :  { %v8170_v42 = vadd.f32 %v3890_v56, %v3757_v22  ;;  %v3947_v13 = vadd.f32 %v3946_v21, %v3945_v39 }
 0x6ac   :  { %v3982_v31 = vmul.f32 %v8170_v42, %v8170_v42  ;;  %v3948_v56 = vsel %vm1526_vm2, %v8170_v42, 0.0 }
 0x6ad   :  { %v3949_v19 = vadd.f32 %v3948_v56, %v3947_v13 }
 0x6af   :  { %v3759_v27 = vpop.f32.mrf.mxu2 }
 0x6b0   :  { %v3893_v43 = vpop.f32.mrf.mxu3  ;;  %v3649_v18 = vpop.f32.mrf.mxu1  ;;  %v3760_v34 = vadd.f32 %v3759_v27, %v3646_v57 }
 0x6b2   :  { %v8173_v48 = vadd.f32 %v3893_v43, %v3760_v34 }
 0x6b4   :  { %v3983_v45 = vmul.f32 %v8173_v48, %v8173_v48 }
 0x6b7   :  { %v3762_v47 = vpop.f32.mrf.mxu2 }
 0x6b8   :  { %v3896_v4 = vpop.f32.mrf.mxu3  ;;  %v3652_v37 = vpop.f32.mrf.mxu1  ;;  %v3763_v44 = vadd.f32 %v3762_v47, %v3649_v18  ;;  %v4002_v47 = vsel %vm1526_vm2, %v3982_v31, 0.0 }
 0x6ba   :  { %v8185_v7 = vadd.f32 %v3896_v4, %v3763_v44  ;;  %v3950_v4 = vsel %vm1526_vm2, %v8173_v48, 0.0 }
 0x6bb   :  { %v3951_v16 = vadd.f32 %v3950_v4, %v3949_v19 }
 0x6bf   :  { %v3765_v60 = vpop.f32.mrf.mxu2 }
 0x6c0   :  { %v3899_v49 = vpop.f32.mrf.mxu3  ;;  %v3655_v29 = vpop.f32.mrf.mxu1  ;;  %v3766_v25 = vadd.f32 %v3765_v60, %v3652_v37  ;;  %v3984_v37 = vmul.f32 %v8185_v7, %v8185_v7 }
 0x6c2   :  { %v8192_v57 = vadd.f32 %v3899_v49, %v3766_v25  ;;  %v4004_v49 = vsel %vm1526_vm2, %v3983_v45, 0.0 }
 0x6c7   :  { %v3768_v12 = vpop.f32.mrf.mxu2 }
 0x6c8   :  { %v3902_v2 = vpop.f32.mrf.mxu3  ;;  %v3658_v8 = vpop.f32.mrf.mxu1  ;;  %v3769_v6 = vadd.f32 %v3768_v12, %v3655_v29  ;;  %v4001_v12 = vadd.f32 %v4000_v62, %v3999_v5 }
 0x6ca   :  { %v8194_v43 = vadd.f32 %v3902_v2, %v3769_v6  ;;  %v3985_v2 = vmul.f32 %v8192_v57, %v8192_v57  ;;  %v4003_v63 = vadd.f32 %v4002_v47, %v4001_v12 }
 0x6cc   :  { %v3986_v38 = vmul.f32 %v8194_v43, %v8194_v43  ;;  %v4005_v34 = vadd.f32 %v4004_v49, %v4003_v63 }
 0x6ce   :  { %v4010_v35 = vsel %vm1526_vm2, %v3986_v38, 0.0 }
 0x6cf   :  { %v3771_v33 = vpop.f32.mrf.mxu2 }
 0x6d0   :  { %v3905_v28 = vpop.f32.mrf.mxu3  ;;  %v3661_v0 = vpop.f32.mrf.mxu1  ;;  %v3772_v27 = vadd.f32 %v3771_v33, %v3658_v8  ;;  %v3952_v8 = vsel %vm1526_vm2, %v8185_v7, 0.0 }
 0x6d1   :  { %v3953_v54 = vadd.f32 %v3952_v8, %v3951_v16 }
 0x6d2   :  { %v8206_v33 = vadd.f32 %v3905_v28, %v3772_v27  ;;  %v4008_v28 = vsel %vm1526_vm2, %v3985_v2, 0.0 }
 0x6d4   :  { %v3987_v10 = vmul.f32 %v8206_v33, %v8206_v33  ;;  %v3958_v44 = vsel %vm1526_vm2, %v8206_v33, 0.0 }
 0x6d7   :  { %v3774_v40 = vpop.f32.mrf.mxu2 }
 0x6d8   :  { %v3908_v50 = vpop.f32.mrf.mxu3  ;;  %v3664_v61 = vpop.f32.mrf.mxu1  ;;  %v3775_v60 = vadd.f32 %v3774_v40, %v3661_v0  ;;  %v4006_v0 = vsel %vm1526_vm2, %v3984_v37, 0.0  ;;  %v3954_v40 = vsel %vm1526_vm2, %v8192_v57, 0.0 }
 0x6d9   :  { %v3955_v17 = vadd.f32 %v3954_v40, %v3953_v54 }
 0x6da   :  { %v8213_v22 = vadd.f32 %v3908_v50, %v3775_v60 }
 0x6dc   :  { %v3988_v46 = vmul.f32 %v8213_v22, %v8213_v22  ;;  %v3960_v15 = vsel %vm1526_vm2, %v8213_v22, 0.0 }
 0x6de   :  { %v4014_v21 = vsel %vm1526_vm2, %v3988_v46, 0.0 }
 0x6df   :  { %v3777_v24 = vpop.f32.mrf.mxu2 }
 0x6e0   :  { %v3911_v30 = vpop.f32.mrf.mxu3  ;;  %v3667_v26 = vpop.f32.mrf.mxu1  ;;  %v3778_v23 = vadd.f32 %v3777_v24, %v3664_v61  ;;  %v3956_v61 = vsel %vm1526_vm2, %v8194_v43, 0.0  ;;  %v4007_v24 = vadd.f32 %v4006_v0, %v4005_v34 }
 0x6e1   :  { %v3957_v25 = vadd.f32 %v3956_v61, %v3955_v17 }
 0x6e2   :  { %v8220_v55 = vadd.f32 %v3911_v30, %v3778_v23  ;;  %v4009_v9 = vadd.f32 %v4008_v28, %v4007_v24  ;;  %v4012_v30 = vsel %vm1526_vm2, %v3987_v10, 0.0 }
 0x6e3   :  { %v3959_v3 = vadd.f32 %v3958_v44, %v3957_v25 }
 0x6e4   :  { %v3989_v32 = vmul.f32 %v8220_v55, %v8220_v55  ;;  %v3962_v31 = vsel %vm1526_vm2, %v8220_v55, 0.0 }
 0x6e5   :  { %v3961_v45 = vadd.f32 %v3960_v15, %v3959_v3 }
 0x6e6   :  { %v4016_v62 = vsel %vm1526_vm2, %v3989_v32, 0.0 }
 0x6e7   :  { %v3780_v18 = vpop.f32.mrf.mxu2  ;;  %v3963_v13 = vadd.f32 %v3962_v31, %v3961_v45  ;;  %v5123_v31 = vld [vmem:[%s8567_s10 + $0x48] sm:$0xff]  ;;  %v5122_v45 = vld [vmem:[%s8567_s10 + $0x40] sm:$0xff] }
 0x6e8   :  { %v3914_v29 = vpop.f32.mrf.mxu3  ;;  %v3781_v52 = vadd.f32 %v3780_v18, %v3667_v26  ;;  %v3670_v59 = vpop.f32.mrf.mxu1  ;;  %v4011_v26 = vadd.f32 %v4010_v35, %v4009_v9  ;;  %4374 = vmatpush.msra.mxu3 %v5123_v31 }
 0x6ea   :  { %v8227_v58 = vadd.f32 %v3914_v29, %v3781_v52  ;;  %v4013_v39 = vadd.f32 %v4012_v30, %v4011_v26  ;;  %4375 = vmatpush.msra.mxu3 %v5122_v45 }
 0x6ec   :  { %v3990_v20 = vmul.f32 %v8227_v58, %v8227_v58  ;;  %v3964_v56 = vsel %vm1526_vm2, %v8227_v58, 0.0  ;;  %v4015_v5 = vadd.f32 %v4014_v21, %v4013_v39  ;;  %v4177_v21 = vld [vmem:[%s8567_s10 + $0x8] sm:$0xff]  ;;  %v4176_v39 = vld [vmem:[%s8567_s10] sm:$0xff] }
 0x6ed   :  { %v3965_v12 = vadd.f32 %v3964_v56, %v3963_v13  ;;  %4296 = vmatpush.msrb.mxu2 %v4177_v21 }
 0x6ee   :  { %v4018_v4 = vsel %vm1526_vm2, %v3990_v20, 0.0  ;;  %v4017_v29 = vadd.f32 %v4016_v62, %v4015_v5  ;;  %v5103_v20 = vld [vmem:[%s8567_s10 + $0x28] sm:$0xff]  ;;  %v5102_v62 = vld [vmem:[%s8567_s10 + $0x20] sm:$0xff] }
 0x6ef   :  { %v3783_v50 = vpop.f32.mrf.mxu2  ;;  %4231 = vmatpush.msrb.mxu1 %v5103_v20  ;;  %4297 = vmatpush.msrb.mxu2 %v4176_v39  ;;  %v4034_v5 = vld [vmem:[%s8565_s8] sm:$0x1] }
 0x6f0   :  { %v3784_v14 = vadd.f32 %v3783_v50, %v3670_v59  ;;  %v3917_v53 = vpop.f32.mrf.mxu3  ;;  %v3673_v18 = vpop.f32.mrf.mxu1  ;;  %v4019_v2 = vadd.f32 %v4018_v4, %v4017_v29  ;;  %v4047_v4 = vld [vmem:[%s8566_s9] sm:$0x1] }
 0x6f1   :  { %4232 = vmatpush.msrb.mxu1 %v5102_v62 }
 0x6f2   :  { %v8234_v6 = vadd.f32 %v3917_v53, %v3784_v14 }
 0x6f4   :  { %v3991_v27 = vmul.f32 %v8234_v6, %v8234_v6  ;;  %v3966_v37 = vsel %vm1526_vm2, %v8234_v6, 0.0 }
 0x6f5   :  { %v3967_v23 = vadd.f32 %v3966_v37, %v3965_v12 }
 0x6f6   :  { %v4020_v49 = vsel %vm1526_vm2, %v3991_v27, 0.0 }
 0x6f7   :  { %v3786_v47 = vpop.f32.mrf.mxu2  ;;  %v4021_v38 = vadd.f32 %v4020_v49, %v4019_v2 }
 0x6f8   :  { %v3787_v60 = vadd.f32 %v3786_v47, %v3673_v18  ;;  %v3920_v19 = vpop.f32.mrf.mxu3 }
 0x6fa   :  { %v3938_v8 = vadd.f32 %v3920_v19, %v3787_v60 }
 0x6fc   :  { %v3968_v63 = vsel %vm1526_vm2, %v3938_v8, 0.0  ;;  %v3992_v16 = vmul.f32 %v3938_v8, %v3938_v8 }
 0x6fd   :  { %v3969_v0 = vadd.f32 %v3968_v63, %v3967_v23 }
 0x6fe   :  { %v4022_v40 = vsel %vm1526_vm2, %v3992_v16, 0.0 }
 0x6ff   :  { %v3970_v52 = vrot.slane %v3969_v0, 4  ;;  %v4023_v34 = vadd.f32 %v4022_v40, %v4021_v38 }
 0x701   :  { %v3971_v54 = vadd.f32 %v3970_v52, %v3969_v0  ;;  %v4024_v59 = vrot.slane %v4023_v34, 4 }
 0x703   :  { %v3972_v28 = vrot.slane %v3971_v54, 2  ;;  %v4025_v61 = vadd.f32 %v4024_v59, %v4023_v34 }
 0x705   :  { %v3973_v10 = vadd.f32 %v3972_v28, %v3971_v54  ;;  %v4026_v24 = vrot.slane %v4025_v61, 2 }
 0x707   :  { %v3974_v17 = vrot.slane %v3973_v10, 1  ;;  %v4027_v35 = vadd.f32 %v4026_v24, %v4025_v61 }
 0x709   :  { %v3975_v50 = vadd.f32 %v3974_v17, %v3973_v10  ;;  %v4028_v44 = vrot.slane %v4027_v35, 1 }
 0x70b   :  { %v3976_v46 = vmul.f32 0.0078125, %v3975_v50  ;;  %v4029_v14 = vadd.f32 %v4028_v44, %v4027_v35 }
 0x70d   :  { %v4030_v53 = vmul.f32 0.0078125, %v4029_v14  ;;  %v4031_v9 = vmul.f32 %v3976_v46, %v3976_v46 }
 0x70f   :  { %v4032_v25 = vsub.f32 %v4030_v53, %v4031_v9 }
 0x711   :  { %v4033_v30 = vmax.f32 %v4032_v25, 0.0 }
 0x713   :  { %v4035_v15 = vadd.f32 1e-05, %v4033_v30 }
 0x715   :  { %5160 = vrsqrt.f32 %v4035_v15  ;;  %vm4042_vm11 = vweird.f32 %v4035_v15 }
 0x71b   :  { %v5161_v32 = vpop.eup %5160 }
 0x71c   :  { %v4037_v26 = vmul.f32 %v5161_v32, %v4035_v15  ;;  %vm4043_vm10 = vweird.f32 %v5161_v32 }
 0x71d   :  { %vm4044_vm12 = vmor %vm4042_vm11, %vm4043_vm10 }
 0x71e   :  { %v4038_v3 = vmul.f32 %v5161_v32, %v4037_v26 }
 0x720   :  { %v4039_v56 = vmul.f32 0.5, %v4038_v3 }
 0x722   :  { %v4040_v27 = vsub.f32 1.5, %v4039_v56 }
 0x724   :  { %v4041_v13 = vmul.f32 %v5161_v32, %v4040_v27 }
 0x726   :  { %v4045_v18 = vsel %vm4044_vm12, %v5161_v32, %v4041_v13 }
 0x727   :  { %v4046_v47 = vmul.f32 %v4045_v18, %v4034_v5 }
 0x729   :  { %v4048_v37 = vmul.f32 %v4046_v47, %v3976_v46  ;;  %v4051_v60 = vperm.slane %v4046_v47, 0 }
 0x72b   :  { %v4049_v29 = vsub.f32 %v4047_v4, %v4048_v37  ;;  %v4053_v12 = vmul.f32 %v4051_v60, %v8153_v41  ;;  %v4054_v19 = vmul.f32 %v4051_v60, %v8127_v36  ;;  %v4067_v49 = vmul.f32 %v4051_v60, %v8234_v6 }
 0x72c   :  { %v4068_v2 = vmul.f32 %v4051_v60, %v3938_v8  ;;  %v4055_v63 = vmul.f32 %v4051_v60, %v8129_v51  ;;  %v4056_v16 = vmul.f32 %v4051_v60, %v8131_v11  ;;  %v4057_v38 = vmul.f32 %v4051_v60, %v8133_v1 }
 0x72d   :  { %v8279_v23 = vperm.slane %v4049_v29, 0  ;;  %v4058_v8 = vmul.f32 %v4051_v60, %v8170_v42  ;;  %v4059_v51 = vmul.f32 %v4051_v60, %v8173_v48  ;;  %v4060_v61 = vmul.f32 %v4051_v60, %v8185_v7 }
 0x72e   :  { %v4061_v17 = vmul.f32 %v4051_v60, %v8192_v57  ;;  %v4062_v50 = vmul.f32 %v4051_v60, %v8194_v43  ;;  %v4063_v14 = vmul.f32 %v4051_v60, %v8206_v33  ;;  %v4064_v43 = vmul.f32 %v4051_v60, %v8213_v22 }
 0x72f   :  { %v4072_v0 = vadd.f32 %v8279_v23, %v4053_v12  ;;  %v4073_v40 = vadd.f32 %v8279_v23, %v4054_v19  ;;  %v4086_v52 = vadd.f32 %v8279_v23, %v4067_v49  ;;  %v4087_v41 = vadd.f32 %v8279_v23, %v4068_v2 }
 0x730   :  { %v4074_v36 = vadd.f32 %v8279_v23, %v4055_v63  ;;  %v4075_v6 = vadd.f32 %v8279_v23, %v4056_v16  ;;  %v4076_v1 = vadd.f32 %v8279_v23, %v4057_v38  ;;  %v4077_v28 = vadd.f32 %v8279_v23, %v4058_v8 }
 0x731   :  { %v4088_v34 = vmax.f32 %v4072_v0, 0.0  ;;  %v4102_v11 = vmax.f32 %v4086_v52, 0.0  ;;  %v4103_v54 = vmax.f32 %v4087_v41, 0.0  ;;  %v4089_v59 = vmax.f32 %v4073_v40, 0.0 }
 0x732   :  { %v4090_v10 = vmax.f32 %v4074_v36, 0.0  ;;  %v4078_v24 = vadd.f32 %v8279_v23, %v4059_v51  ;;  %v4091_v42 = vmax.f32 %v4075_v6, 0.0  ;;  %v4079_v48 = vadd.f32 %v8279_v23, %v4060_v61 }
 0x733   :  { %4118 = vst.msk [vmem:[#allocation2 + $0x1c0] sm:$0xff] %vm1526_vm2, %v4102_v11  ;;  %v4092_v35 = vmax.f32 %v4076_v1, 0.0  ;;  %v4080_v44 = vadd.f32 %v8279_v23, %v4061_v17  ;;  %v4093_v7 = vmax.f32 %v4077_v28, 0.0  ;;  %v4081_v57 = vadd.f32 %v8279_v23, %v4062_v50 }
 0x734   :  { %4119 = vst.msk [vmem:[#allocation2 + $0x1c8] sm:$0xff] %vm1526_vm2, %v4103_v54  ;;  %v4094_v46 = vmax.f32 %v4078_v24, 0.0  ;;  %v4095_v53 = vmax.f32 %v4079_v48, 0.0  ;;  %v4082_v25 = vadd.f32 %v8279_v23, %v4063_v14  ;;  %v4083_v26 = vadd.f32 %v8279_v23, %v4064_v43 }
 0x735   :  { %4104 = vst.msk [vmem:[#allocation2] sm:$0xff] %vm1526_vm2, %v4088_v34  ;;  %v4096_v9 = vmax.f32 %v4080_v44, 0.0  ;;  %v4097_v32 = vmax.f32 %v4081_v57, 0.0  ;;  %v4065_v33 = vmul.f32 %v4051_v60, %v8220_v55  ;;  %v4066_v20 = vmul.f32 %v4051_v60, %v8227_v58 }
 0x736   :  { %4105 = vst.msk [vmem:[#allocation2 + $0x8] sm:$0xff] %vm1526_vm2, %v4089_v59  ;;  %v4098_v22 = vmax.f32 %v4082_v25, 0.0  ;;  %v4099_v55 = vmax.f32 %v4083_v26, 0.0 }
 0x737   :  { %4106 = vst.msk [vmem:[#allocation2 + $0x40] sm:$0xff] %vm1526_vm2, %v4090_v10  ;;  %v4084_v39 = vadd.f32 %v8279_v23, %v4065_v33  ;;  %v4085_v27 = vadd.f32 %v8279_v23, %v4066_v20 }
 0x738   :  { %4107 = vst.msk [vmem:[#allocation2 + $0x48] sm:$0xff] %vm1526_vm2, %v4091_v42 }
 0x739   :  { %4108 = vst.msk [vmem:[#allocation2 + $0x80] sm:$0xff] %vm1526_vm2, %v4092_v35  ;;  %v4100_v58 = vmax.f32 %v4084_v39, 0.0  ;;  %v4101_v60 = vmax.f32 %v4085_v27, 0.0 }
 0x73a   :  { %4109 = vst.msk [vmem:[#allocation2 + $0x88] sm:$0xff] %vm1526_vm2, %v4093_v7 }
 0x73b   :  { %v4127_v30 = vld [vmem:[#allocation2 + $0x1c0] ss:$2 sm:$0xff]  ;;  %v4135_v15 = vld [vmem:[#allocation2 + $0x1c1] ss:$2 sm:$0xff]  ;;  %4110 = vst.msk [vmem:[#allocation2 + $0xc0] sm:$0xff] %vm1526_vm2, %v4094_v46 }
 0x73c   :  { %v4143_v3 = vmax.f32 %v4127_v30, %v4135_v15  ;;  %4111 = vst.msk [vmem:[#allocation2 + $0xc8] sm:$0xff] %vm1526_vm2, %v4095_v53 }
 0x73d   :  { %v4120_v21 = vld [vmem:[#allocation2] ss:$2 sm:$0xff]  ;;  %v4128_v31 = vld [vmem:[#allocation2 + $0x1] ss:$2 sm:$0xff]  ;;  %4112 = vst.msk [vmem:[#allocation2 + $0x100] sm:$0xff] %vm1526_vm2, %v4096_v9 }
 0x73e   :  { %4159 = vst.msk [vmem:[#allocation3 + $0x119] sm:$0xff] %vm1526_vm2, %v4143_v3  ;;  %v4136_v45 = vmax.f32 %v4120_v21, %v4128_v31 }
 0x73f   :  { %v4121_v62 = vld [vmem:[#allocation2 + $0x40] ss:$2 sm:$0xff]  ;;  %v4129_v56 = vld [vmem:[#allocation2 + $0x41] ss:$2 sm:$0xff]  ;;  %4113 = vst.msk [vmem:[#allocation2 + $0x108] sm:$0xff] %vm1526_vm2, %v4097_v32 }
 0x740   :  { %4152 = vst.msk [vmem:[#allocation3 + $0x1] sm:$0xff] %vm1526_vm2, %v4136_v45  ;;  %v4137_v5 = vmax.f32 %v4121_v62, %v4129_v56 }
 0x741   :  { %v4122_v13 = vld [vmem:[#allocation2 + $0x80] ss:$2 sm:$0xff]  ;;  %v4130_v18 = vld [vmem:[#allocation2 + $0x81] ss:$2 sm:$0xff]  ;;  %4114 = vst.msk [vmem:[#allocation2 + $0x140] sm:$0xff] %vm1526_vm2, %v4098_v22 }
 0x742   :  { %4153 = vst.msk [vmem:[#allocation3 + $0x29] sm:$0xff] %vm1526_vm2, %v4137_v5  ;;  %v4138_v47 = vmax.f32 %v4122_v13, %v4130_v18 }
 0x743   :  { %v4123_v4 = vld [vmem:[#allocation2 + $0xc0] ss:$2 sm:$0xff]  ;;  %v4131_v37 = vld [vmem:[#allocation2 + $0xc1] ss:$2 sm:$0xff]  ;;  %4115 = vst.msk [vmem:[#allocation2 + $0x148] sm:$0xff] %vm1526_vm2, %v4099_v55 }
 0x744   :  { %4154 = vst.msk [vmem:[#allocation3 + $0x51] sm:$0xff] %vm1526_vm2, %v4138_v47  ;;  %v4139_v29 = vmax.f32 %v4123_v4, %v4131_v37 }
 0x745   :  { %4116 = vst.msk [vmem:[#allocation2 + $0x180] sm:$0xff] %vm1526_vm2, %v4100_v58  ;;  %v4187_v44 = vld [vmem:[#allocation3 + $0x119] sm:$0xff] }
 0x746   :  { %4155 = vst.msk [vmem:[#allocation3 + $0x79] sm:$0xff] %vm1526_vm2, %v4139_v29  ;;  %v4124_v12 = vld [vmem:[#allocation2 + $0x100] ss:$2 sm:$0xff]  ;;  %v4132_v19 = vld [vmem:[#allocation2 + $0x101] ss:$2 sm:$0xff]  ;;  %v4175_v7 = vld [vmem:[#allocation3 + $0x118] sm:$0xff] }
 0x747   :  { %v4180_v49 = vld [vmem:[#allocation3 + $0x1] sm:$0xff]  ;;  %v4140_v63 = vmax.f32 %v4124_v12, %v4132_v19  ;;  %4117 = vst.msk [vmem:[#allocation2 + $0x188] sm:$0xff] %vm1526_vm2, %v4101_v60 }
 0x748   :  { %v4168_v2 = vld [vmem:[#allocation3] sm:$0xff]  ;;  %5106 = vmatmul.msk.f32.vlgmr.msrb.gmra.mxu1 %vm1526_vm2, %v4180_v49 }
 0x749   :  { %v4323_v23 = vld [vmem:[#allocation3 + $0x2] sm:$0xff]  ;;  %5114 = vmatmul.msk.f32.vlgmr.msrb.gmra.mxu2 %vm1526_vm2, %v4168_v2  ;;  %4156 = vst.msk [vmem:[#allocation3 + $0xa1] sm:$0xff] %vm1526_vm2, %v4140_v63  ;;  %v4324_v8 = vld [vmem:[#allocation3 + $0x2a] sm:$0xff]  ;;  %v4330_v46 = vld [vmem:[#allocation3 + $0x11a] sm:$0xff] }
 0x74a   :  { %5126 = vmatmul.msk.f32.vlgmr.msra.gmra.mxu3 %vm1526_vm2, %v4323_v23  ;;  %v4125_v16 = vld [vmem:[#allocation2 + $0x140] ss:$2 sm:$0xff]  ;;  %v4133_v38 = vld [vmem:[#allocation2 + $0x141] ss:$2 sm:$0xff] }
 0x74b   :  { %v4141_v0 = vmax.f32 %v4125_v16, %v4133_v38  ;;  %v4181_v41 = vld [vmem:[#allocation3 + $0x29] sm:$0xff]  ;;  %v4182_v51 = vld [vmem:[#allocation3 + $0x51] sm:$0xff] }
 0x74c   :  { %v4169_v36 = vld [vmem:[#allocation3 + $0x28] sm:$0xff]  ;;  %v4170_v34 = vld [vmem:[#allocation3 + $0x50] sm:$0xff] }
 0x74d   :  { %4157 = vst.msk [vmem:[#allocation3 + $0xc9] sm:$0xff] %vm1526_vm2, %v4141_v0  ;;  %v4325_v11 = vld [vmem:[#allocation3 + $0x52] sm:$0xff]  ;;  %v4326_v59 = vld [vmem:[#allocation3 + $0x7a] sm:$0xff] }
 0x74e   :  { %v4126_v40 = vld [vmem:[#allocation2 + $0x180] ss:$2 sm:$0xff]  ;;  %v4134_v52 = vld [vmem:[#allocation2 + $0x181] ss:$2 sm:$0xff]  ;;  %v4171_v1 = vld [vmem:[#allocation3 + $0x78] sm:$0xff] }
 0x74f   :  { %v4142_v6 = vmax.f32 %v4126_v40, %v4134_v52  ;;  %v4183_v54 = vld [vmem:[#allocation3 + $0x79] sm:$0xff] }
 0x750   :  { %5107 = vmatmul.msk.f32.gmra.mxu1 %vm1526_vm2, %v4181_v41  ;;  %v4184_v28 = vld [vmem:[#allocation3 + $0xa1] sm:$0xff] }
 0x751   :  { %5115 = vmatmul.msk.f32.gmra.mxu2 %vm1526_vm2, %v4169_v36  ;;  %4158 = vst.msk [vmem:[#allocation3 + $0xf1] sm:$0xff] %vm1526_vm2, %v4142_v6  ;;  %v4172_v61 = vld [vmem:[#allocation3 + $0xa0] sm:$0xff] }
 0x752   :  { %5127 = vmatmul.msk.f32.gmra.mxu3 %vm1526_vm2, %v4324_v8  ;;  %v4327_v10 = vld [vmem:[#allocation3 + $0xa2] sm:$0xff] }
 0x754   :  { %v4185_v24 = vld [vmem:[#allocation3 + $0xc9] sm:$0xff] }
 0x755   :  { %v4173_v17 = vld [vmem:[#allocation3 + $0xc8] sm:$0xff] }
 0x756   :  { %v4328_v42 = vld [vmem:[#allocation3 + $0xca] sm:$0xff] }
 0x758   :  { %5108 = vmatmul.msk.f32.gmra.mxu1 %vm1526_vm2, %v4182_v51  ;;  %v4186_v48 = vld [vmem:[#allocation3 + $0xf1] sm:$0xff] }
 0x759   :  { %5116 = vmatmul.msk.f32.gmra.mxu2 %vm1526_vm2, %v4170_v34  ;;  %v4174_v35 = vld [vmem:[#allocation3 + $0xf0] sm:$0xff] }
 0x75a   :  { %5128 = vmatmul.msk.f32.gmra.mxu3 %vm1526_vm2, %v4325_v11  ;;  %v4329_v50 = vld [vmem:[#allocation3 + $0xf2] sm:$0xff] }
 0x760   :  { %5109 = vmatmul.msk.f32.gmra.mxu1 %vm1526_vm2, %v4183_v54 }
 0x761   :  { %5117 = vmatmul.msk.f32.gmra.mxu2 %vm1526_vm2, %v4171_v1 }
 0x762   :  { %5129 = vmatmul.msk.f32.gmra.mxu3 %vm1526_vm2, %v4326_v59 }
 0x768   :  { %5110 = vmatmul.msk.f32.gmra.mxu1 %vm1526_vm2, %v4184_v28 }
 0x769   :  { %5118 = vmatmul.msk.f32.gmra.mxu2 %vm1526_vm2, %v4172_v61 }
 0x76a   :  { %5130 = vmatmul.msk.f32.gmra.mxu3 %vm1526_vm2, %v4327_v10 }
 0x770   :  { %5111 = vmatmul.msk.f32.gmra.mxu1 %vm1526_vm2, %v4185_v24 }
 0x771   :  { %5119 = vmatmul.msk.f32.gmra.mxu2 %vm1526_vm2, %v4173_v17 }
 0x772   :  { %5131 = vmatmul.msk.f32.gmra.mxu3 %vm1526_vm2, %v4328_v42 }
 0x778   :  { %5112 = vmatmul.msk.f32.gmra.mxu1 %vm1526_vm2, %v4186_v48 }
 0x779   :  { %5120 = vmatmul.msk.f32.gmra.mxu2 %vm1526_vm2, %v4174_v35 }
 0x77a   :  { %5132 = vmatmul.msk.f32.gmra.mxu3 %vm1526_vm2, %v4329_v50 }
 0x780   :  { %5113 = vmatmul.msk.f32.gmra.mxu1 %vm1526_vm2, %v4187_v44 }
 0x781   :  { %5121 = vmatmul.msk.f32.gmra.mxu2 %vm1526_vm2, %v4175_v7 }
 0x782   :  { %5133 = vmatmul.msk.f32.gmra.mxu3 %vm1526_vm2, %v4330_v46 }
 0x7c5   :  { %v4234_v57 = vpop.f32.mrf.mxu1 }
 0x7cc   :  { %v4299_v14 = vpop.f32.mrf.mxu2 }
 0x7cd   :  { %v4377_v53 = vpop.f32.mrf.mxu3  ;;  %v4237_v9 = vpop.f32.mrf.mxu1  ;;  %v4300_v45 = vadd.f32 %v4299_v14, %v4234_v57 }
 0x7cf   :  { %v8359_v13 = vadd.f32 %v4377_v53, %v4300_v45 }
 0x7d1   :  { %v4431_v60 = vmul.f32 %v8359_v13, %v8359_v13  ;;  %v4409_v2 = vsel %vm1526_vm2, %v8359_v13, 0.0 }
 0x7d3   :  { %v4439_v41 = vsel %vm1526_vm2, %v4431_v60, 0.0 }
 0x7d4   :  { %v4302_v43 = vpop.f32.mrf.mxu2 }
 0x7d5   :  { %v4380_v25 = vpop.f32.mrf.mxu3  ;;  %v4240_v30 = vpop.f32.mrf.mxu1  ;;  %v4303_v20 = vadd.f32 %v4302_v43, %v4237_v9 }
 0x7d7   :  { %v8357_v56 = vadd.f32 %v4380_v25, %v4303_v20 }
 0x7d9   :  { %v4432_v47 = vmul.f32 %v8357_v56, %v8357_v56  ;;  %v4410_v12 = vsel %vm1526_vm2, %v8357_v56, 0.0 }
 0x7da   :  { %v4411_v36 = vadd.f32 %v4410_v12, %v4409_v2 }
 0x7db   :  { %v4440_v23 = vsel %vm1526_vm2, %v4432_v47, 0.0 }
 0x7dc   :  { %v4305_v15 = vpop.f32.mrf.mxu2  ;;  %v4441_v11 = vadd.f32 %v4440_v23, %v4439_v41  ;;  %v4544_v41 = vld [vmem:[%s8570_s13 + $0x10] sm:$0xff] }
 0x7dd   :  { %v4383_v32 = vpop.f32.mrf.mxu3  ;;  %v4243_v26 = vpop.f32.mrf.mxu1  ;;  %v4306_v62 = vadd.f32 %v4305_v15, %v4240_v30 }
 0x7df   :  { %v8361_v18 = vadd.f32 %v4383_v32, %v4306_v62 }
 0x7e1   :  { %v4433_v19 = vmul.f32 %v8361_v18, %v8361_v18  ;;  %v4412_v16 = vsel %vm1526_vm2, %v8361_v18, 0.0 }
 0x7e2   :  { %v4413_v54 = vadd.f32 %v4412_v16, %v4411_v36  ;;  %v4545_v16 = vld [vmem:[%s8570_s13 + $0x18] sm:$0xff]  ;;  %v5136_v36 = vld [vmem:[%s8570_s13 + $0x30] sm:$0xff] }
 0x7e3   :  { %v4442_v6 = vsel %vm1526_vm2, %v4433_v19, 0.0  ;;  %4630 = vmatpush.msra.mxu2 %v4545_v16 }
 0x7e4   :  { %v4308_v33 = vpop.f32.mrf.mxu2  ;;  %v4443_v61 = vadd.f32 %v4442_v6, %v4441_v11  ;;  %v5142_v6 = vld [vmem:[%s8570_s13 + $0x50] sm:$0xff]  ;;  %v5135_v11 = vld [vmem:[%s8570_s13 + $0x28] sm:$0xff] }
 0x7e5   :  { %v4386_v3 = vpop.f32.mrf.mxu3  ;;  %v4246_v21 = vpop.f32.mrf.mxu1  ;;  %v4309_v27 = vadd.f32 %v4308_v33, %v4243_v26  ;;  %4631 = vmatpush.msra.mxu2 %v4544_v41 }
 0x7e7   :  { %v8365_v4 = vadd.f32 %v4386_v3, %v4309_v27 }
 0x7e9   :  { %v4434_v38 = vmul.f32 %v8365_v4, %v8365_v4  ;;  %v4414_v8 = vsel %vm1526_vm2, %v8365_v4, 0.0 }
 0x7ea   :  { %v4415_v10 = vadd.f32 %v4414_v8, %v4413_v54  ;;  %v5141_v54 = vld [vmem:[%s8570_s13 + $0x48] sm:$0xff] }
 0x7eb   :  { %v4444_v1 = vsel %vm1526_vm2, %v4434_v38, 0.0  ;;  %v5137_v38 = vld [vmem:[%s8570_s13 + $0x38] sm:$0xff] }
 0x7ec   :  { %v4311_v31 = vpop.f32.mrf.mxu2  ;;  %v4445_v48 = vadd.f32 %v4444_v1, %v4443_v61  ;;  %4594 = vmatpush.msra.mxu1 %v5137_v38  ;;  %v5140_v61 = vld [vmem:[%s8570_s13 + $0x40] sm:$0xff] }
 0x7ed   :  { %v4389_v22 = vpop.f32.mrf.mxu3  ;;  %v4249_v39 = vpop.f32.mrf.mxu1  ;;  %v4312_v58 = vadd.f32 %v4311_v31, %v4246_v21 }
 0x7ee   :  { %4595 = vmatpush.msra.mxu1 %v5136_v36 }
 0x7ef   :  { %v8373_v49 = vadd.f32 %v4389_v22, %v4312_v58 }
 0x7f0   :  { %4596 = vmatpush.msra.mxu1 %v5135_v11 }
 0x7f1   :  { %v4435_v51 = vmul.f32 %v8373_v49, %v8373_v49  ;;  %v4416_v59 = vsel %vm1526_vm2, %v8373_v49, 0.0 }
 0x7f2   :  { %v4417_v35 = vadd.f32 %v4416_v59, %v4415_v10  ;;  %v4542_v59 = vld [vmem:[%s8570_s13] sm:$0xff] }
 0x7f3   :  { %v4446_v24 = vsel %vm1526_vm2, %v4435_v51, 0.0  ;;  %v4543_v51 = vld [vmem:[%s8570_s13 + $0x8] sm:$0xff] }
 0x7f4   :  { %v4314_v55 = vpop.f32.mrf.mxu2  ;;  %v4447_v14 = vadd.f32 %v4446_v24, %v4445_v48  ;;  %4632 = vmatpush.msra.mxu2 %v4543_v51 }
 0x7f5   :  { %v4392_v5 = vpop.f32.mrf.mxu3  ;;  %v4315_v37 = vadd.f32 %v4314_v55, %v4249_v39  ;;  %v4252_v29 = vpop.f32.mrf.mxu1 }
 0x7f6   :  { %4633 = vmatpush.msra.mxu2 %v4542_v59 }
 0x7f7   :  { %v8382_v0 = vadd.f32 %v4392_v5, %v4315_v37 }
 0x7f9   :  { %v4436_v28 = vmul.f32 %v8382_v0, %v8382_v0  ;;  %v4418_v17 = vsel %vm1526_vm2, %v8382_v0, 0.0 }
 0x7fa   :  { %v4419_v53 = vadd.f32 %v4418_v17, %v4417_v35  ;;  %v4464_v17 = vld [vmem:[%s8568_s11] sm:$0x1] }
 0x7fb   :  { %v4448_v7 = vsel %vm1526_vm2, %v4436_v28, 0.0  ;;  %v5134_v28 = vld [vmem:[%s8570_s13 + $0x20] sm:$0xff] }
 0x7fc   :  { %v4317_v63 = vpop.f32.mrf.mxu2  ;;  %v4449_v30 = vadd.f32 %v4448_v7, %v4447_v14  ;;  %4597 = vmatpush.msra.mxu1 %v5134_v28 }
 0x7fd   :  { %v4318_v40 = vadd.f32 %v4317_v63, %v4252_v29  ;;  %v4395_v52 = vpop.f32.mrf.mxu3  ;;  %v4255_v50 = vpop.f32.mrf.mxu1 }
 0x7ff   :  { %v8390_v34 = vadd.f32 %v4395_v52, %v4318_v40  ;;  %v5143_v40 = vld [vmem:[%s8570_s13 + $0x58] sm:$0xff] }
 0x800   :  { %4671 = vmatpush.msrb.mxu3 %v5143_v40 }
 0x801   :  { %v4437_v42 = vmul.f32 %v8390_v34, %v8390_v34  ;;  %v4420_v46 = vsel %vm1526_vm2, %v8390_v34, 0.0 }
 0x802   :  { %v4421_v15 = vadd.f32 %v4420_v46, %v4419_v53  ;;  %4672 = vmatpush.msrb.mxu3 %v5142_v6 }
 0x803   :  { %v4450_v43 = vsel %vm1526_vm2, %v4437_v42, 0.0 }
 0x804   :  { %v4320_v44 = vpop.f32.mrf.mxu2  ;;  %v4451_v33 = vadd.f32 %v4450_v43, %v4449_v30  ;;  %4673 = vmatpush.msrb.mxu3 %v5141_v54 }
 0x805   :  { %v4321_v57 = vadd.f32 %v4320_v44, %v4255_v50  ;;  %v4398_v9 = vpop.f32.mrf.mxu3  ;;  %v4477_v50 = vld [vmem:[%s8569_s12] sm:$0x1] }
 0x806   :  { %4674 = vmatpush.msrb.mxu3 %v5140_v61 }
 0x807   :  { %v8406_v25 = vadd.f32 %v4398_v9, %v4321_v57 }
 0x809   :  { %v4422_v32 = vsel %vm1526_vm2, %v8406_v25, 0.0  ;;  %v4438_v26 = vmul.f32 %v8406_v25, %v8406_v25 }
 0x80a   :  { %v4423_v3 = vadd.f32 %v4422_v32, %v4421_v15 }
 0x80b   :  { %v4452_v21 = vsel %vm1526_vm2, %v4438_v26, 0.0 }
 0x80c   :  { %v4424_v31 = vrot.slane %v4423_v3, 4  ;;  %v4453_v22 = vadd.f32 %v4452_v21, %v4451_v33 }
 0x80e   :  { %v4425_v20 = vadd.f32 %v4424_v31, %v4423_v3  ;;  %v4454_v39 = vrot.slane %v4453_v22, 4 }
 0x810   :  { %v4426_v45 = vrot.slane %v4425_v20, 2  ;;  %v4455_v62 = vadd.f32 %v4454_v39, %v4453_v22 }
 0x812   :  { %v4427_v55 = vadd.f32 %v4426_v45, %v4425_v20  ;;  %v4456_v27 = vrot.slane %v4455_v62, 2 }
 0x814   :  { %v4428_v5 = vrot.slane %v4427_v55, 1  ;;  %v4457_v58 = vadd.f32 %v4456_v27, %v4455_v62  ;;  %v5145_v27 = vld [vmem:[%s8570_s13 + $0x60] sm:$0xff] }
 0x816   :  { %v4429_v47 = vadd.f32 %v4428_v5, %v4427_v55  ;;  %v4458_v37 = vrot.slane %v4457_v58, 1 }
 0x818   :  { %v4430_v60 = vmul.f32 0.015625, %v4429_v47  ;;  %v4459_v29 = vadd.f32 %v4458_v37, %v4457_v58 }
 0x81a   :  { %v4460_v12 = vmul.f32 0.015625, %v4459_v29  ;;  %v4461_v19 = vmul.f32 %v4430_v60, %v4430_v60 }
 0x81c   :  { %v4462_v2 = vsub.f32 %v4460_v12, %v4461_v19 }
 0x81e   :  { %v4463_v23 = vmax.f32 %v4462_v2, 0.0 }
 0x820   :  { %v4465_v63 = vadd.f32 1e-05, %v4463_v23 }
 0x822   :  { %5162 = vrsqrt.f32 %v4465_v63  ;;  %vm4472_vm14 = vweird.f32 %v4465_v63 }
 0x828   :  { %v5163_v52 = vpop.eup %5162 }
 0x829   :  { %v4467_v8 = vmul.f32 %v5163_v52, %v4465_v63  ;;  %vm4473_vm13 = vweird.f32 %v5163_v52 }
 0x82a   :  { %vm4474_vm15 = vmor %vm4472_vm14, %vm4473_vm13 }
 0x82b   :  { %v4468_v1 = vmul.f32 %v5163_v52, %v4467_v8 }
 0x82d   :  { %v4469_v10 = vmul.f32 0.5, %v4468_v1 }
 0x82f   :  { %v4470_v24 = vsub.f32 1.5, %v4469_v10 }
 0x831   :  { %v4471_v42 = vmul.f32 %v5163_v52, %v4470_v24 }
 0x833   :  { %v4475_v48 = vsel %vm4474_vm15, %v5163_v52, %v4471_v42 }
 0x834   :  { %v4476_v35 = vmul.f32 %v4475_v48, %v4464_v17 }
 0x836   :  { %v4478_v44 = vmul.f32 %v4476_v35, %v4430_v60  ;;  %v4481_v7 = vperm.slane %v4476_v35, 0 }
 0x838   :  { %v4479_v46 = vsub.f32 %v4477_v50, %v4478_v44  ;;  %v4483_v57 = vmul.f32 %v4481_v7, %v8359_v13  ;;  %v4484_v14 = vmul.f32 %v4481_v7, %v8357_v56  ;;  %v4485_v53 = vmul.f32 %v4481_v7, %v8361_v18 }
 0x839   :  { %v4486_v9 = vmul.f32 %v4481_v7, %v8365_v4  ;;  %v4487_v30 = vmul.f32 %v4481_v7, %v8373_v49  ;;  %v4488_v15 = vmul.f32 %v4481_v7, %v8382_v0  ;;  %v4490_v32 = vmul.f32 %v4481_v7, %v8406_v25  ;;  %v5148_v4 = vld [vmem:[%s8570_s13 + $0x78] sm:$0xff]  ;;  %v5147_v49 = vld [vmem:[%s8570_s13 + $0x70] sm:$0xff] }
 0x83a   :  { %v4492_v43 = vperm.slane %v4479_v46, 0  ;;  %v4489_v31 = vmul.f32 %v4481_v7, %v8390_v34  ;;  %4713 = vmatpush.msrb.mxu1 %v5148_v4  ;;  %v5146_v34 = vld [vmem:[%s8570_s13 + $0x68] sm:$0xff] }
 0x83c   :  { %v4494_v26 = vadd.f32 %v4492_v43, %v4483_v57  ;;  %v4495_v33 = vadd.f32 %v4492_v43, %v4484_v14  ;;  %v4496_v3 = vadd.f32 %v4492_v43, %v4485_v53  ;;  %v4497_v21 = vadd.f32 %v4492_v43, %v4486_v9  ;;  %4714 = vmatpush.msrb.mxu1 %v5147_v49 }
 0x83d   :  { %v4498_v13 = vadd.f32 %v4492_v43, %v4487_v30  ;;  %v4501_v22 = vadd.f32 %v4492_v43, %v4490_v32  ;;  %v4499_v56 = vadd.f32 %v4492_v43, %v4488_v15  ;;  %v4500_v0 = vadd.f32 %v4492_v43, %v4489_v31 }
 0x83e   :  { %v4502_v20 = vmax.f32 %v4494_v26, 0.0  ;;  %v4503_v18 = vmax.f32 %v4495_v33, 0.0  ;;  %v4504_v25 = vmax.f32 %v4496_v3, 0.0  ;;  %v4505_v45 = vmax.f32 %v4497_v21, 0.0  ;;  %4715 = vmatpush.msrb.mxu1 %v5146_v34 }
 0x83f   :  { %v4509_v39 = vmax.f32 %v4501_v22, 0.0  ;;  %v4506_v62 = vmax.f32 %v4498_v13, 0.0  ;;  %v4507_v55 = vmax.f32 %v4499_v56, 0.0  ;;  %v4508_v5 = vmax.f32 %v4500_v0, 0.0 }
 0x840   :  { %4510 = vst.msk [vmem:[#allocation2] sm:$0xff] %vm1526_vm2, %v4502_v20  ;;  %4716 = vmatpush.msrb.mxu1 %v5145_v27 }
 0x841   :  { %4517 = vst.msk [vmem:[#allocation2 + $0x1c0] sm:$0xff] %vm1526_vm2, %v4509_v39 }
 0x842   :  { %4511 = vst.msk [vmem:[#allocation2 + $0x40] sm:$0xff] %vm1526_vm2, %v4503_v18 }
 0x843   :  { %4512 = vst.msk [vmem:[#allocation2 + $0x80] sm:$0xff] %vm1526_vm2, %v4504_v25 }
 0x844   :  { %4513 = vst.msk [vmem:[#allocation2 + $0xc0] sm:$0xff] %vm1526_vm2, %v4505_v45 }
 0x845   :  { %4514 = vst.msk [vmem:[#allocation2 + $0x100] sm:$0xff] %vm1526_vm2, %v4506_v62 }
 0x846   :  { %4515 = vst.msk [vmem:[#allocation2 + $0x140] sm:$0xff] %vm1526_vm2, %v4507_v55 }
 0x847   :  { %4516 = vst.msk [vmem:[#allocation2 + $0x180] sm:$0xff] %vm1526_vm2, %v4508_v5  ;;  %v4518_v58 = vld [vmem:[#allocation2] ss:$2 sm:$0xf] }
 0x848   :  { %v4526_v47 = vld [vmem:[#allocation2 + $0x1] ss:$2 sm:$0xf]  ;;  %v4525_v2 = vld [vmem:[#allocation2 + $0x1c0] ss:$2 sm:$0xf] }
 0x849   :  { %v4519_v37 = vld [vmem:[#allocation2 + $0x40] ss:$2 sm:$0xf]  ;;  %v4527_v60 = vld [vmem:[#allocation2 + $0x41] ss:$2 sm:$0xf]  ;;  %v8483_v63 = vmax.f32 %v4518_v58, %v4526_v47 }
 0x84a   :  { %v4520_v29 = vld [vmem:[#allocation2 + $0x80] ss:$2 sm:$0xf]  ;;  %v4528_v12 = vld [vmem:[#allocation2 + $0x81] ss:$2 sm:$0xf]  ;;  %v4535_v52 = vmax.f32 %v4519_v37, %v4527_v60 }
 0x84b   :  { %v4521_v19 = vld [vmem:[#allocation2 + $0xc0] ss:$2 sm:$0xf]  ;;  %v4529_v23 = vld [vmem:[#allocation2 + $0xc1] ss:$2 sm:$0xf]  ;;  %v8485_v16 = vmax.f32 %v4520_v29, %v4528_v12 }
 0x84c   :  { %v4522_v38 = vld [vmem:[#allocation2 + $0x100] ss:$2 sm:$0xf]  ;;  %v4530_v40 = vld [vmem:[#allocation2 + $0x101] ss:$2 sm:$0xf]  ;;  %v8487_v41 = vmax.f32 %v4521_v19, %v4529_v23 }
 0x84d   :  { %v4523_v36 = vld [vmem:[#allocation2 + $0x140] ss:$2 sm:$0xf]  ;;  %v4531_v6 = vld [vmem:[#allocation2 + $0x141] ss:$2 sm:$0xf]  ;;  %v8489_v8 = vmax.f32 %v4522_v38, %v4530_v40 }
 0x84e   :  { %v4524_v51 = vld [vmem:[#allocation2 + $0x180] ss:$2 sm:$0xf]  ;;  %v4532_v11 = vld [vmem:[#allocation2 + $0x181] ss:$2 sm:$0xf]  ;;  %v8491_v54 = vmax.f32 %v4523_v36, %v4531_v6 }
 0x84f   :  { %v4533_v1 = vld [vmem:[#allocation2 + $0x1c1] ss:$2 sm:$0xf]  ;;  %v8493_v59 = vmax.f32 %v4524_v51, %v4532_v11  ;;  %v4559_v28 = vrot.slane %v8483_v63, 1  ;;  %v4562_v61 = vrot.slane %v8485_v16, 7  ;;  %v4565_v24 = vrot.slane %v8487_v41, 6 }
 0x850   :  { %v4541_v10 = vmax.f32 %v4525_v2, %v4533_v1  ;;  %v4602_v17 = vrot.slane %v4535_v52, 7  ;;  %v4568_v48 = vrot.slane %v8489_v8, 5  ;;  %v4571_v35 = vrot.slane %v8491_v54, 4  ;;  %v5155_v1 = vld [vmem:[%s8571_s14] ss:$0 sm:$0xff] }
 0x851   :  { %v4561_v42 = vsel %vm4560_vm0, %v4535_v52, %v4559_v28  ;;  %v4604_v50 = vrot.slane %v8485_v16, 6  ;;  %v4574_v7 = vrot.slane %v8493_v59, 3  ;;  %v4606_v57 = vrot.slane %v8487_v41, 5 }
 0x852   :  { %v4564_v44 = vsel %vm4563_vm1, %v4562_v61, %v4561_v42  ;;  %v4603_v46 = vsel %vm4560_vm0, %v4602_v17, %v8483_v63  ;;  %v4577_v53 = vrot.slane %v4541_v10, 2  ;;  %v4608_v43 = vrot.slane %v8489_v8, 4 }
 0x853   :  { %v4567_v14 = vsel %vm4566_vm3, %v4565_v24, %v4564_v44  ;;  %v4605_v9 = vsel %vm4563_vm1, %v4604_v50, %v4603_v46  ;;  %v4610_v32 = vrot.slane %v8491_v54, 3  ;;  %v4643_v26 = vrot.slane %v8483_v63, 2 }
 0x854   :  { %v4570_v30 = vsel %vm4569_vm4, %v4568_v48, %v4567_v14  ;;  %v4607_v15 = vsel %vm4566_vm3, %v4606_v57, %v4605_v9  ;;  %v4612_v21 = vrot.slane %v8493_v59, 2  ;;  %v4644_v31 = vrot.slane %v4535_v52, 1 }
 0x855   :  { %v4573_v33 = vsel %vm4572_vm5, %v4571_v35, %v4570_v30  ;;  %v4609_v3 = vsel %vm4569_vm4, %v4608_v43, %v4607_v15  ;;  %v4614_v56 = vrot.slane %v4541_v10, 1  ;;  %v4647_v49 = vrot.slane %v8487_v41, 7 }
 0x856   :  { %v4576_v13 = vsel %vm4575_vm6, %v4574_v7, %v4573_v33  ;;  %v4611_v22 = vsel %vm4572_vm5, %v4610_v32, %v4609_v3  ;;  %v4645_v4 = vsel %vm4560_vm0, %v4644_v31, %v4643_v26  ;;  %v4649_v39 = vrot.slane %v8489_v8, 6 }
 0x857   :  { %v4579_v20 = vsel %vm4578_vm7, %v4577_v53, %v4576_v13  ;;  %v4613_v18 = vsel %vm4575_vm6, %v4612_v21, %v4611_v22  ;;  %v4646_v25 = vsel %vm4563_vm1, %v8485_v16, %v4645_v4  ;;  %v4685_v45 = vrot.slane %v8483_v63, 3 }
 0x858   :  { %5138 = vmatmul.msk.f32.vlgmr.msra.gmra.mxu1 %vm1526_vm2, %v4579_v20  ;;  %v4615_v0 = vsel %vm4578_vm7, %v4614_v56, %v4613_v18  ;;  %v4648_v34 = vsel %vm4566_vm3, %v4647_v49, %v4646_v25  ;;  %v4651_v62 = vrot.slane %v8491_v54, 5  ;;  %v4686_v55 = vrot.slane %v4535_v52, 2 }
 0x859   :  { %5139 = vmatmul.msk.f32.vlgmr.msra.gmra.mxu2 %vm1526_vm2, %v4615_v0  ;;  %v4688_v27 = vrot.slane %v8485_v16, 1  ;;  %v4650_v5 = vsel %vm4569_vm4, %v4649_v39, %v4648_v34  ;;  %v4653_v58 = vrot.slane %v8493_v59, 4  ;;  %v4655_v37 = vrot.slane %v4541_v10, 3 }
 0x85a   :  { %v4652_v47 = vsel %vm4572_vm5, %v4651_v62, %v4650_v5  ;;  %v4687_v60 = vsel %vm4560_vm0, %v4686_v55, %v4685_v45  ;;  %v4691_v19 = vrot.slane %v8489_v8, 7  ;;  %v4693_v63 = vrot.slane %v8491_v54, 6 }
 0x85b   :  { %v4654_v29 = vsel %vm4575_vm6, %v4653_v58, %v4652_v47  ;;  %v4689_v12 = vsel %vm4563_vm1, %v4688_v27, %v4687_v60  ;;  %v4695_v38 = vrot.slane %v8493_v59, 5  ;;  %v4697_v52 = vrot.slane %v4541_v10, 4 }
 0x85c   :  { %v4656_v2 = vsel %vm4578_vm7, %v4655_v37, %v4654_v29  ;;  %v4690_v23 = vsel %vm4566_vm3, %v8487_v41, %v4689_v12 }
 0x85d   :  { %5144 = vmatmul.msk.f32.vlgmr.msrb.gmra.mxu3 %vm1526_vm2, %v4656_v2  ;;  %v4692_v16 = vsel %vm4569_vm4, %v4691_v19, %v4690_v23 }
 0x85e   :  { %v4694_v40 = vsel %vm4572_vm5, %v4693_v63, %v4692_v16 }
 0x85f   :  { %v4696_v36 = vsel %vm4575_vm6, %v4695_v38, %v4694_v40 }
 0x860   :  { %v4698_v6 = vsel %vm4578_vm7, %v4697_v52, %v4696_v36 }
 0x861   :  { %5149 = vmatmul.msk.f32.vlgmr.msrb.gmra.mxu1 %vm1526_vm2, %v4698_v6 }
 0x8d5   :  { %v4599_v8 = vpop.f32.mrf.mxu1 }
 0x8dc   :  { %v4635_v51 = vpop.f32.mrf.mxu2 }
 0x8dd   :  { %v4636_v41 = vadd.f32 %v4635_v51, %v4599_v8 }
 0x8de   :  { %v4718_v28 = vpop.f32.mrf.mxu1 }
 0x8e0   :  { %v4676_v11 = vpop.f32.mrf.mxu3 }
 0x8e1   :  { %v4679_v54 = vadd.f32 %v4676_v11, %v4636_v41 }
 0x8e3   :  { %v4721_v59 = vadd.f32 %v4718_v28, %v4679_v54 }
 0x8e5   :  { %v4726_v61 = vadd.f32 %v5155_v1, %v4721_v59 }
 0x8e7   :  { %4728 = vst.msk [vmem:[#allocation4] sm:$0xff] %vm4727_vm8, %v4726_v61 }
 0x8e8   :  { %4739 = dma.vmem_to_hbm [thread:$0]  %s4735_s29, 128, %s4737_s3, [#allocation5]  }
 0x8e9   :  { %5188 = dma.done.wait [#allocation5], 128  }
 0x8ea   :  { %5189 = vsyncadd [#allocation5], 4294967168 }
 0x8eb   :  { %4744 = vsyncpa [#allocation5], 1 }

</bundles_post_ra>
